<compile_context>
chip_gen: v6e
topology: v6e:2x2x1
jax: 0.10.0
libtpu: 0.0.40
codegen_flags: <defaults>
</compile_context>

<pallas_src>
import jax
import jax.numpy as jnp
from jax.experimental import pallas as pl
from jax.experimental.pallas import tpu as pltpu


def _pick_batch_tile(batch, max_bt=8):
    """Generation-aware batch tile.

    v5e/v6e have a single TensorCore: the grid is a serial loop, so fewer, larger steps win.
    v7x (and megacore v4/v5p) have 2 cores: keep >= 2 grid steps so
    dimension_semantics=("parallel",) can shard the batch across them.
    """
    kind = ""
    try:
        kind = jax.devices()[0].device_kind.lower()
    except Exception:
        pass
    multi_core = any(tag in kind for tag in ("v7", "v4", "v5p"))
    best = 1
    for cand in range(1, min(batch, max_bt) + 1):
        if batch % cand:
            continue
        if multi_core and batch >= 2 and batch // cand < 2:
            continue
        best = cand
    return best


# --------------------------------------------------------------------------- #
# Fused kernel: QKV 1x1 conv + ReLU  ->  axis attention  ->  gamma*up-conv     #
# --------------------------------------------------------------------------- #
def _fused_kernel(x_ref, xt_ref, wqkv_ref, bqkv_ref, wup_ref, bup_ref,
                  out_ref, q_ref, k_ref, v_ref, attn_ref,
                  q_scr, k_scr, v_scr):
    bt, C, G, M = x_ref.shape          # x in (bt, C, G, M) with G*M = H*W, M = C2*H
    C2, Cout = wup_ref.shape
    H = out_ref.shape[2]

    for b in range(bt):                # small static unroll over the batch tile
        xg = [x_ref[b, ci].astype(jnp.float32) for ci in range(C)]    # (G, M) each
        xt = [xt_ref[b, ci].astype(jnp.float32) for ci in range(C)]   # (M, G) each

        # ---- Q 1x1 conv + ReLU, written straight in the torch .view(W, C2*H) layout ----
        for c2 in range(C2):
            acc = wqkv_ref[0, c2] * xg[0]
            for ci in range(1, C):
                acc = acc + wqkv_ref[ci, c2] * xg[ci]
            q_scr[c2 * G:(c2 + 1) * G, :] = jnp.maximum(acc + bqkv_ref[c2], 0.0)

        # ---- K^T and V^T built directly in (C2*H, W) layout (== x_Kw / x_Vw) ----
        for t, dst in ((1, k_scr), (2, v_scr)):
            for c2 in range(C2):
                oc = t * C2 + c2
                acc = wqkv_ref[0, oc] * xt[0]
                for ci in range(1, C):
                    acc = acc + wqkv_ref[ci, oc] * xt[ci]
                dst[:, c2 * G:(c2 + 1) * G] = jnp.maximum(acc + bqkv_ref[oc], 0.0)

        q = q_scr[...]          # (W, M)  f32
        kT = k_scr[...]         # (M, W)  f32
        vT = v_scr[...]         # (M, W)  f32
        q_ref[b] = q.astype(q_ref.dtype)
        k_ref[b] = kT.astype(k_ref.dtype)
        v_ref[b] = vT.astype(v_ref.dtype)

        # ---- S = Q @ K^T ; A = softmax(S, axis=0)   (torch Softmax(dim=1)) ----
        s = jnp.dot(q, kT, preferred_element_type=jnp.float32)        # (W, W)
        s = s - jnp.max(s, axis=0, keepdims=True)
        e = jnp.exp(s)
        a = e / jnp.sum(e, axis=0, keepdims=True)
        attn_ref[b] = a.astype(attn_ref.dtype)

        # ---- out1 = V^T @ A -> (C2*H, W); gamma-folded 1x1 up-conv per output channel ----
        out1 = jnp.dot(vT, a, preferred_element_type=jnp.float32)     # (M, W)
        for co in range(Cout):
            o = wup_ref[0, co] * out1[0:H, :]
            for c2 in range(1, C2):
                o = o + wup_ref[c2, co] * out1[c2 * H:(c2 + 1) * H, :]
            out_ref[b, co] = (o + bup_ref[co]).astype(out_ref.dtype)


def _fused_forward(x4, xt4, w_qkv, b_qkv, w_up_s, b_up, *, bt, C, H, W, C2):
    B, _, G, M = x4.shape
    dt = x4.dtype
    smem = pl.BlockSpec(memory_space=pltpu.MemorySpace.SMEM)
    return pl.pallas_call(
        _fused_kernel,
        grid=(B // bt,),
        in_specs=[pl.BlockSpec((bt, C, G, M), lambda i: (i, 0, 0, 0)),
                  pl.BlockSpec((bt, C, M, G), lambda i: (i, 0, 0, 0)),
                  smem, smem, smem, smem],
        out_specs=[pl.BlockSpec((bt, C, H, W), lambda i: (i, 0, 0, 0)),
                   pl.BlockSpec((bt, W, M), lambda i: (i, 0, 0)),
                   pl.BlockSpec((bt, M, W), lambda i: (i, 0, 0)),
                   pl.BlockSpec((bt, M, W), lambda i: (i, 0, 0)),
                   pl.BlockSpec((bt, W, W), lambda i: (i, 0, 0))],
        out_shape=[jax.ShapeDtypeStruct((B, C, H, W), dt),      # out_w
                   jax.ShapeDtypeStruct((B, W, M), dt),         # x_Qw
                   jax.ShapeDtypeStruct((B, M, W), dt),         # x_Kw (already transposed)
                   jax.ShapeDtypeStruct((B, M, W), dt),         # x_Vw (already transposed)
                   jax.ShapeDtypeStruct((B, W, W), dt)],        # attention weights
        scratch_shapes=[pltpu.VMEM((W, M), jnp.float32),
                        pltpu.VMEM((M, W), jnp.float32),
                        pltpu.VMEM((M, W), jnp.float32)],
        compiler_params=pltpu.CompilerParams(
            dimension_semantics=("parallel",),
            vmem_limit_bytes=32 * 1024 * 1024),
    )(x4, xt4, w_qkv, b_qkv, w_up_s, b_up)


# --------------------------------------------------------------------------- #
# Parameter prep (one-time, outside the jitted forward) and the forward pass   #
# --------------------------------------------------------------------------- #
def prepare_params(params):
    """One-time parameter preprocessing, hoisted out of the jitted forward."""
    f32 = jnp.float32
    w_qkv = jnp.concatenate(
        [params["wq"], params["wk"], params["wv"]], axis=1).astype(f32)        # (C, 3*C2)
    b_qkv = jnp.concatenate(
        [params["bq"].reshape(-1), params["bk"].reshape(-1),
         params["bv"].reshape(-1)]).astype(f32)                                # (3*C2,)
    # The 1x1 conv is linear, so folding gamma into its weight is exact; bias stays unscaled.
    w_up_s = (params["gamma"][0] * params["w_up"]).astype(f32)                 # (C2, C)
    b_up = params["b_up"].reshape(-1).astype(f32)                              # (C,)
    return {"w_qkv": w_qkv, "b_qkv": b_qkv, "w_up_s": w_up_s,
            "b_up": b_up, "gamma": params["gamma"]}


@jax.jit
def axis_portrait_attention(x, prep):
    """Forward of Axis_Portrait_Attention_block.

    Returns (out_w, x_Qw, x_Kw, x_Vw, gamma_w, Attention_w_wight), matching the torch module.
    """
    B, C, H, W = x.shape
    C2 = prep["w_up_s"].shape[0]
    M = C2 * H
    HW = H * W
    assert HW % M == 0, "torch .view(B, W, -1) chunking here requires C2 | W"
    G = HW // M
    bt = _pick_batch_tile(B)

    x4 = x.reshape(B, C, G, M)          # free row-major reinterpretation of (H, W)
    xt4 = jnp.swapaxes(x4, 2, 3)        # (B, C, M, G): lets K^T / V^T be built in place

    out_w, x_Qw, x_Kw, x_Vw, attn = _fused_forward(
        x4, xt4, prep["w_qkv"], prep["b_qkv"], prep["w_up_s"], prep["b_up"],
        bt=bt, C=C, H=H, W=W, C2=C2)
    return out_w, x_Qw, x_Kw, x_Vw, prep["gamma"], attn


# --------------------------------------------------------------------------- #
# Pure-JAX reference (mirrors the PyTorch forward 1:1) for validation          #
# --------------------------------------------------------------------------- #
def reference_forward(x, params):
    B, C, H, W = x.shape
    C2 = params["w_up"].shape[0]

    def conv1x1(inp, w, b):            # w: (C_in, C_out); exact f32 elementwise conv
        y = jnp.sum(inp[:, :, None, :, :] * w[None, :, :, None, None], axis=1)
        return y + b.reshape(1, -1, 1, 1)

    x_qw1 = jnp.maximum(conv1x1(x, params["wq"], params["bq"][0]), 0.0)
    x_kw1 = jnp.maximum(conv1x1(x, params["wk"], params["bk"][0]), 0.0)
    x_vw1 = jnp.maximum(conv1x1(x, params["wv"], params["bv"][0]), 0.0)

    x_Qw = x_qw1.reshape(B, W, -1)
    x_Kw = jnp.transpose(x_kw1.reshape(B, W, -1), (0, 2, 1))
    x_Vw = jnp.transpose(x_vw1.reshape(B, W, -1), (0, 2, 1))

    attn = jax.nn.softmax(jnp.matmul(x_Qw, x_Kw), axis=1)          # Softmax(dim=1)
    out1 = jnp.matmul(x_Vw, attn)
    out_pre = out1.reshape(B, C2, H, W) * params["gamma"][0]
    out = jnp.sum(out_pre[:, :, None, :, :] *
                  params["w_up"][None, :, :, None, None], axis=1)
    out = out + params["b_up"][0].reshape(1, -1, 1, 1)
    return out, x_Qw, x_Kw, x_Vw, params["gamma"], attn


def init_params(key, channel, ration=1, dtype=jnp.float32):
    C, C2 = channel, channel // ration
    ks = jax.random.split(key, 8)
    scale = 0.1
    return {
        # conv weights stored as (C_in, C_out) for the matmul view of a 1x1 conv
        "wq": scale * jax.random.normal(ks[0], (C, C2), dtype),
        "bq": scale * jax.random.normal(ks[1], (1, C2), dtype),
        "wk": scale * jax.random.normal(ks[2], (C, C2), dtype),
        "bk": scale * jax.random.normal(ks[3], (1, C2), dtype),
        "wv": scale * jax.random.normal(ks[4], (C, C2), dtype),
        "bv": scale * jax.random.normal(ks[5], (1, C2), dtype),
        "w_up": scale * jax.random.normal(ks[6], (C2, C), dtype),
        "b_up": scale * jax.random.normal(ks[7], (1, C), dtype),
        # nn.Parameter(torch.zeros(1)) in torch; nonzero here so the up-conv path is exercised
        "gamma": jnp.full((1,), 0.5, dtype),
    }


if __name__ == "__main__":
    key = jax.random.PRNGKey(0)
    kx, kp = jax.random.split(key)

    B, C, H, W = 2, 4, 16, 16            # channel=4, ration=1, activate_F = ReLU
    x = jax.random.normal(kx, (B, C, H, W), jnp.float32)
    params = init_params(kp, C, ration=1)
    prep = prepare_params(params)        # parameter-only prep, once, outside the jitted forward

    outs = axis_portrait_attention(x, prep)
    outs = jax.block_until_ready(outs)

    refs = reference_forward(x, params)
    names = ["out_w", "x_Qw", "x_Kw", "x_Vw", "gamma_w", "Attention_w_wight"]
    for name, got, want in zip(names, outs, refs):
        assert got.shape == want.shape, (name, got.shape, want.shape)
        assert jnp.allclose(got, want, atol=5e-5, rtol=5e-5), name

    print("KERNEL_OK")
</pallas_src>

<mosaic_0001>
module attributes {stable_mosaic.version = 11 : i64} {
  func.func @_fused_kernel(%arg0: i32, %arg1: memref<2x4x4x64xf32, #tpu.memory_space<vmem>>, %arg2: memref<2x4x64x4xf32, #tpu.memory_space<vmem>>, %arg3: memref<4x12xf32, #tpu.memory_space<smem>>, %arg4: memref<12xf32, #tpu.memory_space<smem>>, %arg5: memref<4x4xf32, #tpu.memory_space<smem>>, %arg6: memref<4xf32, #tpu.memory_space<smem>>, %arg7: memref<2x4x16x16xf32, #tpu.memory_space<vmem>>, %arg8: memref<2x16x64xf32, #tpu.memory_space<vmem>>, %arg9: memref<2x64x16xf32, #tpu.memory_space<vmem>>, %arg10: memref<2x64x16xf32, #tpu.memory_space<vmem>>, %arg11: memref<2x16x16xf32, #tpu.memory_space<vmem>>, %arg12: memref<16x64xf32, #tpu.memory_space<vmem>>, %arg13: memref<64x16xf32, #tpu.memory_space<vmem>>, %arg14: memref<64x16xf32, #tpu.memory_space<vmem>>) attributes {dimension_semantics = [#tpu.dimension_semantics<parallel>], iteration_bounds = array<i64: 1>, scalar_prefetch = 0 : i64, scratch_operands = 3 : i64, tpu.core_type = #tpu.core_type<tc>, window_params = [{transform_indices = @transform_0, window_bounds = array<i64: 2, 4, 4, 64>}, {transform_indices = @transform_1, window_bounds = array<i64: 2, 4, 64, 4>}, {transform_indices = @transform_2, window_bounds = array<i64: 4, 12>}, {transform_indices = @transform_3, window_bounds = array<i64: 12>}, {transform_indices = @transform_4, window_bounds = array<i64: 4, 4>}, {transform_indices = @transform_5, window_bounds = array<i64: 4>}, {transform_indices = @transform_6, window_bounds = array<i64: 2, 4, 16, 16>}, {transform_indices = @transform_7, window_bounds = array<i64: 2, 16, 64>}, {transform_indices = @transform_8, window_bounds = array<i64: 2, 64, 16>}, {transform_indices = @transform_9, window_bounds = array<i64: 2, 64, 16>}, {transform_indices = @transform_10, window_bounds = array<i64: 2, 16, 16>}]} {
    %c0 = arith.constant 0 : index
    %c0_0 = arith.constant 0 : index
    %c0_1 = arith.constant 0 : index
    %c0_2 = arith.constant 0 : index
    %0 = vector.load %arg1[%c0, %c0_0, %c0_1, %c0_2] : memref<2x4x4x64xf32, #tpu.memory_space<vmem>>, vector<1x1x4x64xf32>
    %1 = vector.shape_cast %0 : vector<1x1x4x64xf32> to vector<4x64xf32>
    %c0_3 = arith.constant 0 : index
    %c1 = arith.constant 1 : index
    %c0_4 = arith.constant 0 : index
    %c0_5 = arith.constant 0 : index
    %2 = vector.load %arg1[%c0_3, %c1, %c0_4, %c0_5] : memref<2x4x4x64xf32, #tpu.memory_space<vmem>>, vector<1x1x4x64xf32>
    %3 = vector.shape_cast %2 : vector<1x1x4x64xf32> to vector<4x64xf32>
    %c0_6 = arith.constant 0 : index
    %c2 = arith.constant 2 : index
    %c0_7 = arith.constant 0 : index
    %c0_8 = arith.constant 0 : index
    %4 = vector.load %arg1[%c0_6, %c2, %c0_7, %c0_8] : memref<2x4x4x64xf32, #tpu.memory_space<vmem>>, vector<1x1x4x64xf32>
    %5 = vector.shape_cast %4 : vector<1x1x4x64xf32> to vector<4x64xf32>
    %c0_9 = arith.constant 0 : index
    %c3 = arith.constant 3 : index
    %c0_10 = arith.constant 0 : index
    %c0_11 = arith.constant 0 : index
    %6 = vector.load %arg1[%c0_9, %c3, %c0_10, %c0_11] : memref<2x4x4x64xf32, #tpu.memory_space<vmem>>, vector<1x1x4x64xf32>
    %7 = vector.shape_cast %6 : vector<1x1x4x64xf32> to vector<4x64xf32>
    %c0_12 = arith.constant 0 : index
    %c0_13 = arith.constant 0 : index
    %c0_14 = arith.constant 0 : index
    %c0_15 = arith.constant 0 : index
    %8 = vector.load %arg2[%c0_12, %c0_13, %c0_14, %c0_15] : memref<2x4x64x4xf32, #tpu.memory_space<vmem>>, vector<1x1x64x4xf32>
    %9 = vector.shape_cast %8 : vector<1x1x64x4xf32> to vector<64x4xf32>
    %c0_16 = arith.constant 0 : index
    %c1_17 = arith.constant 1 : index
    %c0_18 = arith.constant 0 : index
    %c0_19 = arith.constant 0 : index
    %10 = vector.load %arg2[%c0_16, %c1_17, %c0_18, %c0_19] : memref<2x4x64x4xf32, #tpu.memory_space<vmem>>, vector<1x1x64x4xf32>
    %11 = vector.shape_cast %10 : vector<1x1x64x4xf32> to vector<64x4xf32>
    %c0_20 = arith.constant 0 : index
    %c2_21 = arith.constant 2 : index
    %c0_22 = arith.constant 0 : index
    %c0_23 = arith.constant 0 : index
    %12 = vector.load %arg2[%c0_20, %c2_21, %c0_22, %c0_23] : memref<2x4x64x4xf32, #tpu.memory_space<vmem>>, vector<1x1x64x4xf32>
    %13 = vector.shape_cast %12 : vector<1x1x64x4xf32> to vector<64x4xf32>
    %c0_24 = arith.constant 0 : index
    %c3_25 = arith.constant 3 : index
    %c0_26 = arith.constant 0 : index
    %c0_27 = arith.constant 0 : index
    %14 = vector.load %arg2[%c0_24, %c3_25, %c0_26, %c0_27] : memref<2x4x64x4xf32, #tpu.memory_space<vmem>>, vector<1x1x64x4xf32>
    %15 = vector.shape_cast %14 : vector<1x1x64x4xf32> to vector<64x4xf32>
    %c0_28 = arith.constant 0 : index
    %c0_29 = arith.constant 0 : index
    %16 = memref.load %arg3[%c0_28, %c0_29] : memref<4x12xf32, #tpu.memory_space<smem>>
    %17 = vector.broadcast %16 : f32 to vector<4x64xf32>
    %18 = arith.mulf %17, %1 : vector<4x64xf32>
    %c1_30 = arith.constant 1 : index
    %c0_31 = arith.constant 0 : index
    %19 = memref.load %arg3[%c1_30, %c0_31] : memref<4x12xf32, #tpu.memory_space<smem>>
    %20 = vector.broadcast %19 : f32 to vector<4x64xf32>
    %21 = arith.mulf %20, %3 : vector<4x64xf32>
    %22 = arith.addf %18, %21 : vector<4x64xf32>
    %c2_32 = arith.constant 2 : index
    %c0_33 = arith.constant 0 : index
    %23 = memref.load %arg3[%c2_32, %c0_33] : memref<4x12xf32, #tpu.memory_space<smem>>
    %24 = vector.broadcast %23 : f32 to vector<4x64xf32>
    %25 = arith.mulf %24, %5 : vector<4x64xf32>
    %26 = arith.addf %22, %25 : vector<4x64xf32>
    %c3_34 = arith.constant 3 : index
    %c0_35 = arith.constant 0 : index
    %27 = memref.load %arg3[%c3_34, %c0_35] : memref<4x12xf32, #tpu.memory_space<smem>>
    %28 = vector.broadcast %27 : f32 to vector<4x64xf32>
    %29 = arith.mulf %28, %7 : vector<4x64xf32>
    %30 = arith.addf %26, %29 : vector<4x64xf32>
    %c0_36 = arith.constant 0 : index
    %31 = memref.load %arg4[%c0_36] : memref<12xf32, #tpu.memory_space<smem>>
    %32 = vector.broadcast %31 : f32 to vector<4x64xf32>
    %33 = arith.addf %30, %32 : vector<4x64xf32>
    %cst = arith.constant 0.000000e+00 : f32
    %34 = vector.broadcast %cst : f32 to vector<4x64xf32>
    %35 = arith.maximumf %33, %34 : vector<4x64xf32>
    %c0_37 = arith.constant 0 : index
    %c0_38 = arith.constant 0 : index
    %36 = vector.load %arg12[%c0_37, %c0_38] : memref<16x64xf32, #tpu.memory_space<vmem>>, vector<4x64xf32>
    tpu.vector_store %arg12[%c0_37, %c0_38], %35 {strides = array<i32>} : memref<16x64xf32, #tpu.memory_space<vmem>>, vector<4x64xf32>,
    %c0_39 = arith.constant 0 : index
    %c1_40 = arith.constant 1 : index
    %37 = memref.load %arg3[%c0_39, %c1_40] : memref<4x12xf32, #tpu.memory_space<smem>>
    %38 = vector.broadcast %37 : f32 to vector<4x64xf32>
    %39 = arith.mulf %38, %1 : vector<4x64xf32>
    %c1_41 = arith.constant 1 : index
    %c1_42 = arith.constant 1 : index
    %40 = memref.load %arg3[%c1_41, %c1_42] : memref<4x12xf32, #tpu.memory_space<smem>>
    %41 = vector.broadcast %40 : f32 to vector<4x64xf32>
    %42 = arith.mulf %41, %3 : vector<4x64xf32>
    %43 = arith.addf %39, %42 : vector<4x64xf32>
    %c2_43 = arith.constant 2 : index
    %c1_44 = arith.constant 1 : index
    %44 = memref.load %arg3[%c2_43, %c1_44] : memref<4x12xf32, #tpu.memory_space<smem>>
    %45 = vector.broadcast %44 : f32 to vector<4x64xf32>
    %46 = arith.mulf %45, %5 : vector<4x64xf32>
    %47 = arith.addf %43, %46 : vector<4x64xf32>
    %c3_45 = arith.constant 3 : index
    %c1_46 = arith.constant 1 : index
    %48 = memref.load %arg3[%c3_45, %c1_46] : memref<4x12xf32, #tpu.memory_space<smem>>
    %49 = vector.broadcast %48 : f32 to vector<4x64xf32>
    %50 = arith.mulf %49, %7 : vector<4x64xf32>
    %51 = arith.addf %47, %50 : vector<4x64xf32>
    %c1_47 = arith.constant 1 : index
    %52 = memref.load %arg4[%c1_47] : memref<12xf32, #tpu.memory_space<smem>>
    %53 = vector.broadcast %52 : f32 to vector<4x64xf32>
    %54 = arith.addf %51, %53 : vector<4x64xf32>
    %cst_48 = arith.constant 0.000000e+00 : f32
    %55 = vector.broadcast %cst_48 : f32 to vector<4x64xf32>
    %56 = arith.maximumf %54, %55 : vector<4x64xf32>
    %c4 = arith.constant 4 : index
    %c0_49 = arith.constant 0 : index
    %57 = vector.load %arg12[%c4, %c0_49] : memref<16x64xf32, #tpu.memory_space<vmem>>, vector<4x64xf32>
    tpu.vector_store %arg12[%c4, %c0_49], %56 {strides = array<i32>} : memref<16x64xf32, #tpu.memory_space<vmem>>, vector<4x64xf32>,
    %c0_50 = arith.constant 0 : index
    %c2_51 = arith.constant 2 : index
    %58 = memref.load %arg3[%c0_50, %c2_51] : memref<4x12xf32, #tpu.memory_space<smem>>
    %59 = vector.broadcast %58 : f32 to vector<4x64xf32>
    %60 = arith.mulf %59, %1 : vector<4x64xf32>
    %c1_52 = arith.constant 1 : index
    %c2_53 = arith.constant 2 : index
    %61 = memref.load %arg3[%c1_52, %c2_53] : memref<4x12xf32, #tpu.memory_space<smem>>
    %62 = vector.broadcast %61 : f32 to vector<4x64xf32>
    %63 = arith.mulf %62, %3 : vector<4x64xf32>
    %64 = arith.addf %60, %63 : vector<4x64xf32>
    %c2_54 = arith.constant 2 : index
    %c2_55 = arith.constant 2 : index
    %65 = memref.load %arg3[%c2_54, %c2_55] : memref<4x12xf32, #tpu.memory_space<smem>>
    %66 = vector.broadcast %65 : f32 to vector<4x64xf32>
    %67 = arith.mulf %66, %5 : vector<4x64xf32>
    %68 = arith.addf %64, %67 : vector<4x64xf32>
    %c3_56 = arith.constant 3 : index
    %c2_57 = arith.constant 2 : index
    %69 = memref.load %arg3[%c3_56, %c2_57] : memref<4x12xf32, #tpu.memory_space<smem>>
    %70 = vector.broadcast %69 : f32 to vector<4x64xf32>
    %71 = arith.mulf %70, %7 : vector<4x64xf32>
    %72 = arith.addf %68, %71 : vector<4x64xf32>
    %c2_58 = arith.constant 2 : index
    %73 = memref.load %arg4[%c2_58] : memref<12xf32, #tpu.memory_space<smem>>
    %74 = vector.broadcast %73 : f32 to vector<4x64xf32>
    %75 = arith.addf %72, %74 : vector<4x64xf32>
    %cst_59 = arith.constant 0.000000e+00 : f32
    %76 = vector.broadcast %cst_59 : f32 to vector<4x64xf32>
    %77 = arith.maximumf %75, %76 : vector<4x64xf32>
    %c8 = arith.constant 8 : index
    %c0_60 = arith.constant 0 : index
    %78 = vector.load %arg12[%c8, %c0_60] : memref<16x64xf32, #tpu.memory_space<vmem>>, vector<4x64xf32>
    tpu.vector_store %arg12[%c8, %c0_60], %77 {strides = array<i32>} : memref<16x64xf32, #tpu.memory_space<vmem>>, vector<4x64xf32>,
    %c0_61 = arith.constant 0 : index
    %c3_62 = arith.constant 3 : index
    %79 = memref.load %arg3[%c0_61, %c3_62] : memref<4x12xf32, #tpu.memory_space<smem>>
    %80 = vector.broadcast %79 : f32 to vector<4x64xf32>
    %81 = arith.mulf %80, %1 : vector<4x64xf32>
    %c1_63 = arith.constant 1 : index
    %c3_64 = arith.constant 3 : index
    %82 = memref.load %arg3[%c1_63, %c3_64] : memref<4x12xf32, #tpu.memory_space<smem>>
    %83 = vector.broadcast %82 : f32 to vector<4x64xf32>
    %84 = arith.mulf %83, %3 : vector<4x64xf32>
    %85 = arith.addf %81, %84 : vector<4x64xf32>
    %c2_65 = arith.constant 2 : index
    %c3_66 = arith.constant 3 : index
    %86 = memref.load %arg3[%c2_65, %c3_66] : memref<4x12xf32, #tpu.memory_space<smem>>
    %87 = vector.broadcast %86 : f32 to vector<4x64xf32>
    %88 = arith.mulf %87, %5 : vector<4x64xf32>
    %89 = arith.addf %85, %88 : vector<4x64xf32>
    %c3_67 = arith.constant 3 : index
    %c3_68 = arith.constant 3 : index
    %90 = memref.load %arg3[%c3_67, %c3_68] : memref<4x12xf32, #tpu.memory_space<smem>>
    %91 = vector.broadcast %90 : f32 to vector<4x64xf32>
    %92 = arith.mulf %91, %7 : vector<4x64xf32>
    %93 = arith.addf %89, %92 : vector<4x64xf32>
    %c3_69 = arith.constant 3 : index
    %94 = memref.load %arg4[%c3_69] : memref<12xf32, #tpu.memory_space<smem>>
    %95 = vector.broadcast %94 : f32 to vector<4x64xf32>
    %96 = arith.addf %93, %95 : vector<4x64xf32>
    %cst_70 = arith.constant 0.000000e+00 : f32
    %97 = vector.broadcast %cst_70 : f32 to vector<4x64xf32>
    %98 = arith.maximumf %96, %97 : vector<4x64xf32>
    %c12 = arith.constant 12 : index
    %c0_71 = arith.constant 0 : index
    %99 = vector.load %arg12[%c12, %c0_71] : memref<16x64xf32, #tpu.memory_space<vmem>>, vector<4x64xf32>
    tpu.vector_store %arg12[%c12, %c0_71], %98 {strides = array<i32>} : memref<16x64xf32, #tpu.memory_space<vmem>>, vector<4x64xf32>,
    %c0_72 = arith.constant 0 : index
    %c4_73 = arith.constant 4 : index
    %100 = memref.load %arg3[%c0_72, %c4_73] : memref<4x12xf32, #tpu.memory_space<smem>>
    %101 = vector.broadcast %100 : f32 to vector<64x4xf32>
    %102 = arith.mulf %101, %9 : vector<64x4xf32>
    %c1_74 = arith.constant 1 : index
    %c4_75 = arith.constant 4 : index
    %103 = memref.load %arg3[%c1_74, %c4_75] : memref<4x12xf32, #tpu.memory_space<smem>>
    %104 = vector.broadcast %103 : f32 to vector<64x4xf32>
    %105 = arith.mulf %104, %11 : vector<64x4xf32>
    %106 = arith.addf %102, %105 : vector<64x4xf32>
    %c2_76 = arith.constant 2 : index
    %c4_77 = arith.constant 4 : index
    %107 = memref.load %arg3[%c2_76, %c4_77] : memref<4x12xf32, #tpu.memory_space<smem>>
    %108 = vector.broadcast %107 : f32 to vector<64x4xf32>
    %109 = arith.mulf %108, %13 : vector<64x4xf32>
    %110 = arith.addf %106, %109 : vector<64x4xf32>
    %c3_78 = arith.constant 3 : index
    %c4_79 = arith.constant 4 : index
    %111 = memref.load %arg3[%c3_78, %c4_79] : memref<4x12xf32, #tpu.memory_space<smem>>
    %112 = vector.broadcast %111 : f32 to vector<64x4xf32>
    %113 = arith.mulf %112, %15 : vector<64x4xf32>
    %114 = arith.addf %110, %113 : vector<64x4xf32>
    %c4_80 = arith.constant 4 : index
    %115 = memref.load %arg4[%c4_80] : memref<12xf32, #tpu.memory_space<smem>>
    %116 = vector.broadcast %115 : f32 to vector<64x4xf32>
    %117 = arith.addf %114, %116 : vector<64x4xf32>
    %cst_81 = arith.constant 0.000000e+00 : f32
    %118 = vector.broadcast %cst_81 : f32 to vector<64x4xf32>
    %119 = arith.maximumf %117, %118 : vector<64x4xf32>
    %c0_82 = arith.constant 0 : index
    %c0_83 = arith.constant 0 : index
    %120 = vector.load %arg13[%c0_82, %c0_83] : memref<64x16xf32, #tpu.memory_space<vmem>>, vector<64x4xf32>
    tpu.vector_store %arg13[%c0_82, %c0_83], %119 {strides = array<i32>} : memref<64x16xf32, #tpu.memory_space<vmem>>, vector<64x4xf32>,
    %c0_84 = arith.constant 0 : index
    %c5 = arith.constant 5 : index
    %121 = memref.load %arg3[%c0_84, %c5] : memref<4x12xf32, #tpu.memory_space<smem>>
    %122 = vector.broadcast %121 : f32 to vector<64x4xf32>
    %123 = arith.mulf %122, %9 : vector<64x4xf32>
    %c1_85 = arith.constant 1 : index
    %c5_86 = arith.constant 5 : index
    %124 = memref.load %arg3[%c1_85, %c5_86] : memref<4x12xf32, #tpu.memory_space<smem>>
    %125 = vector.broadcast %124 : f32 to vector<64x4xf32>
    %126 = arith.mulf %125, %11 : vector<64x4xf32>
    %127 = arith.addf %123, %126 : vector<64x4xf32>
    %c2_87 = arith.constant 2 : index
    %c5_88 = arith.constant 5 : index
    %128 = memref.load %arg3[%c2_87, %c5_88] : memref<4x12xf32, #tpu.memory_space<smem>>
    %129 = vector.broadcast %128 : f32 to vector<64x4xf32>
    %130 = arith.mulf %129, %13 : vector<64x4xf32>
    %131 = arith.addf %127, %130 : vector<64x4xf32>
    %c3_89 = arith.constant 3 : index
    %c5_90 = arith.constant 5 : index
    %132 = memref.load %arg3[%c3_89, %c5_90] : memref<4x12xf32, #tpu.memory_space<smem>>
    %133 = vector.broadcast %132 : f32 to vector<64x4xf32>
    %134 = arith.mulf %133, %15 : vector<64x4xf32>
    %135 = arith.addf %131, %134 : vector<64x4xf32>
    %c5_91 = arith.constant 5 : index
    %136 = memref.load %arg4[%c5_91] : memref<12xf32, #tpu.memory_space<smem>>
    %137 = vector.broadcast %136 : f32 to vector<64x4xf32>
    %138 = arith.addf %135, %137 : vector<64x4xf32>
    %cst_92 = arith.constant 0.000000e+00 : f32
    %139 = vector.broadcast %cst_92 : f32 to vector<64x4xf32>
    %140 = arith.maximumf %138, %139 : vector<64x4xf32>
    %c0_93 = arith.constant 0 : index
    %c4_94 = arith.constant 4 : index
    %141 = vector.load %arg13[%c0_93, %c4_94] : memref<64x16xf32, #tpu.memory_space<vmem>>, vector<64x4xf32>
    tpu.vector_store %arg13[%c0_93, %c4_94], %140 {strides = array<i32>} : memref<64x16xf32, #tpu.memory_space<vmem>>, vector<64x4xf32>,
    %c0_95 = arith.constant 0 : index
    %c6 = arith.constant 6 : index
    %142 = memref.load %arg3[%c0_95, %c6] : memref<4x12xf32, #tpu.memory_space<smem>>
    %143 = vector.broadcast %142 : f32 to vector<64x4xf32>
    %144 = arith.mulf %143, %9 : vector<64x4xf32>
    %c1_96 = arith.constant 1 : index
    %c6_97 = arith.constant 6 : index
    %145 = memref.load %arg3[%c1_96, %c6_97] : memref<4x12xf32, #tpu.memory_space<smem>>
    %146 = vector.broadcast %145 : f32 to vector<64x4xf32>
    %147 = arith.mulf %146, %11 : vector<64x4xf32>
    %148 = arith.addf %144, %147 : vector<64x4xf32>
    %c2_98 = arith.constant 2 : index
    %c6_99 = arith.constant 6 : index
    %149 = memref.load %arg3[%c2_98, %c6_99] : memref<4x12xf32, #tpu.memory_space<smem>>
    %150 = vector.broadcast %149 : f32 to vector<64x4xf32>
    %151 = arith.mulf %150, %13 : vector<64x4xf32>
    %152 = arith.addf %148, %151 : vector<64x4xf32>
    %c3_100 = arith.constant 3 : index
    %c6_101 = arith.constant 6 : index
    %153 = memref.load %arg3[%c3_100, %c6_101] : memref<4x12xf32, #tpu.memory_space<smem>>
    %154 = vector.broadcast %153 : f32 to vector<64x4xf32>
    %155 = arith.mulf %154, %15 : vector<64x4xf32>
    %156 = arith.addf %152, %155 : vector<64x4xf32>
    %c6_102 = arith.constant 6 : index
    %157 = memref.load %arg4[%c6_102] : memref<12xf32, #tpu.memory_space<smem>>
    %158 = vector.broadcast %157 : f32 to vector<64x4xf32>
    %159 = arith.addf %156, %158 : vector<64x4xf32>
    %cst_103 = arith.constant 0.000000e+00 : f32
    %160 = vector.broadcast %cst_103 : f32 to vector<64x4xf32>
    %161 = arith.maximumf %159, %160 : vector<64x4xf32>
    %c0_104 = arith.constant 0 : index
    %c8_105 = arith.constant 8 : index
    %162 = vector.load %arg13[%c0_104, %c8_105] : memref<64x16xf32, #tpu.memory_space<vmem>>, vector<64x4xf32>
    tpu.vector_store %arg13[%c0_104, %c8_105], %161 {strides = array<i32>} : memref<64x16xf32, #tpu.memory_space<vmem>>, vector<64x4xf32>,
    %c0_106 = arith.constant 0 : index
    %c7 = arith.constant 7 : index
    %163 = memref.load %arg3[%c0_106, %c7] : memref<4x12xf32, #tpu.memory_space<smem>>
    %164 = vector.broadcast %163 : f32 to vector<64x4xf32>
    %165 = arith.mulf %164, %9 : vector<64x4xf32>
    %c1_107 = arith.constant 1 : index
    %c7_108 = arith.constant 7 : index
    %166 = memref.load %arg3[%c1_107, %c7_108] : memref<4x12xf32, #tpu.memory_space<smem>>
    %167 = vector.broadcast %166 : f32 to vector<64x4xf32>
    %168 = arith.mulf %167, %11 : vector<64x4xf32>
    %169 = arith.addf %165, %168 : vector<64x4xf32>
    %c2_109 = arith.constant 2 : index
    %c7_110 = arith.constant 7 : index
    %170 = memref.load %arg3[%c2_109, %c7_110] : memref<4x12xf32, #tpu.memory_space<smem>>
    %171 = vector.broadcast %170 : f32 to vector<64x4xf32>
    %172 = arith.mulf %171, %13 : vector<64x4xf32>
    %173 = arith.addf %169, %172 : vector<64x4xf32>
    %c3_111 = arith.constant 3 : index
    %c7_112 = arith.constant 7 : index
    %174 = memref.load %arg3[%c3_111, %c7_112] : memref<4x12xf32, #tpu.memory_space<smem>>
    %175 = vector.broadcast %174 : f32 to vector<64x4xf32>
    %176 = arith.mulf %175, %15 : vector<64x4xf32>
    %177 = arith.addf %173, %176 : vector<64x4xf32>
    %c7_113 = arith.constant 7 : index
    %178 = memref.load %arg4[%c7_113] : memref<12xf32, #tpu.memory_space<smem>>
    %179 = vector.broadcast %178 : f32 to vector<64x4xf32>
    %180 = arith.addf %177, %179 : vector<64x4xf32>
    %cst_114 = arith.constant 0.000000e+00 : f32
    %181 = vector.broadcast %cst_114 : f32 to vector<64x4xf32>
    %182 = arith.maximumf %180, %181 : vector<64x4xf32>
    %c0_115 = arith.constant 0 : index
    %c12_116 = arith.constant 12 : index
    %183 = vector.load %arg13[%c0_115, %c12_116] : memref<64x16xf32, #tpu.memory_space<vmem>>, vector<64x4xf32>
    tpu.vector_store %arg13[%c0_115, %c12_116], %182 {strides = array<i32>} : memref<64x16xf32, #tpu.memory_space<vmem>>, vector<64x4xf32>,
    %c0_117 = arith.constant 0 : index
    %c8_118 = arith.constant 8 : index
    %184 = memref.load %arg3[%c0_117, %c8_118] : memref<4x12xf32, #tpu.memory_space<smem>>
    %185 = vector.broadcast %184 : f32 to vector<64x4xf32>
    %186 = arith.mulf %185, %9 : vector<64x4xf32>
    %c1_119 = arith.constant 1 : index
    %c8_120 = arith.constant 8 : index
    %187 = memref.load %arg3[%c1_119, %c8_120] : memref<4x12xf32, #tpu.memory_space<smem>>
    %188 = vector.broadcast %187 : f32 to vector<64x4xf32>
    %189 = arith.mulf %188, %11 : vector<64x4xf32>
    %190 = arith.addf %186, %189 : vector<64x4xf32>
    %c2_121 = arith.constant 2 : index
    %c8_122 = arith.constant 8 : index
    %191 = memref.load %arg3[%c2_121, %c8_122] : memref<4x12xf32, #tpu.memory_space<smem>>
    %192 = vector.broadcast %191 : f32 to vector<64x4xf32>
    %193 = arith.mulf %192, %13 : vector<64x4xf32>
    %194 = arith.addf %190, %193 : vector<64x4xf32>
    %c3_123 = arith.constant 3 : index
    %c8_124 = arith.constant 8 : index
    %195 = memref.load %arg3[%c3_123, %c8_124] : memref<4x12xf32, #tpu.memory_space<smem>>
    %196 = vector.broadcast %195 : f32 to vector<64x4xf32>
    %197 = arith.mulf %196, %15 : vector<64x4xf32>
    %198 = arith.addf %194, %197 : vector<64x4xf32>
    %c8_125 = arith.constant 8 : index
    %199 = memref.load %arg4[%c8_125] : memref<12xf32, #tpu.memory_space<smem>>
    %200 = vector.broadcast %199 : f32 to vector<64x4xf32>
    %201 = arith.addf %198, %200 : vector<64x4xf32>
    %cst_126 = arith.constant 0.000000e+00 : f32
    %202 = vector.broadcast %cst_126 : f32 to vector<64x4xf32>
    %203 = arith.maximumf %201, %202 : vector<64x4xf32>
    %c0_127 = arith.constant 0 : index
    %c0_128 = arith.constant 0 : index
    %204 = vector.load %arg14[%c0_127, %c0_128] : memref<64x16xf32, #tpu.memory_space<vmem>>, vector<64x4xf32>
    tpu.vector_store %arg14[%c0_127, %c0_128], %203 {strides = array<i32>} : memref<64x16xf32, #tpu.memory_space<vmem>>, vector<64x4xf32>,
    %c0_129 = arith.constant 0 : index
    %c9 = arith.constant 9 : index
    %205 = memref.load %arg3[%c0_129, %c9] : memref<4x12xf32, #tpu.memory_space<smem>>
    %206 = vector.broadcast %205 : f32 to vector<64x4xf32>
    %207 = arith.mulf %206, %9 : vector<64x4xf32>
    %c1_130 = arith.constant 1 : index
    %c9_131 = arith.constant 9 : index
    %208 = memref.load %arg3[%c1_130, %c9_131] : memref<4x12xf32, #tpu.memory_space<smem>>
    %209 = vector.broadcast %208 : f32 to vector<64x4xf32>
    %210 = arith.mulf %209, %11 : vector<64x4xf32>
    %211 = arith.addf %207, %210 : vector<64x4xf32>
    %c2_132 = arith.constant 2 : index
    %c9_133 = arith.constant 9 : index
    %212 = memref.load %arg3[%c2_132, %c9_133] : memref<4x12xf32, #tpu.memory_space<smem>>
    %213 = vector.broadcast %212 : f32 to vector<64x4xf32>
    %214 = arith.mulf %213, %13 : vector<64x4xf32>
    %215 = arith.addf %211, %214 : vector<64x4xf32>
    %c3_134 = arith.constant 3 : index
    %c9_135 = arith.constant 9 : index
    %216 = memref.load %arg3[%c3_134, %c9_135] : memref<4x12xf32, #tpu.memory_space<smem>>
    %217 = vector.broadcast %216 : f32 to vector<64x4xf32>
    %218 = arith.mulf %217, %15 : vector<64x4xf32>
    %219 = arith.addf %215, %218 : vector<64x4xf32>
    %c9_136 = arith.constant 9 : index
    %220 = memref.load %arg4[%c9_136] : memref<12xf32, #tpu.memory_space<smem>>
    %221 = vector.broadcast %220 : f32 to vector<64x4xf32>
    %222 = arith.addf %219, %221 : vector<64x4xf32>
    %cst_137 = arith.constant 0.000000e+00 : f32
    %223 = vector.broadcast %cst_137 : f32 to vector<64x4xf32>
    %224 = arith.maximumf %222, %223 : vector<64x4xf32>
    %c0_138 = arith.constant 0 : index
    %c4_139 = arith.constant 4 : index
    %225 = vector.load %arg14[%c0_138, %c4_139] : memref<64x16xf32, #tpu.memory_space<vmem>>, vector<64x4xf32>
    tpu.vector_store %arg14[%c0_138, %c4_139], %224 {strides = array<i32>} : memref<64x16xf32, #tpu.memory_space<vmem>>, vector<64x4xf32>,
    %c0_140 = arith.constant 0 : index
    %c10 = arith.constant 10 : index
    %226 = memref.load %arg3[%c0_140, %c10] : memref<4x12xf32, #tpu.memory_space<smem>>
    %227 = vector.broadcast %226 : f32 to vector<64x4xf32>
    %228 = arith.mulf %227, %9 : vector<64x4xf32>
    %c1_141 = arith.constant 1 : index
    %c10_142 = arith.constant 10 : index
    %229 = memref.load %arg3[%c1_141, %c10_142] : memref<4x12xf32, #tpu.memory_space<smem>>
    %230 = vector.broadcast %229 : f32 to vector<64x4xf32>
    %231 = arith.mulf %230, %11 : vector<64x4xf32>
    %232 = arith.addf %228, %231 : vector<64x4xf32>
    %c2_143 = arith.constant 2 : index
    %c10_144 = arith.constant 10 : index
    %233 = memref.load %arg3[%c2_143, %c10_144] : memref<4x12xf32, #tpu.memory_space<smem>>
    %234 = vector.broadcast %233 : f32 to vector<64x4xf32>
    %235 = arith.mulf %234, %13 : vector<64x4xf32>
    %236 = arith.addf %232, %235 : vector<64x4xf32>
    %c3_145 = arith.constant 3 : index
    %c10_146 = arith.constant 10 : index
    %237 = memref.load %arg3[%c3_145, %c10_146] : memref<4x12xf32, #tpu.memory_space<smem>>
    %238 = vector.broadcast %237 : f32 to vector<64x4xf32>
    %239 = arith.mulf %238, %15 : vector<64x4xf32>
    %240 = arith.addf %236, %239 : vector<64x4xf32>
    %c10_147 = arith.constant 10 : index
    %241 = memref.load %arg4[%c10_147] : memref<12xf32, #tpu.memory_space<smem>>
    %242 = vector.broadcast %241 : f32 to vector<64x4xf32>
    %243 = arith.addf %240, %242 : vector<64x4xf32>
    %cst_148 = arith.constant 0.000000e+00 : f32
    %244 = vector.broadcast %cst_148 : f32 to vector<64x4xf32>
    %245 = arith.maximumf %243, %244 : vector<64x4xf32>
    %c0_149 = arith.constant 0 : index
    %c8_150 = arith.constant 8 : index
    %246 = vector.load %arg14[%c0_149, %c8_150] : memref<64x16xf32, #tpu.memory_space<vmem>>, vector<64x4xf32>
    tpu.vector_store %arg14[%c0_149, %c8_150], %245 {strides = array<i32>} : memref<64x16xf32, #tpu.memory_space<vmem>>, vector<64x4xf32>,
    %c0_151 = arith.constant 0 : index
    %c11 = arith.constant 11 : index
    %247 = memref.load %arg3[%c0_151, %c11] : memref<4x12xf32, #tpu.memory_space<smem>>
    %248 = vector.broadcast %247 : f32 to vector<64x4xf32>
    %249 = arith.mulf %248, %9 : vector<64x4xf32>
    %c1_152 = arith.constant 1 : index
    %c11_153 = arith.constant 11 : index
    %250 = memref.load %arg3[%c1_152, %c11_153] : memref<4x12xf32, #tpu.memory_space<smem>>
    %251 = vector.broadcast %250 : f32 to vector<64x4xf32>
    %252 = arith.mulf %251, %11 : vector<64x4xf32>
    %253 = arith.addf %249, %252 : vector<64x4xf32>
    %c2_154 = arith.constant 2 : index
    %c11_155 = arith.constant 11 : index
    %254 = memref.load %arg3[%c2_154, %c11_155] : memref<4x12xf32, #tpu.memory_space<smem>>
    %255 = vector.broadcast %254 : f32 to vector<64x4xf32>
    %256 = arith.mulf %255, %13 : vector<64x4xf32>
    %257 = arith.addf %253, %256 : vector<64x4xf32>
    %c3_156 = arith.constant 3 : index
    %c11_157 = arith.constant 11 : index
    %258 = memref.load %arg3[%c3_156, %c11_157] : memref<4x12xf32, #tpu.memory_space<smem>>
    %259 = vector.broadcast %258 : f32 to vector<64x4xf32>
    %260 = arith.mulf %259, %15 : vector<64x4xf32>
    %261 = arith.addf %257, %260 : vector<64x4xf32>
    %c11_158 = arith.constant 11 : index
    %262 = memref.load %arg4[%c11_158] : memref<12xf32, #tpu.memory_space<smem>>
    %263 = vector.broadcast %262 : f32 to vector<64x4xf32>
    %264 = arith.addf %261, %263 : vector<64x4xf32>
    %cst_159 = arith.constant 0.000000e+00 : f32
    %265 = vector.broadcast %cst_159 : f32 to vector<64x4xf32>
    %266 = arith.maximumf %264, %265 : vector<64x4xf32>
    %c0_160 = arith.constant 0 : index
    %c12_161 = arith.constant 12 : index
    %267 = vector.load %arg14[%c0_160, %c12_161] : memref<64x16xf32, #tpu.memory_space<vmem>>, vector<64x4xf32>
    tpu.vector_store %arg14[%c0_160, %c12_161], %266 {strides = array<i32>} : memref<64x16xf32, #tpu.memory_space<vmem>>, vector<64x4xf32>,
    %c0_162 = arith.constant 0 : index
    %c0_163 = arith.constant 0 : index
    %268 = vector.load %arg12[%c0_162, %c0_163] : memref<16x64xf32, #tpu.memory_space<vmem>>, vector<16x64xf32>
    %c0_164 = arith.constant 0 : index
    %c0_165 = arith.constant 0 : index
    %269 = vector.load %arg13[%c0_164, %c0_165] : memref<64x16xf32, #tpu.memory_space<vmem>>, vector<64x16xf32>
    %c0_166 = arith.constant 0 : index
    %c0_167 = arith.constant 0 : index
    %270 = vector.load %arg14[%c0_166, %c0_167] : memref<64x16xf32, #tpu.memory_space<vmem>>, vector<64x16xf32>
    %c0_168 = arith.constant 0 : index
    %c0_169 = arith.constant 0 : index
    %c0_170 = arith.constant 0 : index
    %271 = vector.load %arg8[%c0_168, %c0_169, %c0_170] : memref<2x16x64xf32, #tpu.memory_space<vmem>>, vector<1x16x64xf32>
    %272 = vector.shape_cast %271 : vector<1x16x64xf32> to vector<16x64xf32>
    %273 = vector.shape_cast %268 : vector<16x64xf32> to vector<1x16x64xf32>
    tpu.vector_store %arg8[%c0_168, %c0_169, %c0_170], %273 {strides = array<i32>} : memref<2x16x64xf32, #tpu.memory_space<vmem>>, vector<1x16x64xf32>,
    %c0_171 = arith.constant 0 : index
    %c0_172 = arith.constant 0 : index
    %c0_173 = arith.constant 0 : index
    %274 = vector.load %arg9[%c0_171, %c0_172, %c0_173] : memref<2x64x16xf32, #tpu.memory_space<vmem>>, vector<1x64x16xf32>
    %275 = vector.shape_cast %274 : vector<1x64x16xf32> to vector<64x16xf32>
    %276 = vector.shape_cast %269 : vector<64x16xf32> to vector<1x64x16xf32>
    tpu.vector_store %arg9[%c0_171, %c0_172, %c0_173], %276 {strides = array<i32>} : memref<2x64x16xf32, #tpu.memory_space<vmem>>, vector<1x64x16xf32>,
    %c0_174 = arith.constant 0 : index
    %c0_175 = arith.constant 0 : index
    %c0_176 = arith.constant 0 : index
    %277 = vector.load %arg10[%c0_174, %c0_175, %c0_176] : memref<2x64x16xf32, #tpu.memory_space<vmem>>, vector<1x64x16xf32>
    %278 = vector.shape_cast %277 : vector<1x64x16xf32> to vector<64x16xf32>
    %279 = vector.shape_cast %270 : vector<64x16xf32> to vector<1x64x16xf32>
    tpu.vector_store %arg10[%c0_174, %c0_175, %c0_176], %279 {strides = array<i32>} : memref<2x64x16xf32, #tpu.memory_space<vmem>>, vector<1x64x16xf32>,
    %cst_177 = arith.constant dense<0.000000e+00> : vector<16x16xf32>
    %280 = tpu.matmul %268, %269, %cst_177 {dimension_numbers = #tpu.dot_dimension_numbers<[1], [0], [0], [1], [0, 0, 1, 1], [], []>} : vector<16x64xf32>, vector<64x16xf32>, vector<16x16xf32> -> vector<16x16xf32>
    %cst_178 = arith.constant dense<0xFF800000> : vector<16xf32>
    %281 = vector.multi_reduction <maximumf>, %280, %cst_178 [0] : vector<16x16xf32> to vector<16xf32>
    %282 = vector.shape_cast %281 : vector<16xf32> to vector<1x16xf32>
    %283 = vector.broadcast %282 : vector<1x16xf32> to vector<16x16xf32>
    %284 = arith.subf %280, %283 : vector<16x16xf32>
    %285 = math.exp %284 : vector<16x16xf32>
    %cst_179 = arith.constant dense<0.000000e+00> : vector<16xf32>
    %286 = vector.multi_reduction <add>, %285, %cst_179 [0] : vector<16x16xf32> to vector<16xf32>
    %287 = vector.shape_cast %286 : vector<16xf32> to vector<1x16xf32>
    %288 = vector.broadcast %287 : vector<1x16xf32> to vector<16x16xf32>
    %289 = arith.divf %285, %288 : vector<16x16xf32>
    %c0_180 = arith.constant 0 : index
    %c0_181 = arith.constant 0 : index
    %c0_182 = arith.constant 0 : index
    %290 = vector.load %arg11[%c0_180, %c0_181, %c0_182] : memref<2x16x16xf32, #tpu.memory_space<vmem>>, vector<1x16x16xf32>
    %291 = vector.shape_cast %290 : vector<1x16x16xf32> to vector<16x16xf32>
    %292 = vector.shape_cast %289 : vector<16x16xf32> to vector<1x16x16xf32>
    tpu.vector_store %arg11[%c0_180, %c0_181, %c0_182], %292 {strides = array<i32>} : memref<2x16x16xf32, #tpu.memory_space<vmem>>, vector<1x16x16xf32>,
    %cst_183 = arith.constant dense<0.000000e+00> : vector<64x16xf32>
    %293 = tpu.matmul %270, %289, %cst_183 {dimension_numbers = #tpu.dot_dimension_numbers<[1], [0], [0], [1], [0, 0, 1, 1], [], []>} : vector<64x16xf32>, vector<16x16xf32>, vector<64x16xf32> -> vector<64x16xf32>
    %c0_184 = arith.constant 0 : index
    %c0_185 = arith.constant 0 : index
    %294 = memref.load %arg5[%c0_184, %c0_185] : memref<4x4xf32, #tpu.memory_space<smem>>
    %295 = vector.extract_strided_slice %293 {offsets = [0, 0], sizes = [16, 16], strides = [1, 1]} : vector<64x16xf32> to vector<16x16xf32>
    %296 = vector.broadcast %294 : f32 to vector<16x16xf32>
    %297 = arith.mulf %296, %295 : vector<16x16xf32>
    %c1_186 = arith.constant 1 : index
    %c0_187 = arith.constant 0 : index
    %298 = memref.load %arg5[%c1_186, %c0_187] : memref<4x4xf32, #tpu.memory_space<smem>>
    %299 = vector.extract_strided_slice %293 {offsets = [16, 0], sizes = [16, 16], strides = [1, 1]} : vector<64x16xf32> to vector<16x16xf32>
    %300 = vector.broadcast %298 : f32 to vector<16x16xf32>
    %301 = arith.mulf %300, %299 : vector<16x16xf32>
    %302 = arith.addf %297, %301 : vector<16x16xf32>
    %c2_188 = arith.constant 2 : index
    %c0_189 = arith.constant 0 : index
    %303 = memref.load %arg5[%c2_188, %c0_189] : memref<4x4xf32, #tpu.memory_space<smem>>
    %304 = vector.extract_strided_slice %293 {offsets = [32, 0], sizes = [16, 16], strides = [1, 1]} : vector<64x16xf32> to vector<16x16xf32>
    %305 = vector.broadcast %303 : f32 to vector<16x16xf32>
    %306 = arith.mulf %305, %304 : vector<16x16xf32>
    %307 = arith.addf %302, %306 : vector<16x16xf32>
    %c3_190 = arith.constant 3 : index
    %c0_191 = arith.constant 0 : index
    %308 = memref.load %arg5[%c3_190, %c0_191] : memref<4x4xf32, #tpu.memory_space<smem>>
    %309 = vector.extract_strided_slice %293 {offsets = [48, 0], sizes = [16, 16], strides = [1, 1]} : vector<64x16xf32> to vector<16x16xf32>
    %310 = vector.broadcast %308 : f32 to vector<16x16xf32>
    %311 = arith.mulf %310, %309 : vector<16x16xf32>
    %312 = arith.addf %307, %311 : vector<16x16xf32>
    %c0_192 = arith.constant 0 : index
    %313 = memref.load %arg6[%c0_192] : memref<4xf32, #tpu.memory_space<smem>>
    %314 = vector.broadcast %313 : f32 to vector<16x16xf32>
    %315 = arith.addf %312, %314 : vector<16x16xf32>
    %c0_193 = arith.constant 0 : index
    %c0_194 = arith.constant 0 : index
    %c0_195 = arith.constant 0 : index
    %c0_196 = arith.constant 0 : index
    %316 = vector.load %arg7[%c0_193, %c0_194, %c0_195, %c0_196] : memref<2x4x16x16xf32, #tpu.memory_space<vmem>>, vector<1x1x16x16xf32>
    %317 = vector.shape_cast %316 : vector<1x1x16x16xf32> to vector<16x16xf32>
    %318 = vector.shape_cast %315 : vector<16x16xf32> to vector<1x1x16x16xf32>
    tpu.vector_store %arg7[%c0_193, %c0_194, %c0_195, %c0_196], %318 {strides = array<i32>} : memref<2x4x16x16xf32, #tpu.memory_space<vmem>>, vector<1x1x16x16xf32>,
    %c0_197 = arith.constant 0 : index
    %c1_198 = arith.constant 1 : index
    %319 = memref.load %arg5[%c0_197, %c1_198] : memref<4x4xf32, #tpu.memory_space<smem>>
    %320 = vector.extract_strided_slice %293 {offsets = [0, 0], sizes = [16, 16], strides = [1, 1]} : vector<64x16xf32> to vector<16x16xf32>
    %321 = vector.broadcast %319 : f32 to vector<16x16xf32>
    %322 = arith.mulf %321, %320 : vector<16x16xf32>
    %c1_199 = arith.constant 1 : index
    %c1_200 = arith.constant 1 : index
    %323 = memref.load %arg5[%c1_199, %c1_200] : memref<4x4xf32, #tpu.memory_space<smem>>
    %324 = vector.extract_strided_slice %293 {offsets = [16, 0], sizes = [16, 16], strides = [1, 1]} : vector<64x16xf32> to vector<16x16xf32>
    %325 = vector.broadcast %323 : f32 to vector<16x16xf32>
    %326 = arith.mulf %325, %324 : vector<16x16xf32>
    %327 = arith.addf %322, %326 : vector<16x16xf32>
    %c2_201 = arith.constant 2 : index
    %c1_202 = arith.constant 1 : index
    %328 = memref.load %arg5[%c2_201, %c1_202] : memref<4x4xf32, #tpu.memory_space<smem>>
    %329 = vector.extract_strided_slice %293 {offsets = [32, 0], sizes = [16, 16], strides = [1, 1]} : vector<64x16xf32> to vector<16x16xf32>
    %330 = vector.broadcast %328 : f32 to vector<16x16xf32>
    %331 = arith.mulf %330, %329 : vector<16x16xf32>
    %332 = arith.addf %327, %331 : vector<16x16xf32>
    %c3_203 = arith.constant 3 : index
    %c1_204 = arith.constant 1 : index
    %333 = memref.load %arg5[%c3_203, %c1_204] : memref<4x4xf32, #tpu.memory_space<smem>>
    %334 = vector.extract_strided_slice %293 {offsets = [48, 0], sizes = [16, 16], strides = [1, 1]} : vector<64x16xf32> to vector<16x16xf32>
    %335 = vector.broadcast %333 : f32 to vector<16x16xf32>
    %336 = arith.mulf %335, %334 : vector<16x16xf32>
    %337 = arith.addf %332, %336 : vector<16x16xf32>
    %c1_205 = arith.constant 1 : index
    %338 = memref.load %arg6[%c1_205] : memref<4xf32, #tpu.memory_space<smem>>
    %339 = vector.broadcast %338 : f32 to vector<16x16xf32>
    %340 = arith.addf %337, %339 : vector<16x16xf32>
    %c0_206 = arith.constant 0 : index
    %c1_207 = arith.constant 1 : index
    %c0_208 = arith.constant 0 : index
    %c0_209 = arith.constant 0 : index
    %341 = vector.load %arg7[%c0_206, %c1_207, %c0_208, %c0_209] : memref<2x4x16x16xf32, #tpu.memory_space<vmem>>, vector<1x1x16x16xf32>
    %342 = vector.shape_cast %341 : vector<1x1x16x16xf32> to vector<16x16xf32>
    %343 = vector.shape_cast %340 : vector<16x16xf32> to vector<1x1x16x16xf32>
    tpu.vector_store %arg7[%c0_206, %c1_207, %c0_208, %c0_209], %343 {strides = array<i32>} : memref<2x4x16x16xf32, #tpu.memory_space<vmem>>, vector<1x1x16x16xf32>,
    %c0_210 = arith.constant 0 : index
    %c2_211 = arith.constant 2 : index
    %344 = memref.load %arg5[%c0_210, %c2_211] : memref<4x4xf32, #tpu.memory_space<smem>>
    %345 = vector.extract_strided_slice %293 {offsets = [0, 0], sizes = [16, 16], strides = [1, 1]} : vector<64x16xf32> to vector<16x16xf32>
    %346 = vector.broadcast %344 : f32 to vector<16x16xf32>
    %347 = arith.mulf %346, %345 : vector<16x16xf32>
    %c1_212 = arith.constant 1 : index
    %c2_213 = arith.constant 2 : index
    %348 = memref.load %arg5[%c1_212, %c2_213] : memref<4x4xf32, #tpu.memory_space<smem>>
    %349 = vector.extract_strided_slice %293 {offsets = [16, 0], sizes = [16, 16], strides = [1, 1]} : vector<64x16xf32> to vector<16x16xf32>
    %350 = vector.broadcast %348 : f32 to vector<16x16xf32>
    %351 = arith.mulf %350, %349 : vector<16x16xf32>
    %352 = arith.addf %347, %351 : vector<16x16xf32>
    %c2_214 = arith.constant 2 : index
    %c2_215 = arith.constant 2 : index
    %353 = memref.load %arg5[%c2_214, %c2_215] : memref<4x4xf32, #tpu.memory_space<smem>>
    %354 = vector.extract_strided_slice %293 {offsets = [32, 0], sizes = [16, 16], strides = [1, 1]} : vector<64x16xf32> to vector<16x16xf32>
    %355 = vector.broadcast %353 : f32 to vector<16x16xf32>
    %356 = arith.mulf %355, %354 : vector<16x16xf32>
    %357 = arith.addf %352, %356 : vector<16x16xf32>
    %c3_216 = arith.constant 3 : index
    %c2_217 = arith.constant 2 : index
    %358 = memref.load %arg5[%c3_216, %c2_217] : memref<4x4xf32, #tpu.memory_space<smem>>
    %359 = vector.extract_strided_slice %293 {offsets = [48, 0], sizes = [16, 16], strides = [1, 1]} : vector<64x16xf32> to vector<16x16xf32>
    %360 = vector.broadcast %358 : f32 to vector<16x16xf32>
    %361 = arith.mulf %360, %359 : vector<16x16xf32>
    %362 = arith.addf %357, %361 : vector<16x16xf32>
    %c2_218 = arith.constant 2 : index
    %363 = memref.load %arg6[%c2_218] : memref<4xf32, #tpu.memory_space<smem>>
    %364 = vector.broadcast %363 : f32 to vector<16x16xf32>
    %365 = arith.addf %362, %364 : vector<16x16xf32>
    %c0_219 = arith.constant 0 : index
    %c2_220 = arith.constant 2 : index
    %c0_221 = arith.constant 0 : index
    %c0_222 = arith.constant 0 : index
    %366 = vector.load %arg7[%c0_219, %c2_220, %c0_221, %c0_222] : memref<2x4x16x16xf32, #tpu.memory_space<vmem>>, vector<1x1x16x16xf32>
    %367 = vector.shape_cast %366 : vector<1x1x16x16xf32> to vector<16x16xf32>
    %368 = vector.shape_cast %365 : vector<16x16xf32> to vector<1x1x16x16xf32>
    tpu.vector_store %arg7[%c0_219, %c2_220, %c0_221, %c0_222], %368 {strides = array<i32>} : memref<2x4x16x16xf32, #tpu.memory_space<vmem>>, vector<1x1x16x16xf32>,
    %c0_223 = arith.constant 0 : index
    %c3_224 = arith.constant 3 : index
    %369 = memref.load %arg5[%c0_223, %c3_224] : memref<4x4xf32, #tpu.memory_space<smem>>
    %370 = vector.extract_strided_slice %293 {offsets = [0, 0], sizes = [16, 16], strides = [1, 1]} : vector<64x16xf32> to vector<16x16xf32>
    %371 = vector.broadcast %369 : f32 to vector<16x16xf32>
    %372 = arith.mulf %371, %370 : vector<16x16xf32>
    %c1_225 = arith.constant 1 : index
    %c3_226 = arith.constant 3 : index
    %373 = memref.load %arg5[%c1_225, %c3_226] : memref<4x4xf32, #tpu.memory_space<smem>>
    %374 = vector.extract_strided_slice %293 {offsets = [16, 0], sizes = [16, 16], strides = [1, 1]} : vector<64x16xf32> to vector<16x16xf32>
    %375 = vector.broadcast %373 : f32 to vector<16x16xf32>
    %376 = arith.mulf %375, %374 : vector<16x16xf32>
    %377 = arith.addf %372, %376 : vector<16x16xf32>
    %c2_227 = arith.constant 2 : index
    %c3_228 = arith.constant 3 : index
    %378 = memref.load %arg5[%c2_227, %c3_228] : memref<4x4xf32, #tpu.memory_space<smem>>
    %379 = vector.extract_strided_slice %293 {offsets = [32, 0], sizes = [16, 16], strides = [1, 1]} : vector<64x16xf32> to vector<16x16xf32>
    %380 = vector.broadcast %378 : f32 to vector<16x16xf32>
    %381 = arith.mulf %380, %379 : vector<16x16xf32>
    %382 = arith.addf %377, %381 : vector<16x16xf32>
    %c3_229 = arith.constant 3 : index
    %c3_230 = arith.constant 3 : index
    %383 = memref.load %arg5[%c3_229, %c3_230] : memref<4x4xf32, #tpu.memory_space<smem>>
    %384 = vector.extract_strided_slice %293 {offsets = [48, 0], sizes = [16, 16], strides = [1, 1]} : vector<64x16xf32> to vector<16x16xf32>
    %385 = vector.broadcast %383 : f32 to vector<16x16xf32>
    %386 = arith.mulf %385, %384 : vector<16x16xf32>
    %387 = arith.addf %382, %386 : vector<16x16xf32>
    %c3_231 = arith.constant 3 : index
    %388 = memref.load %arg6[%c3_231] : memref<4xf32, #tpu.memory_space<smem>>
    %389 = vector.broadcast %388 : f32 to vector<16x16xf32>
    %390 = arith.addf %387, %389 : vector<16x16xf32>
    %c0_232 = arith.constant 0 : index
    %c3_233 = arith.constant 3 : index
    %c0_234 = arith.constant 0 : index
    %c0_235 = arith.constant 0 : index
    %391 = vector.load %arg7[%c0_232, %c3_233, %c0_234, %c0_235] : memref<2x4x16x16xf32, #tpu.memory_space<vmem>>, vector<1x1x16x16xf32>
    %392 = vector.shape_cast %391 : vector<1x1x16x16xf32> to vector<16x16xf32>
    %393 = vector.shape_cast %390 : vector<16x16xf32> to vector<1x1x16x16xf32>
    tpu.vector_store %arg7[%c0_232, %c3_233, %c0_234, %c0_235], %393 {strides = array<i32>} : memref<2x4x16x16xf32, #tpu.memory_space<vmem>>, vector<1x1x16x16xf32>,
    %c1_236 = arith.constant 1 : index
    %c0_237 = arith.constant 0 : index
    %c0_238 = arith.constant 0 : index
    %c0_239 = arith.constant 0 : index
    %394 = vector.load %arg1[%c1_236, %c0_237, %c0_238, %c0_239] : memref<2x4x4x64xf32, #tpu.memory_space<vmem>>, vector<1x1x4x64xf32>
    %395 = vector.shape_cast %394 : vector<1x1x4x64xf32> to vector<4x64xf32>
    %c1_240 = arith.constant 1 : index
    %c1_241 = arith.constant 1 : index
    %c0_242 = arith.constant 0 : index
    %c0_243 = arith.constant 0 : index
    %396 = vector.load %arg1[%c1_240, %c1_241, %c0_242, %c0_243] : memref<2x4x4x64xf32, #tpu.memory_space<vmem>>, vector<1x1x4x64xf32>
    %397 = vector.shape_cast %396 : vector<1x1x4x64xf32> to vector<4x64xf32>
    %c1_244 = arith.constant 1 : index
    %c2_245 = arith.constant 2 : index
    %c0_246 = arith.constant 0 : index
    %c0_247 = arith.constant 0 : index
    %398 = vector.load %arg1[%c1_244, %c2_245, %c0_246, %c0_247] : memref<2x4x4x64xf32, #tpu.memory_space<vmem>>, vector<1x1x4x64xf32>
    %399 = vector.shape_cast %398 : vector<1x1x4x64xf32> to vector<4x64xf32>
    %c1_248 = arith.constant 1 : index
    %c3_249 = arith.constant 3 : index
    %c0_250 = arith.constant 0 : index
    %c0_251 = arith.constant 0 : index
    %400 = vector.load %arg1[%c1_248, %c3_249, %c0_250, %c0_251] : memref<2x4x4x64xf32, #tpu.memory_space<vmem>>, vector<1x1x4x64xf32>
    %401 = vector.shape_cast %400 : vector<1x1x4x64xf32> to vector<4x64xf32>
    %c1_252 = arith.constant 1 : index
    %c0_253 = arith.constant 0 : index
    %c0_254 = arith.constant 0 : index
    %c0_255 = arith.constant 0 : index
    %402 = vector.load %arg2[%c1_252, %c0_253, %c0_254, %c0_255] : memref<2x4x64x4xf32, #tpu.memory_space<vmem>>, vector<1x1x64x4xf32>
    %403 = vector.shape_cast %402 : vector<1x1x64x4xf32> to vector<64x4xf32>
    %c1_256 = arith.constant 1 : index
    %c1_257 = arith.constant 1 : index
    %c0_258 = arith.constant 0 : index
    %c0_259 = arith.constant 0 : index
    %404 = vector.load %arg2[%c1_256, %c1_257, %c0_258, %c0_259] : memref<2x4x64x4xf32, #tpu.memory_space<vmem>>, vector<1x1x64x4xf32>
    %405 = vector.shape_cast %404 : vector<1x1x64x4xf32> to vector<64x4xf32>
    %c1_260 = arith.constant 1 : index
    %c2_261 = arith.constant 2 : index
    %c0_262 = arith.constant 0 : index
    %c0_263 = arith.constant 0 : index
    %406 = vector.load %arg2[%c1_260, %c2_261, %c0_262, %c0_263] : memref<2x4x64x4xf32, #tpu.memory_space<vmem>>, vector<1x1x64x4xf32>
    %407 = vector.shape_cast %406 : vector<1x1x64x4xf32> to vector<64x4xf32>
    %c1_264 = arith.constant 1 : index
    %c3_265 = arith.constant 3 : index
    %c0_266 = arith.constant 0 : index
    %c0_267 = arith.constant 0 : index
    %408 = vector.load %arg2[%c1_264, %c3_265, %c0_266, %c0_267] : memref<2x4x64x4xf32, #tpu.memory_space<vmem>>, vector<1x1x64x4xf32>
    %409 = vector.shape_cast %408 : vector<1x1x64x4xf32> to vector<64x4xf32>
    %c0_268 = arith.constant 0 : index
    %c0_269 = arith.constant 0 : index
    %410 = memref.load %arg3[%c0_268, %c0_269] : memref<4x12xf32, #tpu.memory_space<smem>>
    %411 = vector.broadcast %410 : f32 to vector<4x64xf32>
    %412 = arith.mulf %411, %395 : vector<4x64xf32>
    %c1_270 = arith.constant 1 : index
    %c0_271 = arith.constant 0 : index
    %413 = memref.load %arg3[%c1_270, %c0_271] : memref<4x12xf32, #tpu.memory_space<smem>>
    %414 = vector.broadcast %413 : f32 to vector<4x64xf32>
    %415 = arith.mulf %414, %397 : vector<4x64xf32>
    %416 = arith.addf %412, %415 : vector<4x64xf32>
    %c2_272 = arith.constant 2 : index
    %c0_273 = arith.constant 0 : index
    %417 = memref.load %arg3[%c2_272, %c0_273] : memref<4x12xf32, #tpu.memory_space<smem>>
    %418 = vector.broadcast %417 : f32 to vector<4x64xf32>
    %419 = arith.mulf %418, %399 : vector<4x64xf32>
    %420 = arith.addf %416, %419 : vector<4x64xf32>
    %c3_274 = arith.constant 3 : index
    %c0_275 = arith.constant 0 : index
    %421 = memref.load %arg3[%c3_274, %c0_275] : memref<4x12xf32, #tpu.memory_space<smem>>
    %422 = vector.broadcast %421 : f32 to vector<4x64xf32>
    %423 = arith.mulf %422, %401 : vector<4x64xf32>
    %424 = arith.addf %420, %423 : vector<4x64xf32>
    %c0_276 = arith.constant 0 : index
    %425 = memref.load %arg4[%c0_276] : memref<12xf32, #tpu.memory_space<smem>>
    %426 = vector.broadcast %425 : f32 to vector<4x64xf32>
    %427 = arith.addf %424, %426 : vector<4x64xf32>
    %cst_277 = arith.constant 0.000000e+00 : f32
    %428 = vector.broadcast %cst_277 : f32 to vector<4x64xf32>
    %429 = arith.maximumf %427, %428 : vector<4x64xf32>
    %c0_278 = arith.constant 0 : index
    %c0_279 = arith.constant 0 : index
    %430 = vector.load %arg12[%c0_278, %c0_279] : memref<16x64xf32, #tpu.memory_space<vmem>>, vector<4x64xf32>
    tpu.vector_store %arg12[%c0_278, %c0_279], %429 {strides = array<i32>} : memref<16x64xf32, #tpu.memory_space<vmem>>, vector<4x64xf32>,
    %c0_280 = arith.constant 0 : index
    %c1_281 = arith.constant 1 : index
    %431 = memref.load %arg3[%c0_280, %c1_281] : memref<4x12xf32, #tpu.memory_space<smem>>
    %432 = vector.broadcast %431 : f32 to vector<4x64xf32>
    %433 = arith.mulf %432, %395 : vector<4x64xf32>
    %c1_282 = arith.constant 1 : index
    %c1_283 = arith.constant 1 : index
    %434 = memref.load %arg3[%c1_282, %c1_283] : memref<4x12xf32, #tpu.memory_space<smem>>
    %435 = vector.broadcast %434 : f32 to vector<4x64xf32>
    %436 = arith.mulf %435, %397 : vector<4x64xf32>
    %437 = arith.addf %433, %436 : vector<4x64xf32>
    %c2_284 = arith.constant 2 : index
    %c1_285 = arith.constant 1 : index
    %438 = memref.load %arg3[%c2_284, %c1_285] : memref<4x12xf32, #tpu.memory_space<smem>>
    %439 = vector.broadcast %438 : f32 to vector<4x64xf32>
    %440 = arith.mulf %439, %399 : vector<4x64xf32>
    %441 = arith.addf %437, %440 : vector<4x64xf32>
    %c3_286 = arith.constant 3 : index
    %c1_287 = arith.constant 1 : index
    %442 = memref.load %arg3[%c3_286, %c1_287] : memref<4x12xf32, #tpu.memory_space<smem>>
    %443 = vector.broadcast %442 : f32 to vector<4x64xf32>
    %444 = arith.mulf %443, %401 : vector<4x64xf32>
    %445 = arith.addf %441, %444 : vector<4x64xf32>
    %c1_288 = arith.constant 1 : index
    %446 = memref.load %arg4[%c1_288] : memref<12xf32, #tpu.memory_space<smem>>
    %447 = vector.broadcast %446 : f32 to vector<4x64xf32>
    %448 = arith.addf %445, %447 : vector<4x64xf32>
    %cst_289 = arith.constant 0.000000e+00 : f32
    %449 = vector.broadcast %cst_289 : f32 to vector<4x64xf32>
    %450 = arith.maximumf %448, %449 : vector<4x64xf32>
    %c4_290 = arith.constant 4 : index
    %c0_291 = arith.constant 0 : index
    %451 = vector.load %arg12[%c4_290, %c0_291] : memref<16x64xf32, #tpu.memory_space<vmem>>, vector<4x64xf32>
    tpu.vector_store %arg12[%c4_290, %c0_291], %450 {strides = array<i32>} : memref<16x64xf32, #tpu.memory_space<vmem>>, vector<4x64xf32>,
    %c0_292 = arith.constant 0 : index
    %c2_293 = arith.constant 2 : index
    %452 = memref.load %arg3[%c0_292, %c2_293] : memref<4x12xf32, #tpu.memory_space<smem>>
    %453 = vector.broadcast %452 : f32 to vector<4x64xf32>
    %454 = arith.mulf %453, %395 : vector<4x64xf32>
    %c1_294 = arith.constant 1 : index
    %c2_295 = arith.constant 2 : index
    %455 = memref.load %arg3[%c1_294, %c2_295] : memref<4x12xf32, #tpu.memory_space<smem>>
    %456 = vector.broadcast %455 : f32 to vector<4x64xf32>
    %457 = arith.mulf %456, %397 : vector<4x64xf32>
    %458 = arith.addf %454, %457 : vector<4x64xf32>
    %c2_296 = arith.constant 2 : index
    %c2_297 = arith.constant 2 : index
    %459 = memref.load %arg3[%c2_296, %c2_297] : memref<4x12xf32, #tpu.memory_space<smem>>
    %460 = vector.broadcast %459 : f32 to vector<4x64xf32>
    %461 = arith.mulf %460, %399 : vector<4x64xf32>
    %462 = arith.addf %458, %461 : vector<4x64xf32>
    %c3_298 = arith.constant 3 : index
    %c2_299 = arith.constant 2 : index
    %463 = memref.load %arg3[%c3_298, %c2_299] : memref<4x12xf32, #tpu.memory_space<smem>>
    %464 = vector.broadcast %463 : f32 to vector<4x64xf32>
    %465 = arith.mulf %464, %401 : vector<4x64xf32>
    %466 = arith.addf %462, %465 : vector<4x64xf32>
    %c2_300 = arith.constant 2 : index
    %467 = memref.load %arg4[%c2_300] : memref<12xf32, #tpu.memory_space<smem>>
    %468 = vector.broadcast %467 : f32 to vector<4x64xf32>
    %469 = arith.addf %466, %468 : vector<4x64xf32>
    %cst_301 = arith.constant 0.000000e+00 : f32
    %470 = vector.broadcast %cst_301 : f32 to vector<4x64xf32>
    %471 = arith.maximumf %469, %470 : vector<4x64xf32>
    %c8_302 = arith.constant 8 : index
    %c0_303 = arith.constant 0 : index
    %472 = vector.load %arg12[%c8_302, %c0_303] : memref<16x64xf32, #tpu.memory_space<vmem>>, vector<4x64xf32>
    tpu.vector_store %arg12[%c8_302, %c0_303], %471 {strides = array<i32>} : memref<16x64xf32, #tpu.memory_space<vmem>>, vector<4x64xf32>,
    %c0_304 = arith.constant 0 : index
    %c3_305 = arith.constant 3 : index
    %473 = memref.load %arg3[%c0_304, %c3_305] : memref<4x12xf32, #tpu.memory_space<smem>>
    %474 = vector.broadcast %473 : f32 to vector<4x64xf32>
    %475 = arith.mulf %474, %395 : vector<4x64xf32>
    %c1_306 = arith.constant 1 : index
    %c3_307 = arith.constant 3 : index
    %476 = memref.load %arg3[%c1_306, %c3_307] : memref<4x12xf32, #tpu.memory_space<smem>>
    %477 = vector.broadcast %476 : f32 to vector<4x64xf32>
    %478 = arith.mulf %477, %397 : vector<4x64xf32>
    %479 = arith.addf %475, %478 : vector<4x64xf32>
    %c2_308 = arith.constant 2 : index
    %c3_309 = arith.constant 3 : index
    %480 = memref.load %arg3[%c2_308, %c3_309] : memref<4x12xf32, #tpu.memory_space<smem>>
    %481 = vector.broadcast %480 : f32 to vector<4x64xf32>
    %482 = arith.mulf %481, %399 : vector<4x64xf32>
    %483 = arith.addf %479, %482 : vector<4x64xf32>
    %c3_310 = arith.constant 3 : index
    %c3_311 = arith.constant 3 : index
    %484 = memref.load %arg3[%c3_310, %c3_311] : memref<4x12xf32, #tpu.memory_space<smem>>
    %485 = vector.broadcast %484 : f32 to vector<4x64xf32>
    %486 = arith.mulf %485, %401 : vector<4x64xf32>
    %487 = arith.addf %483, %486 : vector<4x64xf32>
    %c3_312 = arith.constant 3 : index
    %488 = memref.load %arg4[%c3_312] : memref<12xf32, #tpu.memory_space<smem>>
    %489 = vector.broadcast %488 : f32 to vector<4x64xf32>
    %490 = arith.addf %487, %489 : vector<4x64xf32>
    %cst_313 = arith.constant 0.000000e+00 : f32
    %491 = vector.broadcast %cst_313 : f32 to vector<4x64xf32>
    %492 = arith.maximumf %490, %491 : vector<4x64xf32>
    %c12_314 = arith.constant 12 : index
    %c0_315 = arith.constant 0 : index
    %493 = vector.load %arg12[%c12_314, %c0_315] : memref<16x64xf32, #tpu.memory_space<vmem>>, vector<4x64xf32>
    tpu.vector_store %arg12[%c12_314, %c0_315], %492 {strides = array<i32>} : memref<16x64xf32, #tpu.memory_space<vmem>>, vector<4x64xf32>,
    %c0_316 = arith.constant 0 : index
    %c4_317 = arith.constant 4 : index
    %494 = memref.load %arg3[%c0_316, %c4_317] : memref<4x12xf32, #tpu.memory_space<smem>>
    %495 = vector.broadcast %494 : f32 to vector<64x4xf32>
    %496 = arith.mulf %495, %403 : vector<64x4xf32>
    %c1_318 = arith.constant 1 : index
    %c4_319 = arith.constant 4 : index
    %497 = memref.load %arg3[%c1_318, %c4_319] : memref<4x12xf32, #tpu.memory_space<smem>>
    %498 = vector.broadcast %497 : f32 to vector<64x4xf32>
    %499 = arith.mulf %498, %405 : vector<64x4xf32>
    %500 = arith.addf %496, %499 : vector<64x4xf32>
    %c2_320 = arith.constant 2 : index
    %c4_321 = arith.constant 4 : index
    %501 = memref.load %arg3[%c2_320, %c4_321] : memref<4x12xf32, #tpu.memory_space<smem>>
    %502 = vector.broadcast %501 : f32 to vector<64x4xf32>
    %503 = arith.mulf %502, %407 : vector<64x4xf32>
    %504 = arith.addf %500, %503 : vector<64x4xf32>
    %c3_322 = arith.constant 3 : index
    %c4_323 = arith.constant 4 : index
    %505 = memref.load %arg3[%c3_322, %c4_323] : memref<4x12xf32, #tpu.memory_space<smem>>
    %506 = vector.broadcast %505 : f32 to vector<64x4xf32>
    %507 = arith.mulf %506, %409 : vector<64x4xf32>
    %508 = arith.addf %504, %507 : vector<64x4xf32>
    %c4_324 = arith.constant 4 : index
    %509 = memref.load %arg4[%c4_324] : memref<12xf32, #tpu.memory_space<smem>>
    %510 = vector.broadcast %509 : f32 to vector<64x4xf32>
    %511 = arith.addf %508, %510 : vector<64x4xf32>
    %cst_325 = arith.constant 0.000000e+00 : f32
    %512 = vector.broadcast %cst_325 : f32 to vector<64x4xf32>
    %513 = arith.maximumf %511, %512 : vector<64x4xf32>
    %c0_326 = arith.constant 0 : index
    %c0_327 = arith.constant 0 : index
    %514 = vector.load %arg13[%c0_326, %c0_327] : memref<64x16xf32, #tpu.memory_space<vmem>>, vector<64x4xf32>
    tpu.vector_store %arg13[%c0_326, %c0_327], %513 {strides = array<i32>} : memref<64x16xf32, #tpu.memory_space<vmem>>, vector<64x4xf32>,
    %c0_328 = arith.constant 0 : index
    %c5_329 = arith.constant 5 : index
    %515 = memref.load %arg3[%c0_328, %c5_329] : memref<4x12xf32, #tpu.memory_space<smem>>
    %516 = vector.broadcast %515 : f32 to vector<64x4xf32>
    %517 = arith.mulf %516, %403 : vector<64x4xf32>
    %c1_330 = arith.constant 1 : index
    %c5_331 = arith.constant 5 : index
    %518 = memref.load %arg3[%c1_330, %c5_331] : memref<4x12xf32, #tpu.memory_space<smem>>
    %519 = vector.broadcast %518 : f32 to vector<64x4xf32>
    %520 = arith.mulf %519, %405 : vector<64x4xf32>
    %521 = arith.addf %517, %520 : vector<64x4xf32>
    %c2_332 = arith.constant 2 : index
    %c5_333 = arith.constant 5 : index
    %522 = memref.load %arg3[%c2_332, %c5_333] : memref<4x12xf32, #tpu.memory_space<smem>>
    %523 = vector.broadcast %522 : f32 to vector<64x4xf32>
    %524 = arith.mulf %523, %407 : vector<64x4xf32>
    %525 = arith.addf %521, %524 : vector<64x4xf32>
    %c3_334 = arith.constant 3 : index
    %c5_335 = arith.constant 5 : index
    %526 = memref.load %arg3[%c3_334, %c5_335] : memref<4x12xf32, #tpu.memory_space<smem>>
    %527 = vector.broadcast %526 : f32 to vector<64x4xf32>
    %528 = arith.mulf %527, %409 : vector<64x4xf32>
    %529 = arith.addf %525, %528 : vector<64x4xf32>
    %c5_336 = arith.constant 5 : index
    %530 = memref.load %arg4[%c5_336] : memref<12xf32, #tpu.memory_space<smem>>
    %531 = vector.broadcast %530 : f32 to vector<64x4xf32>
    %532 = arith.addf %529, %531 : vector<64x4xf32>
    %cst_337 = arith.constant 0.000000e+00 : f32
    %533 = vector.broadcast %cst_337 : f32 to vector<64x4xf32>
    %534 = arith.maximumf %532, %533 : vector<64x4xf32>
    %c0_338 = arith.constant 0 : index
    %c4_339 = arith.constant 4 : index
    %535 = vector.load %arg13[%c0_338, %c4_339] : memref<64x16xf32, #tpu.memory_space<vmem>>, vector<64x4xf32>
    tpu.vector_store %arg13[%c0_338, %c4_339], %534 {strides = array<i32>} : memref<64x16xf32, #tpu.memory_space<vmem>>, vector<64x4xf32>,
    %c0_340 = arith.constant 0 : index
    %c6_341 = arith.constant 6 : index
    %536 = memref.load %arg3[%c0_340, %c6_341] : memref<4x12xf32, #tpu.memory_space<smem>>
    %537 = vector.broadcast %536 : f32 to vector<64x4xf32>
    %538 = arith.mulf %537, %403 : vector<64x4xf32>
    %c1_342 = arith.constant 1 : index
    %c6_343 = arith.constant 6 : index
    %539 = memref.load %arg3[%c1_342, %c6_343] : memref<4x12xf32, #tpu.memory_space<smem>>
    %540 = vector.broadcast %539 : f32 to vector<64x4xf32>
    %541 = arith.mulf %540, %405 : vector<64x4xf32>
    %542 = arith.addf %538, %541 : vector<64x4xf32>
    %c2_344 = arith.constant 2 : index
    %c6_345 = arith.constant 6 : index
    %543 = memref.load %arg3[%c2_344, %c6_345] : memref<4x12xf32, #tpu.memory_space<smem>>
    %544 = vector.broadcast %543 : f32 to vector<64x4xf32>
    %545 = arith.mulf %544, %407 : vector<64x4xf32>
    %546 = arith.addf %542, %545 : vector<64x4xf32>
    %c3_346 = arith.constant 3 : index
    %c6_347 = arith.constant 6 : index
    %547 = memref.load %arg3[%c3_346, %c6_347] : memref<4x12xf32, #tpu.memory_space<smem>>
    %548 = vector.broadcast %547 : f32 to vector<64x4xf32>
    %549 = arith.mulf %548, %409 : vector<64x4xf32>
    %550 = arith.addf %546, %549 : vector<64x4xf32>
    %c6_348 = arith.constant 6 : index
    %551 = memref.load %arg4[%c6_348] : memref<12xf32, #tpu.memory_space<smem>>
    %552 = vector.broadcast %551 : f32 to vector<64x4xf32>
    %553 = arith.addf %550, %552 : vector<64x4xf32>
    %cst_349 = arith.constant 0.000000e+00 : f32
    %554 = vector.broadcast %cst_349 : f32 to vector<64x4xf32>
    %555 = arith.maximumf %553, %554 : vector<64x4xf32>
    %c0_350 = arith.constant 0 : index
    %c8_351 = arith.constant 8 : index
    %556 = vector.load %arg13[%c0_350, %c8_351] : memref<64x16xf32, #tpu.memory_space<vmem>>, vector<64x4xf32>
    tpu.vector_store %arg13[%c0_350, %c8_351], %555 {strides = array<i32>} : memref<64x16xf32, #tpu.memory_space<vmem>>, vector<64x4xf32>,
    %c0_352 = arith.constant 0 : index
    %c7_353 = arith.constant 7 : index
    %557 = memref.load %arg3[%c0_352, %c7_353] : memref<4x12xf32, #tpu.memory_space<smem>>
    %558 = vector.broadcast %557 : f32 to vector<64x4xf32>
    %559 = arith.mulf %558, %403 : vector<64x4xf32>
    %c1_354 = arith.constant 1 : index
    %c7_355 = arith.constant 7 : index
    %560 = memref.load %arg3[%c1_354, %c7_355] : memref<4x12xf32, #tpu.memory_space<smem>>
    %561 = vector.broadcast %560 : f32 to vector<64x4xf32>
    %562 = arith.mulf %561, %405 : vector<64x4xf32>
    %563 = arith.addf %559, %562 : vector<64x4xf32>
    %c2_356 = arith.constant 2 : index
    %c7_357 = arith.constant 7 : index
    %564 = memref.load %arg3[%c2_356, %c7_357] : memref<4x12xf32, #tpu.memory_space<smem>>
    %565 = vector.broadcast %564 : f32 to vector<64x4xf32>
    %566 = arith.mulf %565, %407 : vector<64x4xf32>
    %567 = arith.addf %563, %566 : vector<64x4xf32>
    %c3_358 = arith.constant 3 : index
    %c7_359 = arith.constant 7 : index
    %568 = memref.load %arg3[%c3_358, %c7_359] : memref<4x12xf32, #tpu.memory_space<smem>>
    %569 = vector.broadcast %568 : f32 to vector<64x4xf32>
    %570 = arith.mulf %569, %409 : vector<64x4xf32>
    %571 = arith.addf %567, %570 : vector<64x4xf32>
    %c7_360 = arith.constant 7 : index
    %572 = memref.load %arg4[%c7_360] : memref<12xf32, #tpu.memory_space<smem>>
    %573 = vector.broadcast %572 : f32 to vector<64x4xf32>
    %574 = arith.addf %571, %573 : vector<64x4xf32>
    %cst_361 = arith.constant 0.000000e+00 : f32
    %575 = vector.broadcast %cst_361 : f32 to vector<64x4xf32>
    %576 = arith.maximumf %574, %575 : vector<64x4xf32>
    %c0_362 = arith.constant 0 : index
    %c12_363 = arith.constant 12 : index
    %577 = vector.load %arg13[%c0_362, %c12_363] : memref<64x16xf32, #tpu.memory_space<vmem>>, vector<64x4xf32>
    tpu.vector_store %arg13[%c0_362, %c12_363], %576 {strides = array<i32>} : memref<64x16xf32, #tpu.memory_space<vmem>>, vector<64x4xf32>,
    %c0_364 = arith.constant 0 : index
    %c8_365 = arith.constant 8 : index
    %578 = memref.load %arg3[%c0_364, %c8_365] : memref<4x12xf32, #tpu.memory_space<smem>>
    %579 = vector.broadcast %578 : f32 to vector<64x4xf32>
    %580 = arith.mulf %579, %403 : vector<64x4xf32>
    %c1_366 = arith.constant 1 : index
    %c8_367 = arith.constant 8 : index
    %581 = memref.load %arg3[%c1_366, %c8_367] : memref<4x12xf32, #tpu.memory_space<smem>>
    %582 = vector.broadcast %581 : f32 to vector<64x4xf32>
    %583 = arith.mulf %582, %405 : vector<64x4xf32>
    %584 = arith.addf %580, %583 : vector<64x4xf32>
    %c2_368 = arith.constant 2 : index
    %c8_369 = arith.constant 8 : index
    %585 = memref.load %arg3[%c2_368, %c8_369] : memref<4x12xf32, #tpu.memory_space<smem>>
    %586 = vector.broadcast %585 : f32 to vector<64x4xf32>
    %587 = arith.mulf %586, %407 : vector<64x4xf32>
    %588 = arith.addf %584, %587 : vector<64x4xf32>
    %c3_370 = arith.constant 3 : index
    %c8_371 = arith.constant 8 : index
    %589 = memref.load %arg3[%c3_370, %c8_371] : memref<4x12xf32, #tpu.memory_space<smem>>
    %590 = vector.broadcast %589 : f32 to vector<64x4xf32>
    %591 = arith.mulf %590, %409 : vector<64x4xf32>
    %592 = arith.addf %588, %591 : vector<64x4xf32>
    %c8_372 = arith.constant 8 : index
    %593 = memref.load %arg4[%c8_372] : memref<12xf32, #tpu.memory_space<smem>>
    %594 = vector.broadcast %593 : f32 to vector<64x4xf32>
    %595 = arith.addf %592, %594 : vector<64x4xf32>
    %cst_373 = arith.constant 0.000000e+00 : f32
    %596 = vector.broadcast %cst_373 : f32 to vector<64x4xf32>
    %597 = arith.maximumf %595, %596 : vector<64x4xf32>
    %c0_374 = arith.constant 0 : index
    %c0_375 = arith.constant 0 : index
    %598 = vector.load %arg14[%c0_374, %c0_375] : memref<64x16xf32, #tpu.memory_space<vmem>>, vector<64x4xf32>
    tpu.vector_store %arg14[%c0_374, %c0_375], %597 {strides = array<i32>} : memref<64x16xf32, #tpu.memory_space<vmem>>, vector<64x4xf32>,
    %c0_376 = arith.constant 0 : index
    %c9_377 = arith.constant 9 : index
    %599 = memref.load %arg3[%c0_376, %c9_377] : memref<4x12xf32, #tpu.memory_space<smem>>
    %600 = vector.broadcast %599 : f32 to vector<64x4xf32>
    %601 = arith.mulf %600, %403 : vector<64x4xf32>
    %c1_378 = arith.constant 1 : index
    %c9_379 = arith.constant 9 : index
    %602 = memref.load %arg3[%c1_378, %c9_379] : memref<4x12xf32, #tpu.memory_space<smem>>
    %603 = vector.broadcast %602 : f32 to vector<64x4xf32>
    %604 = arith.mulf %603, %405 : vector<64x4xf32>
    %605 = arith.addf %601, %604 : vector<64x4xf32>
    %c2_380 = arith.constant 2 : index
    %c9_381 = arith.constant 9 : index
    %606 = memref.load %arg3[%c2_380, %c9_381] : memref<4x12xf32, #tpu.memory_space<smem>>
    %607 = vector.broadcast %606 : f32 to vector<64x4xf32>
    %608 = arith.mulf %607, %407 : vector<64x4xf32>
    %609 = arith.addf %605, %608 : vector<64x4xf32>
    %c3_382 = arith.constant 3 : index
    %c9_383 = arith.constant 9 : index
    %610 = memref.load %arg3[%c3_382, %c9_383] : memref<4x12xf32, #tpu.memory_space<smem>>
    %611 = vector.broadcast %610 : f32 to vector<64x4xf32>
    %612 = arith.mulf %611, %409 : vector<64x4xf32>
    %613 = arith.addf %609, %612 : vector<64x4xf32>
    %c9_384 = arith.constant 9 : index
    %614 = memref.load %arg4[%c9_384] : memref<12xf32, #tpu.memory_space<smem>>
    %615 = vector.broadcast %614 : f32 to vector<64x4xf32>
    %616 = arith.addf %613, %615 : vector<64x4xf32>
    %cst_385 = arith.constant 0.000000e+00 : f32
    %617 = vector.broadcast %cst_385 : f32 to vector<64x4xf32>
    %618 = arith.maximumf %616, %617 : vector<64x4xf32>
    %c0_386 = arith.constant 0 : index
    %c4_387 = arith.constant 4 : index
    %619 = vector.load %arg14[%c0_386, %c4_387] : memref<64x16xf32, #tpu.memory_space<vmem>>, vector<64x4xf32>
    tpu.vector_store %arg14[%c0_386, %c4_387], %618 {strides = array<i32>} : memref<64x16xf32, #tpu.memory_space<vmem>>, vector<64x4xf32>,
    %c0_388 = arith.constant 0 : index
    %c10_389 = arith.constant 10 : index
    %620 = memref.load %arg3[%c0_388, %c10_389] : memref<4x12xf32, #tpu.memory_space<smem>>
    %621 = vector.broadcast %620 : f32 to vector<64x4xf32>
    %622 = arith.mulf %621, %403 : vector<64x4xf32>
    %c1_390 = arith.constant 1 : index
    %c10_391 = arith.constant 10 : index
    %623 = memref.load %arg3[%c1_390, %c10_391] : memref<4x12xf32, #tpu.memory_space<smem>>
    %624 = vector.broadcast %623 : f32 to vector<64x4xf32>
    %625 = arith.mulf %624, %405 : vector<64x4xf32>
    %626 = arith.addf %622, %625 : vector<64x4xf32>
    %c2_392 = arith.constant 2 : index
    %c10_393 = arith.constant 10 : index
    %627 = memref.load %arg3[%c2_392, %c10_393] : memref<4x12xf32, #tpu.memory_space<smem>>
    %628 = vector.broadcast %627 : f32 to vector<64x4xf32>
    %629 = arith.mulf %628, %407 : vector<64x4xf32>
    %630 = arith.addf %626, %629 : vector<64x4xf32>
    %c3_394 = arith.constant 3 : index
    %c10_395 = arith.constant 10 : index
    %631 = memref.load %arg3[%c3_394, %c10_395] : memref<4x12xf32, #tpu.memory_space<smem>>
    %632 = vector.broadcast %631 : f32 to vector<64x4xf32>
    %633 = arith.mulf %632, %409 : vector<64x4xf32>
    %634 = arith.addf %630, %633 : vector<64x4xf32>
    %c10_396 = arith.constant 10 : index
    %635 = memref.load %arg4[%c10_396] : memref<12xf32, #tpu.memory_space<smem>>
    %636 = vector.broadcast %635 : f32 to vector<64x4xf32>
    %637 = arith.addf %634, %636 : vector<64x4xf32>
    %cst_397 = arith.constant 0.000000e+00 : f32
    %638 = vector.broadcast %cst_397 : f32 to vector<64x4xf32>
    %639 = arith.maximumf %637, %638 : vector<64x4xf32>
    %c0_398 = arith.constant 0 : index
    %c8_399 = arith.constant 8 : index
    %640 = vector.load %arg14[%c0_398, %c8_399] : memref<64x16xf32, #tpu.memory_space<vmem>>, vector<64x4xf32>
    tpu.vector_store %arg14[%c0_398, %c8_399], %639 {strides = array<i32>} : memref<64x16xf32, #tpu.memory_space<vmem>>, vector<64x4xf32>,
    %c0_400 = arith.constant 0 : index
    %c11_401 = arith.constant 11 : index
    %641 = memref.load %arg3[%c0_400, %c11_401] : memref<4x12xf32, #tpu.memory_space<smem>>
    %642 = vector.broadcast %641 : f32 to vector<64x4xf32>
    %643 = arith.mulf %642, %403 : vector<64x4xf32>
    %c1_402 = arith.constant 1 : index
    %c11_403 = arith.constant 11 : index
    %644 = memref.load %arg3[%c1_402, %c11_403] : memref<4x12xf32, #tpu.memory_space<smem>>
    %645 = vector.broadcast %644 : f32 to vector<64x4xf32>
    %646 = arith.mulf %645, %405 : vector<64x4xf32>
    %647 = arith.addf %643, %646 : vector<64x4xf32>
    %c2_404 = arith.constant 2 : index
    %c11_405 = arith.constant 11 : index
    %648 = memref.load %arg3[%c2_404, %c11_405] : memref<4x12xf32, #tpu.memory_space<smem>>
    %649 = vector.broadcast %648 : f32 to vector<64x4xf32>
    %650 = arith.mulf %649, %407 : vector<64x4xf32>
    %651 = arith.addf %647, %650 : vector<64x4xf32>
    %c3_406 = arith.constant 3 : index
    %c11_407 = arith.constant 11 : index
    %652 = memref.load %arg3[%c3_406, %c11_407] : memref<4x12xf32, #tpu.memory_space<smem>>
    %653 = vector.broadcast %652 : f32 to vector<64x4xf32>
    %654 = arith.mulf %653, %409 : vector<64x4xf32>
    %655 = arith.addf %651, %654 : vector<64x4xf32>
    %c11_408 = arith.constant 11 : index
    %656 = memref.load %arg4[%c11_408] : memref<12xf32, #tpu.memory_space<smem>>
    %657 = vector.broadcast %656 : f32 to vector<64x4xf32>
    %658 = arith.addf %655, %657 : vector<64x4xf32>
    %cst_409 = arith.constant 0.000000e+00 : f32
    %659 = vector.broadcast %cst_409 : f32 to vector<64x4xf32>
    %660 = arith.maximumf %658, %659 : vector<64x4xf32>
    %c0_410 = arith.constant 0 : index
    %c12_411 = arith.constant 12 : index
    %661 = vector.load %arg14[%c0_410, %c12_411] : memref<64x16xf32, #tpu.memory_space<vmem>>, vector<64x4xf32>
    tpu.vector_store %arg14[%c0_410, %c12_411], %660 {strides = array<i32>} : memref<64x16xf32, #tpu.memory_space<vmem>>, vector<64x4xf32>,
    %c0_412 = arith.constant 0 : index
    %c0_413 = arith.constant 0 : index
    %662 = vector.load %arg12[%c0_412, %c0_413] : memref<16x64xf32, #tpu.memory_space<vmem>>, vector<16x64xf32>
    %c0_414 = arith.constant 0 : index
    %c0_415 = arith.constant 0 : index
    %663 = vector.load %arg13[%c0_414, %c0_415] : memref<64x16xf32, #tpu.memory_space<vmem>>, vector<64x16xf32>
    %c0_416 = arith.constant 0 : index
    %c0_417 = arith.constant 0 : index
    %664 = vector.load %arg14[%c0_416, %c0_417] : memref<64x16xf32, #tpu.memory_space<vmem>>, vector<64x16xf32>
    %c1_418 = arith.constant 1 : index
    %c0_419 = arith.constant 0 : index
    %c0_420 = arith.constant 0 : index
    %665 = vector.load %arg8[%c1_418, %c0_419, %c0_420] : memref<2x16x64xf32, #tpu.memory_space<vmem>>, vector<1x16x64xf32>
    %666 = vector.shape_cast %665 : vector<1x16x64xf32> to vector<16x64xf32>
    %667 = vector.shape_cast %662 : vector<16x64xf32> to vector<1x16x64xf32>
    tpu.vector_store %arg8[%c1_418, %c0_419, %c0_420], %667 {strides = array<i32>} : memref<2x16x64xf32, #tpu.memory_space<vmem>>, vector<1x16x64xf32>,
    %c1_421 = arith.constant 1 : index
    %c0_422 = arith.constant 0 : index
    %c0_423 = arith.constant 0 : index
    %668 = vector.load %arg9[%c1_421, %c0_422, %c0_423] : memref<2x64x16xf32, #tpu.memory_space<vmem>>, vector<1x64x16xf32>
    %669 = vector.shape_cast %668 : vector<1x64x16xf32> to vector<64x16xf32>
    %670 = vector.shape_cast %663 : vector<64x16xf32> to vector<1x64x16xf32>
    tpu.vector_store %arg9[%c1_421, %c0_422, %c0_423], %670 {strides = array<i32>} : memref<2x64x16xf32, #tpu.memory_space<vmem>>, vector<1x64x16xf32>,
    %c1_424 = arith.constant 1 : index
    %c0_425 = arith.constant 0 : index
    %c0_426 = arith.constant 0 : index
    %671 = vector.load %arg10[%c1_424, %c0_425, %c0_426] : memref<2x64x16xf32, #tpu.memory_space<vmem>>, vector<1x64x16xf32>
    %672 = vector.shape_cast %671 : vector<1x64x16xf32> to vector<64x16xf32>
    %673 = vector.shape_cast %664 : vector<64x16xf32> to vector<1x64x16xf32>
    tpu.vector_store %arg10[%c1_424, %c0_425, %c0_426], %673 {strides = array<i32>} : memref<2x64x16xf32, #tpu.memory_space<vmem>>, vector<1x64x16xf32>,
    %cst_427 = arith.constant dense<0.000000e+00> : vector<16x16xf32>
    %674 = tpu.matmul %662, %663, %cst_427 {dimension_numbers = #tpu.dot_dimension_numbers<[1], [0], [0], [1], [0, 0, 1, 1], [], []>} : vector<16x64xf32>, vector<64x16xf32>, vector<16x16xf32> -> vector<16x16xf32>
    %cst_428 = arith.constant dense<0xFF800000> : vector<16xf32>
    %675 = vector.multi_reduction <maximumf>, %674, %cst_428 [0] : vector<16x16xf32> to vector<16xf32>
    %676 = vector.shape_cast %675 : vector<16xf32> to vector<1x16xf32>
    %677 = vector.broadcast %676 : vector<1x16xf32> to vector<16x16xf32>
    %678 = arith.subf %674, %677 : vector<16x16xf32>
    %679 = math.exp %678 : vector<16x16xf32>
    %cst_429 = arith.constant dense<0.000000e+00> : vector<16xf32>
    %680 = vector.multi_reduction <add>, %679, %cst_429 [0] : vector<16x16xf32> to vector<16xf32>
    %681 = vector.shape_cast %680 : vector<16xf32> to vector<1x16xf32>
    %682 = vector.broadcast %681 : vector<1x16xf32> to vector<16x16xf32>
    %683 = arith.divf %679, %682 : vector<16x16xf32>
    %c1_430 = arith.constant 1 : index
    %c0_431 = arith.constant 0 : index
    %c0_432 = arith.constant 0 : index
    %684 = vector.load %arg11[%c1_430, %c0_431, %c0_432] : memref<2x16x16xf32, #tpu.memory_space<vmem>>, vector<1x16x16xf32>
    %685 = vector.shape_cast %684 : vector<1x16x16xf32> to vector<16x16xf32>
    %686 = vector.shape_cast %683 : vector<16x16xf32> to vector<1x16x16xf32>
    tpu.vector_store %arg11[%c1_430, %c0_431, %c0_432], %686 {strides = array<i32>} : memref<2x16x16xf32, #tpu.memory_space<vmem>>, vector<1x16x16xf32>,
    %cst_433 = arith.constant dense<0.000000e+00> : vector<64x16xf32>
    %687 = tpu.matmul %664, %683, %cst_433 {dimension_numbers = #tpu.dot_dimension_numbers<[1], [0], [0], [1], [0, 0, 1, 1], [], []>} : vector<64x16xf32>, vector<16x16xf32>, vector<64x16xf32> -> vector<64x16xf32>
    %c0_434 = arith.constant 0 : index
    %c0_435 = arith.constant 0 : index
    %688 = memref.load %arg5[%c0_434, %c0_435] : memref<4x4xf32, #tpu.memory_space<smem>>
    %689 = vector.extract_strided_slice %687 {offsets = [0, 0], sizes = [16, 16], strides = [1, 1]} : vector<64x16xf32> to vector<16x16xf32>
    %690 = vector.broadcast %688 : f32 to vector<16x16xf32>
    %691 = arith.mulf %690, %689 : vector<16x16xf32>
    %c1_436 = arith.constant 1 : index
    %c0_437 = arith.constant 0 : index
    %692 = memref.load %arg5[%c1_436, %c0_437] : memref<4x4xf32, #tpu.memory_space<smem>>
    %693 = vector.extract_strided_slice %687 {offsets = [16, 0], sizes = [16, 16], strides = [1, 1]} : vector<64x16xf32> to vector<16x16xf32>
    %694 = vector.broadcast %692 : f32 to vector<16x16xf32>
    %695 = arith.mulf %694, %693 : vector<16x16xf32>
    %696 = arith.addf %691, %695 : vector<16x16xf32>
    %c2_438 = arith.constant 2 : index
    %c0_439 = arith.constant 0 : index
    %697 = memref.load %arg5[%c2_438, %c0_439] : memref<4x4xf32, #tpu.memory_space<smem>>
    %698 = vector.extract_strided_slice %687 {offsets = [32, 0], sizes = [16, 16], strides = [1, 1]} : vector<64x16xf32> to vector<16x16xf32>
    %699 = vector.broadcast %697 : f32 to vector<16x16xf32>
    %700 = arith.mulf %699, %698 : vector<16x16xf32>
    %701 = arith.addf %696, %700 : vector<16x16xf32>
    %c3_440 = arith.constant 3 : index
    %c0_441 = arith.constant 0 : index
    %702 = memref.load %arg5[%c3_440, %c0_441] : memref<4x4xf32, #tpu.memory_space<smem>>
    %703 = vector.extract_strided_slice %687 {offsets = [48, 0], sizes = [16, 16], strides = [1, 1]} : vector<64x16xf32> to vector<16x16xf32>
    %704 = vector.broadcast %702 : f32 to vector<16x16xf32>
    %705 = arith.mulf %704, %703 : vector<16x16xf32>
    %706 = arith.addf %701, %705 : vector<16x16xf32>
    %c0_442 = arith.constant 0 : index
    %707 = memref.load %arg6[%c0_442] : memref<4xf32, #tpu.memory_space<smem>>
    %708 = vector.broadcast %707 : f32 to vector<16x16xf32>
    %709 = arith.addf %706, %708 : vector<16x16xf32>
    %c1_443 = arith.constant 1 : index
    %c0_444 = arith.constant 0 : index
    %c0_445 = arith.constant 0 : index
    %c0_446 = arith.constant 0 : index
    %710 = vector.load %arg7[%c1_443, %c0_444, %c0_445, %c0_446] : memref<2x4x16x16xf32, #tpu.memory_space<vmem>>, vector<1x1x16x16xf32>
    %711 = vector.shape_cast %710 : vector<1x1x16x16xf32> to vector<16x16xf32>
    %712 = vector.shape_cast %709 : vector<16x16xf32> to vector<1x1x16x16xf32>
    tpu.vector_store %arg7[%c1_443, %c0_444, %c0_445, %c0_446], %712 {strides = array<i32>} : memref<2x4x16x16xf32, #tpu.memory_space<vmem>>, vector<1x1x16x16xf32>,
    %c0_447 = arith.constant 0 : index
    %c1_448 = arith.constant 1 : index
    %713 = memref.load %arg5[%c0_447, %c1_448] : memref<4x4xf32, #tpu.memory_space<smem>>
    %714 = vector.extract_strided_slice %687 {offsets = [0, 0], sizes = [16, 16], strides = [1, 1]} : vector<64x16xf32> to vector<16x16xf32>
    %715 = vector.broadcast %713 : f32 to vector<16x16xf32>
    %716 = arith.mulf %715, %714 : vector<16x16xf32>
    %c1_449 = arith.constant 1 : index
    %c1_450 = arith.constant 1 : index
    %717 = memref.load %arg5[%c1_449, %c1_450] : memref<4x4xf32, #tpu.memory_space<smem>>
    %718 = vector.extract_strided_slice %687 {offsets = [16, 0], sizes = [16, 16], strides = [1, 1]} : vector<64x16xf32> to vector<16x16xf32>
    %719 = vector.broadcast %717 : f32 to vector<16x16xf32>
    %720 = arith.mulf %719, %718 : vector<16x16xf32>
    %721 = arith.addf %716, %720 : vector<16x16xf32>
    %c2_451 = arith.constant 2 : index
    %c1_452 = arith.constant 1 : index
    %722 = memref.load %arg5[%c2_451, %c1_452] : memref<4x4xf32, #tpu.memory_space<smem>>
    %723 = vector.extract_strided_slice %687 {offsets = [32, 0], sizes = [16, 16], strides = [1, 1]} : vector<64x16xf32> to vector<16x16xf32>
    %724 = vector.broadcast %722 : f32 to vector<16x16xf32>
    %725 = arith.mulf %724, %723 : vector<16x16xf32>
    %726 = arith.addf %721, %725 : vector<16x16xf32>
    %c3_453 = arith.constant 3 : index
    %c1_454 = arith.constant 1 : index
    %727 = memref.load %arg5[%c3_453, %c1_454] : memref<4x4xf32, #tpu.memory_space<smem>>
    %728 = vector.extract_strided_slice %687 {offsets = [48, 0], sizes = [16, 16], strides = [1, 1]} : vector<64x16xf32> to vector<16x16xf32>
    %729 = vector.broadcast %727 : f32 to vector<16x16xf32>
    %730 = arith.mulf %729, %728 : vector<16x16xf32>
    %731 = arith.addf %726, %730 : vector<16x16xf32>
    %c1_455 = arith.constant 1 : index
    %732 = memref.load %arg6[%c1_455] : memref<4xf32, #tpu.memory_space<smem>>
    %733 = vector.broadcast %732 : f32 to vector<16x16xf32>
    %734 = arith.addf %731, %733 : vector<16x16xf32>
    %c1_456 = arith.constant 1 : index
    %c1_457 = arith.constant 1 : index
    %c0_458 = arith.constant 0 : index
    %c0_459 = arith.constant 0 : index
    %735 = vector.load %arg7[%c1_456, %c1_457, %c0_458, %c0_459] : memref<2x4x16x16xf32, #tpu.memory_space<vmem>>, vector<1x1x16x16xf32>
    %736 = vector.shape_cast %735 : vector<1x1x16x16xf32> to vector<16x16xf32>
    %737 = vector.shape_cast %734 : vector<16x16xf32> to vector<1x1x16x16xf32>
    tpu.vector_store %arg7[%c1_456, %c1_457, %c0_458, %c0_459], %737 {strides = array<i32>} : memref<2x4x16x16xf32, #tpu.memory_space<vmem>>, vector<1x1x16x16xf32>,
    %c0_460 = arith.constant 0 : index
    %c2_461 = arith.constant 2 : index
    %738 = memref.load %arg5[%c0_460, %c2_461] : memref<4x4xf32, #tpu.memory_space<smem>>
    %739 = vector.extract_strided_slice %687 {offsets = [0, 0], sizes = [16, 16], strides = [1, 1]} : vector<64x16xf32> to vector<16x16xf32>
    %740 = vector.broadcast %738 : f32 to vector<16x16xf32>
    %741 = arith.mulf %740, %739 : vector<16x16xf32>
    %c1_462 = arith.constant 1 : index
    %c2_463 = arith.constant 2 : index
    %742 = memref.load %arg5[%c1_462, %c2_463] : memref<4x4xf32, #tpu.memory_space<smem>>
    %743 = vector.extract_strided_slice %687 {offsets = [16, 0], sizes = [16, 16], strides = [1, 1]} : vector<64x16xf32> to vector<16x16xf32>
    %744 = vector.broadcast %742 : f32 to vector<16x16xf32>
    %745 = arith.mulf %744, %743 : vector<16x16xf32>
    %746 = arith.addf %741, %745 : vector<16x16xf32>
    %c2_464 = arith.constant 2 : index
    %c2_465 = arith.constant 2 : index
    %747 = memref.load %arg5[%c2_464, %c2_465] : memref<4x4xf32, #tpu.memory_space<smem>>
    %748 = vector.extract_strided_slice %687 {offsets = [32, 0], sizes = [16, 16], strides = [1, 1]} : vector<64x16xf32> to vector<16x16xf32>
    %749 = vector.broadcast %747 : f32 to vector<16x16xf32>
    %750 = arith.mulf %749, %748 : vector<16x16xf32>
    %751 = arith.addf %746, %750 : vector<16x16xf32>
    %c3_466 = arith.constant 3 : index
    %c2_467 = arith.constant 2 : index
    %752 = memref.load %arg5[%c3_466, %c2_467] : memref<4x4xf32, #tpu.memory_space<smem>>
    %753 = vector.extract_strided_slice %687 {offsets = [48, 0], sizes = [16, 16], strides = [1, 1]} : vector<64x16xf32> to vector<16x16xf32>
    %754 = vector.broadcast %752 : f32 to vector<16x16xf32>
    %755 = arith.mulf %754, %753 : vector<16x16xf32>
    %756 = arith.addf %751, %755 : vector<16x16xf32>
    %c2_468 = arith.constant 2 : index
    %757 = memref.load %arg6[%c2_468] : memref<4xf32, #tpu.memory_space<smem>>
    %758 = vector.broadcast %757 : f32 to vector<16x16xf32>
    %759 = arith.addf %756, %758 : vector<16x16xf32>
    %c1_469 = arith.constant 1 : index
    %c2_470 = arith.constant 2 : index
    %c0_471 = arith.constant 0 : index
    %c0_472 = arith.constant 0 : index
    %760 = vector.load %arg7[%c1_469, %c2_470, %c0_471, %c0_472] : memref<2x4x16x16xf32, #tpu.memory_space<vmem>>, vector<1x1x16x16xf32>
    %761 = vector.shape_cast %760 : vector<1x1x16x16xf32> to vector<16x16xf32>
    %762 = vector.shape_cast %759 : vector<16x16xf32> to vector<1x1x16x16xf32>
    tpu.vector_store %arg7[%c1_469, %c2_470, %c0_471, %c0_472], %762 {strides = array<i32>} : memref<2x4x16x16xf32, #tpu.memory_space<vmem>>, vector<1x1x16x16xf32>,
    %c0_473 = arith.constant 0 : index
    %c3_474 = arith.constant 3 : index
    %763 = memref.load %arg5[%c0_473, %c3_474] : memref<4x4xf32, #tpu.memory_space<smem>>
    %764 = vector.extract_strided_slice %687 {offsets = [0, 0], sizes = [16, 16], strides = [1, 1]} : vector<64x16xf32> to vector<16x16xf32>
    %765 = vector.broadcast %763 : f32 to vector<16x16xf32>
    %766 = arith.mulf %765, %764 : vector<16x16xf32>
    %c1_475 = arith.constant 1 : index
    %c3_476 = arith.constant 3 : index
    %767 = memref.load %arg5[%c1_475, %c3_476] : memref<4x4xf32, #tpu.memory_space<smem>>
    %768 = vector.extract_strided_slice %687 {offsets = [16, 0], sizes = [16, 16], strides = [1, 1]} : vector<64x16xf32> to vector<16x16xf32>
    %769 = vector.broadcast %767 : f32 to vector<16x16xf32>
    %770 = arith.mulf %769, %768 : vector<16x16xf32>
    %771 = arith.addf %766, %770 : vector<16x16xf32>
    %c2_477 = arith.constant 2 : index
    %c3_478 = arith.constant 3 : index
    %772 = memref.load %arg5[%c2_477, %c3_478] : memref<4x4xf32, #tpu.memory_space<smem>>
    %773 = vector.extract_strided_slice %687 {offsets = [32, 0], sizes = [16, 16], strides = [1, 1]} : vector<64x16xf32> to vector<16x16xf32>
    %774 = vector.broadcast %772 : f32 to vector<16x16xf32>
    %775 = arith.mulf %774, %773 : vector<16x16xf32>
    %776 = arith.addf %771, %775 : vector<16x16xf32>
    %c3_479 = arith.constant 3 : index
    %c3_480 = arith.constant 3 : index
    %777 = memref.load %arg5[%c3_479, %c3_480] : memref<4x4xf32, #tpu.memory_space<smem>>
    %778 = vector.extract_strided_slice %687 {offsets = [48, 0], sizes = [16, 16], strides = [1, 1]} : vector<64x16xf32> to vector<16x16xf32>
    %779 = vector.broadcast %777 : f32 to vector<16x16xf32>
    %780 = arith.mulf %779, %778 : vector<16x16xf32>
    %781 = arith.addf %776, %780 : vector<16x16xf32>
    %c3_481 = arith.constant 3 : index
    %782 = memref.load %arg6[%c3_481] : memref<4xf32, #tpu.memory_space<smem>>
    %783 = vector.broadcast %782 : f32 to vector<16x16xf32>
    %784 = arith.addf %781, %783 : vector<16x16xf32>
    %c1_482 = arith.constant 1 : index
    %c3_483 = arith.constant 3 : index
    %c0_484 = arith.constant 0 : index
    %c0_485 = arith.constant 0 : index
    %785 = vector.load %arg7[%c1_482, %c3_483, %c0_484, %c0_485] : memref<2x4x16x16xf32, #tpu.memory_space<vmem>>, vector<1x1x16x16xf32>
    %786 = vector.shape_cast %785 : vector<1x1x16x16xf32> to vector<16x16xf32>
    %787 = vector.shape_cast %784 : vector<16x16xf32> to vector<1x1x16x16xf32>
    tpu.vector_store %arg7[%c1_482, %c3_483, %c0_484, %c0_485], %787 {strides = array<i32>} : memref<2x4x16x16xf32, #tpu.memory_space<vmem>>, vector<1x1x16x16xf32>,
    return
  }
  func.func @transform_0(%arg0: i32) -> (i32, i32, i32, i32) {
    %c0_i32 = arith.constant 0 : i32
    %c0_i32_0 = arith.constant 0 : i32
    %c0_i32_1 = arith.constant 0 : i32
    %c0_i32_2 = arith.constant 0 : i32
    return %arg0, %c0_i32, %c0_i32_0, %c0_i32_1 : i32, i32, i32, i32
  }
  func.func @transform_1(%arg0: i32) -> (i32, i32, i32, i32) {
    %c0_i32 = arith.constant 0 : i32
    %c0_i32_0 = arith.constant 0 : i32
    %c0_i32_1 = arith.constant 0 : i32
    %c0_i32_2 = arith.constant 0 : i32
    return %arg0, %c0_i32, %c0_i32_0, %c0_i32_1 : i32, i32, i32, i32
  }
  func.func @transform_2(%arg0: i32) -> (i32, i32) {
    %c0_i32 = arith.constant 0 : i32
    %c0_i32_0 = arith.constant 0 : i32
    %c0_i32_1 = arith.constant 0 : i32
    return %c0_i32, %c0_i32_0 : i32, i32
  }
  func.func @transform_3(%arg0: i32) -> i32 {
    %c0_i32 = arith.constant 0 : i32
    %c0_i32_0 = arith.constant 0 : i32
    return %c0_i32 : i32
  }
  func.func @transform_4(%arg0: i32) -> (i32, i32) {
    %c0_i32 = arith.constant 0 : i32
    %c0_i32_0 = arith.constant 0 : i32
    %c0_i32_1 = arith.constant 0 : i32
    return %c0_i32, %c0_i32_0 : i32, i32
  }
  func.func @transform_5(%arg0: i32) -> i32 {
    %c0_i32 = arith.constant 0 : i32
    %c0_i32_0 = arith.constant 0 : i32
    return %c0_i32 : i32
  }
  func.func @transform_6(%arg0: i32) -> (i32, i32, i32, i32) {
    %c0_i32 = arith.constant 0 : i32
    %c0_i32_0 = arith.constant 0 : i32
    %c0_i32_1 = arith.constant 0 : i32
    %c0_i32_2 = arith.constant 0 : i32
    return %arg0, %c0_i32, %c0_i32_0, %c0_i32_1 : i32, i32, i32, i32
  }
  func.func @transform_7(%arg0: i32) -> (i32, i32, i32) {
    %c0_i32 = arith.constant 0 : i32
    %c0_i32_0 = arith.constant 0 : i32
    %c0_i32_1 = arith.constant 0 : i32
    return %arg0, %c0_i32, %c0_i32_0 : i32, i32, i32
  }
  func.func @transform_8(%arg0: i32) -> (i32, i32, i32) {
    %c0_i32 = arith.constant 0 : i32
    %c0_i32_0 = arith.constant 0 : i32
    %c0_i32_1 = arith.constant 0 : i32
    return %arg0, %c0_i32, %c0_i32_0 : i32, i32, i32
  }
  func.func @transform_9(%arg0: i32) -> (i32, i32, i32) {
    %c0_i32 = arith.constant 0 : i32
    %c0_i32_0 = arith.constant 0 : i32
    %c0_i32_1 = arith.constant 0 : i32
    return %arg0, %c0_i32, %c0_i32_0 : i32, i32, i32
  }
  func.func @transform_10(%arg0: i32) -> (i32, i32, i32) {
    %c0_i32 = arith.constant 0 : i32
    %c0_i32_0 = arith.constant 0 : i32
    %c0_i32_1 = arith.constant 0 : i32
    return %arg0, %c0_i32, %c0_i32_0 : i32, i32, i32
  }
}

</mosaic_0001>

<bundles_post_ra>
// kernel: axis_portrait_attention.1
= control target key start
LH: loop header
LB: loop body
LE: loop exit
PB: predicated region body
PF: predicated region fallthrough
CT: control target
= control target key end

     0   :  { %16 = vsyncpa [#allocation7], 0  ;;  %s6604_s0 = inlined_call_operand.vmem [shape: f32[2,4,4,64], index: 0, kind: input, shape index: {}]   ;;  %s6605_s1 = inlined_call_operand.vmem [shape: f32[2,4,64,4], index: 1, kind: input, shape index: {}]   ;;  %s6606_s2 = inlined_call_operand.vmem [shape: f32[4,12], index: 2, kind: input, shape index: {}]   ;;  %s6607_s3 = inlined_call_operand.vmem [shape: f32[12], index: 3, kind: input, shape index: {}]   ;;  %s6608_s4 = inlined_call_operand.vmem [shape: f32[4,4], index: 4, kind: input, shape index: {}]   ;;  %s6609_s5 = inlined_call_operand.vmem [shape: f32[4], index: 5, kind: input, shape index: {}]   ;;  %s6610_s6 = inlined_call_operand.hbm [shape: f32[2,4,16,16], index: 6, kind: output, shape index: {0}]   ;;  %s6611_s7 = inlined_call_operand.hbm [shape: f32[2,16,64], index: 7, kind: output, shape index: {1}]   ;;  %s6612_s8 = inlined_call_operand.vmem [shape: f32[2,64,16], index: 8, kind: output, shape index: {2}]   ;;  %s6613_s9 = inlined_call_operand.vmem [shape: f32[2,64,16], index: 9, kind: output, shape index: {3}]   ;;  %s6614_s10 = inlined_call_operand.hbm [shape: f32[2,16,16], index: 10, kind: output, shape index: {4}]  }
   0x1   :  { %17 = vsyncpa [#allocation9], 0 }
   0x2   :  { %18 = vsyncpa [#allocation12], 0 }
   0x3   :  { %19 = vsyncpa [#allocation6], 0  ;;  %s41_s15 = sshll.u32 %s6607_s3, 4  ;;  %s42_s15 = int_to_ptr.vmem [resolvable:$true] %s41_s15 }
   0x4   :  { %20 = vsyncpa [#allocation15], 0  ;;  %s31_s18 = sshll.u32 %s6606_s2, 4  ;;  %s3471_s19 = scalar_lea.vmem %s42_s15, 16  ;;  %s32_s18 = int_to_ptr.vmem [resolvable:$true] %s31_s18 }
   0x5   :  { %p3472_p0 = scmp.ne.s32.totalorder %s42_s15, %s3471_s19  ;;  %p3476_p1 = scmp.lt.s32.totalorder %s42_s15, %s42_s15 }
   0x6   :  { %p3477_p2 = scmp.lt.s32.totalorder %s3471_s19, %s3471_s19 }
   0x8   :  { %p3478_p3 = por %p3477_p2, %p3476_p1 }
   0xa   :  { %p3479_p4 = pnand %p3478_p3, %p3472_p0 }
   0xc   :  { %3482 = shalt.err (!%p3479_p4)
}
   0xd   :  { %s3589_s20 = smov [#allocation8]   ;;  %s3483_s21 = scalar_lea.vmem %s32_s18, 64 }
   0xe   :  { %44 = dma.vmem_to_smem %s42_s15, 16, %s3589_s20, [#allocation9]  }
   0xf   :  { %p3484_p5 = scmp.ne.s32.totalorder %s32_s18, %s3483_s21  ;;  %p3488_p6 = scmp.lt.s32.totalorder %s32_s18, %s32_s18 }
  0x10   :  { %p3489_p7 = scmp.lt.s32.totalorder %s3483_s21, %s3483_s21 }
  0x12   :  { %p3490_p8 = por %p3489_p7, %p3488_p6 }
  0x14   :  { %p3491_p9 = pnand %p3490_p8, %p3484_p5 }
  0x16   :  { %3494 = shalt.err (!%p3491_p9)
}
  0x17   :  { %s3590_s3 = smov [#allocation5]   ;;  %s51_s23 = sshll.u32 %s6608_s4, 4  ;;  %s52_s23 = int_to_ptr.vmem [resolvable:$true] %s51_s23 }
  0x18   :  { %34 = dma.vmem_to_smem %s32_s18, 64, %s3590_s3, [#allocation7]  }
  0x19   :  { %s61_s26 = sshll.u32 %s6609_s5, 4  ;;  %s3495_s27 = scalar_lea.vmem %s52_s23, 64  ;;  %s62_s26 = int_to_ptr.vmem [resolvable:$true] %s61_s26 }
  0x1a   :  { %p3496_p10 = scmp.ne.s32.totalorder %s52_s23, %s3495_s27  ;;  %p3500_p11 = scmp.lt.s32.totalorder %s52_s23, %s52_s23 }
  0x1b   :  { %p3501_p12 = scmp.lt.s32.totalorder %s3495_s27, %s3495_s27 }
  0x1d   :  { %p3502_p13 = por %p3501_p12, %p3500_p11 }
  0x1f   :  { %p3503_p0 = pnand %p3502_p13, %p3496_p10 }
  0x21   :  { %3506 = shalt.err (!%p3503_p0)
}
  0x22   :  { %s3591_s28 = smov [#allocation10]   ;;  %s3507_s29 = scalar_lea.vmem %s62_s26, 16 }
  0x23   :  { %54 = dma.vmem_to_smem %s52_s23, 64, %s3591_s28, [#allocation9]  }
  0x24   :  { %p3508_p1 = scmp.ne.s32.totalorder %s62_s26, %s3507_s29  ;;  %p3512_p2 = scmp.lt.s32.totalorder %s62_s26, %s62_s26 }
  0x25   :  { %p3513_p3 = scmp.lt.s32.totalorder %s3507_s29, %s3507_s29 }
  0x27   :  { %p3514_p4 = por %p3513_p3, %p3512_p2 }
  0x29   :  { %p3515_p5 = pnand %p3514_p4, %p3508_p1 }
  0x2b   :  { %3518 = shalt.err (!%p3515_p5)
}
  0x2c   :  { %s3592_s4 = smov [#allocation11]  }
  0x2d   :  { %64 = dma.vmem_to_smem %s62_s26, 16, %s3592_s4, [#allocation12]  }
  0x2e   :  { %3579 = dma.done.wait [#allocation7], 64  }
  0x2f   :  { %3580 = vsyncadd [#allocation7], 4294967232 }
  0x30   :  { %3581 = dma.done.wait [#allocation9], 80  }
  0x31   :  { %3582 = vsyncadd [#allocation9], 4294967216 }
  0x32   :  { %3583 = dma.done.wait [#allocation12], 16  }
  0x33   :  { %3584 = vsyncadd [#allocation12], 4294967280 }
  0x34   :  { %77 = sfence }
  0x35   :  { %s3048_s5 = sld [smem:[#allocation5 + $0x5]]  ;;  %v3670_v0 = vld [vmem:[%s6605_s1 + $0x38] sm:$0xff]  ;;  %v3677_v1 = vld [vmem:[%s6605_s1 + $0x30] sm:$0xff]  ;;  %v3682_v2 = vld [vmem:[%s6605_s1 + $0x28] sm:$0xff]  ;;  %s3594_s25 = smov 8   ;;  %vm283_vm0 = vcmask 31744  }
  0x36   :  { %s3049_s30 = sld [smem:[#allocation5 + $0x85]]  ;;  %v3687_v3 = vld [vmem:[%s6605_s1 + $0x78] sm:$0xff]  ;;  %v3692_v4 = vld [vmem:[%s6605_s1 + $0x70] sm:$0xff]  ;;  %v3699_v5 = vld [vmem:[%s6605_s1 + $0x68] sm:$0xff]  ;;  %vm139_vm1 = vcmask 519168   ;;  %vm1135_vm2 = vcmask 523264  }
  0x37   :  { %s3050_s11 = sld [smem:[#allocation5 + $0x105]]  ;;  %v3704_v6 = vld [vmem:[%s6605_s1 + $0xb8] sm:$0xff]  ;;  %v3711_v8 = vld [vmem:[%s6605_s1 + $0xb0] sm:$0xff]  ;;  %v3718_v9 = vld [vmem:[%s6605_s1 + $0xa8] sm:$0xff]  ;;  %vm406_vm3 = vcmask 64544   ;;  %vm529_vm4 = vcmask 97344  }
  0x38   :  { %s3051_s12 = sld [smem:[#allocation5 + $0x185]]  ;;  %v3723_v10 = vld [vmem:[%s6605_s1 + $0xf8] sm:$0xff]  ;;  %v3740_v17 = vld [vmem:[%s6605_s1 + $0xf0] sm:$0xff]  ;;  %v3749_v19 = vld [vmem:[%s6605_s1 + $0xe8] sm:$0xff]  ;;  %vm652_vm5 = vcmask 130144   ;;  %vm1138_vm6 = vcmask 130048  }
  0x39   :  { %s3672_s15 = sld [smem:[#allocation8 + $0x5]] }
  0x3a   :  { %s3694_s22 = sld [smem:[#allocation5 + $0x6]] }
  0x3b   :  { %v3706_v7 = vstv %s3048_s5  ;;  %s3713_s29 = sld [smem:[#allocation5 + $0x86]] }
  0x3c   :  { %v301_v11 = vmul.f32 %v3706_v7, %v3670_v0  ;;  %v3727_v12 = vstv %s3049_s30  ;;  %v300_v13 = vmul.f32 %v3706_v7, %v3677_v1  ;;  %s3055_s5 = sld [smem:[#allocation5 + $0x106]]  ;;  %v299_v14 = vmul.f32 %v3706_v7, %v3682_v2 }
  0x3d   :  { %v311_v15 = vmul.f32 %v3687_v3, %v3727_v12  ;;  %v3735_v16 = vstv %s3050_s11  ;;  %v310_v18 = vmul.f32 %v3692_v4, %v3727_v12  ;;  %s3744_s30 = sld [smem:[#allocation5 + $0x186]]  ;;  %v309_v20 = vmul.f32 %v3699_v5, %v3727_v12 }
  0x3e   :  { %v329_v21 = vmul.f32 %v3704_v6, %v3735_v16  ;;  %v3755_v22 = vstv %s3051_s12  ;;  %v328_v23 = vmul.f32 %v3711_v8, %v3735_v16  ;;  %s3057_s11 = sld [smem:[#allocation8 + $0x6]]  ;;  %v327_v24 = vmul.f32 %v3718_v9, %v3735_v16 }
  0x3f   :  { %v319_v25 = vadd.f32 %v311_v15, %v301_v11  ;;  %v347_v26 = vmul.f32 %v3723_v10, %v3755_v22  ;;  %v3764_v27 = vstv %s3672_s15  ;;  %v318_v28 = vadd.f32 %v310_v18, %v300_v13  ;;  %s3058_s21 = sld [smem:[#allocation5 + $0x7]] }
  0x40   :  { %v346_v29 = vmul.f32 %v3740_v17, %v3755_v22  ;;  %v3769_v30 = vstv %s3694_s22  ;;  %s3059_s12 = sld [smem:[#allocation5 + $0x87]]  ;;  %v317_v31 = vadd.f32 %v309_v20, %v299_v14  ;;  %v345_v32 = vmul.f32 %v3749_v19, %v3755_v22  ;;  %s3593_s22 = smov 4  }
  0x41   :  { %v337_v33 = vadd.f32 %v329_v21, %v319_v25  ;;  %v336_v34 = vadd.f32 %v328_v23, %v318_v28  ;;  %v424_v35 = vmul.f32 %v3769_v30, %v3670_v0  ;;  %v3776_v36 = vstv %s3713_s29  ;;  %s3060_s15 = sld [smem:[#allocation5 + $0x107]] }
  0x42   :  { %v434_v37 = vmul.f32 %v3687_v3, %v3776_v36  ;;  %v3780_v38 = vstv %s3055_s5  ;;  %s3061_s3 = sld [smem:[#allocation5 + $0x187]]  ;;  %v423_v39 = vmul.f32 %v3769_v30, %v3677_v1  ;;  %v433_v40 = vmul.f32 %v3692_v4, %v3776_v36  ;;  %s3595_s5 = smov 12  }
  0x43   :  { %v355_v41 = vadd.f32 %v347_v26, %v337_v33  ;;  %v354_v42 = vadd.f32 %v346_v29, %v336_v34  ;;  %v452_v43 = vmul.f32 %v3704_v6, %v3780_v38  ;;  %v3789_v44 = vstv %s3744_s30  ;;  %s3062_s2 = sld [smem:[#allocation8 + $0x7]] }
  0x44   :  { %v442_v45 = vadd.f32 %v434_v37, %v424_v35  ;;  %v470_v46 = vmul.f32 %v3723_v10, %v3789_v44  ;;  %v3793_v47 = vstv %s3057_s11  ;;  %v441_v48 = vadd.f32 %v433_v40, %v423_v39  ;;  %s4077_s23 = sld [smem:[#allocation5 + $0x104]] }
  0x45   :  { %v365_v49 = vadd.f32 %v3764_v27, %v355_v41  ;;  %v364_v50 = vadd.f32 %v3764_v27, %v354_v42  ;;  %v3797_v51 = vstv %s3058_s21  ;;  %v451_v52 = vmul.f32 %v3711_v8, %v3780_v38  ;;  %v3841_v41 = vld [vmem:[%s6605_s1 + $0x20] sm:$0xff]  ;;  %s4088_s24 = sld [smem:[#allocation5 + $0x184]] }
  0x46   :  { %v460_v53 = vadd.f32 %v452_v43, %v442_v45  ;;  %v547_v54 = vmul.f32 %v3797_v51, %v3670_v0  ;;  %v3803_v55 = vstv %s3059_s12  ;;  %v469_v56 = vmul.f32 %v3740_v17, %v3789_v44  ;;  %s4057_s12 = sld [smem:[#allocation5 + $0x4]] }
  0x47   :  { %v373_v57 = vmax.f32 %v365_v49, 0.0  ;;  %v372_v58 = vmax.f32 %v364_v50, 0.0  ;;  %v557_v59 = vmul.f32 %v3687_v3, %v3803_v55  ;;  %v3809_v60 = vstv %s3060_s15  ;;  %s4101_s26 = sld [smem:[#allocation8 + $0x4]] }
  0x48   :  { %v478_v61 = vadd.f32 %v470_v46, %v460_v53  ;;  %v575_v62 = vmul.f32 %v3704_v6, %v3809_v60  ;;  %v3813_v63 = vstv %s3061_s3  ;;  %v459_v11 = vadd.f32 %v451_v52, %v441_v48  ;;  %v3851_v48 = vld [vmem:[%s6605_s1 + $0x60] sm:$0xff]  ;;  %s4165_s27 = sld [smem:[#allocation5]] }
  0x49   :  { %396 = vrot.lane.b32.xlu0 %v373_v57, %s3593_s22  ;;  %394 = vrot.lane.b32.xlu1 %v372_v58, %s3593_s22  ;;  %v565_v13 = vadd.f32 %v557_v59, %v547_v54  ;;  %v593_v14 = vmul.f32 %v3723_v10, %v3813_v63  ;;  %v3819_v15 = vstv %s3062_s2  ;;  %v335_v18 = vadd.f32 %v327_v24, %v317_v31  ;;  %v3859_v54 = vld [vmem:[%s6605_s1 + $0xa0] sm:$0xff]  ;;  %s4070_s2 = sld [smem:[#allocation5 + $0x84]] }
  0x4a   :  { %v488_v20 = vadd.f32 %v3793_v47, %v478_v61  ;;  %v477_v21 = vadd.f32 %v469_v56, %v459_v11  ;;  %v546_v23 = vmul.f32 %v3797_v51, %v3677_v1  ;;  %v556_v25 = vmul.f32 %v3692_v4, %v3803_v55  ;;  %v3864_v56 = vld [vmem:[%s6605_s1 + $0xe0] sm:$0xff]  ;;  %s4174_s28 = sld [smem:[#allocation5 + $0x80]] }
  0x4b   :  { %v583_v26 = vadd.f32 %v575_v62, %v565_v13  ;;  %v353_v28 = vadd.f32 %v345_v32, %v335_v18  ;;  %v574_v29 = vmul.f32 %v3711_v8, %v3809_v60  ;;  %v592_v33 = vmul.f32 %v3740_v17, %v3813_v63  ;;  %v3877_v18 = vld [vmem:[%s6605_s1 + $0x18] sm:$0xff]  ;;  %s4179_s29 = sld [smem:[#allocation5 + $0x100]] }
  0x4c   :  { %v496_v34 = vmax.f32 %v488_v20, 0.0  ;;  %v487_v24 = vadd.f32 %v3793_v47, %v477_v21  ;;  %v564_v31 = vadd.f32 %v556_v25, %v546_v23  ;;  %v422_v35 = vmul.f32 %v3769_v30, %v3682_v2  ;;  %6678 = vst [vmem:[#allocation22_spill] sm:$0xff] %v3877_v18  ;;  %s4188_s4 = sld [smem:[#allocation5 + $0x1]] }
  0x4d   :  { %v601_v37 = vadd.f32 %v593_v14, %v583_v26  ;;  %v363_v39 = vadd.f32 %v3764_v27, %v353_v28  ;;  %v432_v40 = vmul.f32 %v3699_v5, %v3776_v36  ;;  %v450_v32 = vmul.f32 %v3718_v9, %v3780_v38  ;;  %s4190_s13 = sld [smem:[#allocation5 + $0x180]] }
  0x4e   :  { %519 = vrot.lane.b32.xlu0 %v496_v34, %s3594_s25  ;;  %v495_v42 = vmax.f32 %v487_v24, 0.0  ;;  %v582_v43 = vadd.f32 %v574_v29, %v564_v31  ;;  %v468_v45 = vmul.f32 %v3749_v19, %v3789_v44  ;;  %v545_v46 = vmul.f32 %v3797_v51, %v3682_v2  ;;  %v3893_v34 = vld [vmem:[%s6605_s1 + $0x58] sm:$0xff]  ;;  %s4198_s14 = sld [smem:[#allocation5 + $0x81]] }
  0x4f   :  { %v611_v49 = vadd.f32 %v3819_v15, %v601_v37  ;;  %v371_v50 = vmax.f32 %v363_v39, 0.0  ;;  %v440_v52 = vadd.f32 %v432_v40, %v422_v35  ;;  %v555_v53 = vmul.f32 %v3699_v5, %v3803_v55  ;;  %v3898_v24 = vld [vmem:[%s6605_s1 + $0x98] sm:$0xff]  ;;  %s4204_s16 = sld [smem:[#allocation8]] }
  0x50   :  { %v600_v57 = vadd.f32 %v592_v33, %v582_v43  ;;  %v573_v58 = vmul.f32 %v3718_v9, %v3809_v60  ;;  %v591_v59 = vmul.f32 %v3749_v19, %v3813_v63  ;;  %v298_v61 = vmul.f32 %v3706_v7, %v3841_v41  ;;  %v3903_v31 = vld [vmem:[%s6605_s1 + $0xd8] sm:$0xff]  ;;  %s4218_s30 = sld [smem:[#allocation5 + $0x101]] }
  0x51   :  { %v619_v62 = vmax.f32 %v611_v49, 0.0  ;;  %v458_v11 = vadd.f32 %v450_v32, %v440_v52  ;;  %v563_v13 = vadd.f32 %v555_v53, %v545_v46  ;;  %v308_v14 = vmul.f32 %v3851_v48, %v3727_v12  ;;  %s4228_s11 = sld [smem:[#allocation5 + $0x181]] }
  0x52   :  { %517 = vrot.lane.b32.xlu0 %v495_v42, %s3594_s25  ;;  %v610_v20 = vadd.f32 %v3819_v15, %v600_v57  ;;  %v326_v21 = vmul.f32 %v3859_v54, %v3735_v16  ;;  %v344_v23 = vmul.f32 %v3864_v56, %v3755_v22  ;;  %v421_v25 = vmul.f32 %v3769_v30, %v3841_v41  ;;  %s4237_s21 = sld [smem:[#allocation8 + $0x1]] }
  0x53   :  { %642 = vrot.lane.b32.xlu1 %v619_v62, %s3595_s5  ;;  %v476_v26 = vadd.f32 %v468_v45, %v458_v11  ;;  %v581_v28 = vadd.f32 %v573_v58, %v563_v13  ;;  %v316_v29 = vadd.f32 %v308_v14, %v298_v61  ;;  %v431_v33 = vmul.f32 %v3851_v48, %v3776_v36  ;;  %s4284_s18 = sld [smem:[#allocation5 + $0x3]] }
  0x54   :  { %v618_v35 = vmax.f32 %v610_v20, 0.0  ;;  %v449_v37 = vmul.f32 %v3859_v54, %v3780_v38  ;;  %v467_v39 = vmul.f32 %v3864_v56, %v3789_v44  ;;  %v297_v40 = vmul.f32 %v3706_v7, %v3877_v18  ;;  %s4325_s15 = sld [smem:[#allocation5 + $0x9]] }
  0x55   :  { %v486_v32 = vadd.f32 %v3793_v47, %v476_v26  ;;  %v599_v42 = vadd.f32 %v591_v59, %v581_v28  ;;  %v334_v43 = vadd.f32 %v326_v21, %v316_v29  ;;  %v439_v45 = vadd.f32 %v431_v33, %v421_v25  ;;  %v3939_v33 = vld [vmem:[%s6605_s1 + $0x10] sm:$0xff]  ;;  %s4332_s3 = sld [smem:[#allocation5 + $0x89]] }
  0x56   :  { %640 = vrot.lane.b32.xlu0 %v618_v35, %s3595_s5  ;;  %v307_v46 = vmul.f32 %v3893_v34, %v3727_v12  ;;  %v325_v49 = vmul.f32 %v3898_v24, %v3735_v16  ;;  %v343_v52 = vmul.f32 %v3903_v31, %v3755_v22  ;;  %v544_v53 = vmul.f32 %v3797_v51, %v3841_v41  ;;  %s4381_s17 = sld [smem:[#allocation5 + $0x85]] }
  0x57   :  { %392 = vrot.lane.b32.xlu1 %v371_v50, %s3593_s22  ;;  %v494_v57 = vmax.f32 %v486_v32, 0.0  ;;  %v609_v58 = vadd.f32 %v3819_v15, %v599_v42  ;;  %v352_v59 = vadd.f32 %v344_v23, %v334_v43  ;;  %v457_v61 = vadd.f32 %v449_v37, %v439_v45  ;;  %s4416_s19 = sld [smem:[#allocation5 + $0xb]] }
  0x58   :  { %v315_v62 = vadd.f32 %v307_v46, %v297_v40  ;;  %v554_v11 = vmul.f32 %v3851_v48, %v3803_v55  ;;  %v572_v13 = vmul.f32 %v3859_v54, %v3809_v60  ;;  %v590_v14 = vmul.f32 %v3864_v56, %v3813_v63  ;;  %v3952_v46 = vld [vmem:[%s6605_s1 + $0x50] sm:$0xff]  ;;  %s4427_s20 = sld [smem:[#allocation5 + $0x8b]] }
  0x59   :  { %v617_v20 = vmax.f32 %v609_v58, 0.0  ;;  %v362_v21 = vadd.f32 %v3764_v27, %v352_v59  ;;  %v475_v25 = vadd.f32 %v467_v39, %v457_v61  ;;  %v420_v50 = vmul.f32 %v3769_v30, %v3877_v18 }
  0x5a   :  { %v333_v26 = vadd.f32 %v325_v49, %v315_v62  ;;  %v562_v23 = vadd.f32 %v554_v11, %v544_v53  ;;  %v430_v28 = vmul.f32 %v3893_v34, %v3776_v36  ;;  %v448_v29 = vmul.f32 %v3898_v24, %v3780_v38  ;;  %v3957_v49 = vld [vmem:[%s6605_s1 + $0x90] sm:$0xff] }
  0x5b   :  { %515 = vrot.lane.b32.xlu1 %v494_v57, %s3594_s25  ;;  %v370_v35 = vmax.f32 %v362_v21, 0.0  ;;  %v485_v37 = vadd.f32 %v3793_v47, %v475_v25  ;;  %v466_v39 = vmul.f32 %v3903_v31, %v3789_v44  ;;  %v543_v40 = vmul.f32 %v3797_v51, %v3877_v18  ;;  %v3962_v53 = vld [vmem:[%s6605_s1 + $0xd0] sm:$0xff] }
  0x5c   :  { %v351_v32 = vadd.f32 %v343_v52, %v333_v26  ;;  %v580_v42 = vadd.f32 %v572_v13, %v562_v23  ;;  %v438_v43 = vadd.f32 %v430_v28, %v420_v50  ;;  %v553_v45 = vmul.f32 %v3893_v34, %v3803_v55 }
  0x5d   :  { %390 = vrot.lane.b32.xlu0 %v370_v35, %s3593_s22  ;;  %v493_v52 = vmax.f32 %v485_v37, 0.0  ;;  %v571_v57 = vmul.f32 %v3898_v24, %v3809_v60  ;;  %v589_v58 = vmul.f32 %v3903_v31, %v3813_v63  ;;  %v296_v59 = vmul.f32 %v3706_v7, %v3939_v33  ;;  %v3990_v35 = vld [vmem:[%s6605_s1 + $0x48] sm:$0xff] }
  0x5e   :  { %v361_v61 = vadd.f32 %v3764_v27, %v351_v32  ;;  %v598_v62 = vadd.f32 %v590_v14, %v580_v42  ;;  %v456_v11 = vadd.f32 %v448_v29, %v438_v43  ;;  %v561_v13 = vadd.f32 %v553_v45, %v543_v40  ;;  %v3984_v14 = vld [vmem:[%s6605_s1 + $0x8] sm:$0xff] }
  0x5f   :  { %638 = vrot.lane.b32.xlu1 %v617_v20, %s3595_s5  ;;  %v306_v21 = vmul.f32 %v3952_v46, %v3727_v12  ;;  %v324_v25 = vmul.f32 %v3957_v49, %v3735_v16  ;;  %v342_v50 = vmul.f32 %v3962_v53, %v3755_v22  ;;  %v419_v26 = vmul.f32 %v3769_v30, %v3939_v33  ;;  %v3995_v37 = vld [vmem:[%s6605_s1 + $0x88] sm:$0xff] }
  0x60   :  { %6679 = vst [vmem:[#allocation23_spill] sm:$0xff] %v3984_v14  ;;  %v369_v23 = vmax.f32 %v361_v61, 0.0  ;;  %v608_v20 = vadd.f32 %v3819_v15, %v598_v62  ;;  %v474_v28 = vadd.f32 %v466_v39, %v456_v11  ;;  %v579_v29 = vadd.f32 %v571_v57, %v561_v13  ;;  %6680 = vst [vmem:[#allocation24_spill] sm:$0xff] %v3995_v37  ;;  %v4007_v43 = vld [vmem:[%s6605_s1 + $0xc8] sm:$0xff] }
  0x61   :  { %513 = vrot.lane.b32.xlu0 %v493_v52, %s3594_s25  ;;  %v314_v40 = vadd.f32 %v306_v21, %v296_v59  ;;  %v429_v32 = vmul.f32 %v3952_v46, %v3776_v36  ;;  %v447_v39 = vmul.f32 %v3957_v49, %v3780_v38  ;;  %v465_v42 = vmul.f32 %v3962_v53, %v3789_v44 }
  0x62   :  { %6681 = vst [vmem:[#allocation25_spill] sm:$0xff] %v4007_v43  ;;  %v616_v45 = vmax.f32 %v608_v20, 0.0  ;;  %v484_v57 = vadd.f32 %v3793_v47, %v474_v28  ;;  %v597_v61 = vadd.f32 %v589_v58, %v579_v29  ;;  %v295_v52 = vmul.f32 %v3706_v7, %v3984_v14 }
  0x63   :  { %388 = vrot.lane.b32.xlu1 %v369_v23, %s3593_s22  ;;  %v332_v59 = vadd.f32 %v324_v25, %v314_v40  ;;  %v437_v62 = vadd.f32 %v429_v32, %v419_v26  ;;  %v305_v11 = vmul.f32 %v3990_v35, %v3727_v12  ;;  %v323_v13 = vmul.f32 %v3995_v37, %v3735_v16 }
  0x64   :  { %v492_v21 = vmax.f32 %v484_v57, 0.0  ;;  %v607_v18 = vadd.f32 %v3819_v15, %v597_v61  ;;  %v341_v20 = vmul.f32 %v4007_v43, %v3755_v22  ;;  %v542_v58 = vmul.f32 %v3797_v51, %v3939_v33 }
  0x65   :  { %636 = vrot.lane.b32.xlu0 %v616_v45, %s3595_s5  ;;  %v350_v23 = vadd.f32 %v342_v50, %v332_v59  ;;  %v455_v25 = vadd.f32 %v447_v39, %v437_v62  ;;  %v313_v26 = vadd.f32 %v305_v11, %v295_v52  ;;  %v552_v28 = vmul.f32 %v3952_v46, %v3803_v55  ;;  %v4044_v11 = vld [vmem:[%s6605_s1] sm:$0xff] }
  0x66   :  { %v615_v29 = vmax.f32 %v607_v18, 0.0  ;;  %v570_v40 = vmul.f32 %v3957_v49, %v3809_v60  ;;  %v588_v32 = vmul.f32 %v3962_v53, %v3813_v63  ;;  %v418_v57 = vmul.f32 %v3769_v30, %v3984_v14 }
  0x67   :  { %511 = vrot.lane.b32.xlu1 %v492_v21, %s3594_s25  ;;  %v360_v45 = vadd.f32 %v3764_v27, %v350_v23  ;;  %v473_v50 = vadd.f32 %v465_v42, %v455_v25  ;;  %v331_v39 = vadd.f32 %v323_v13, %v313_v26  ;;  %v560_v61 = vadd.f32 %v552_v28, %v542_v58  ;;  %v4050_v23 = vld [vmem:[%s6605_s1 + $0x40] sm:$0xff] }
  0x68   :  { %v428_v52 = vmul.f32 %v3990_v35, %v3776_v36  ;;  %v446_v18 = vmul.f32 %v3995_v37, %v3780_v38  ;;  %v464_v59 = vmul.f32 %v4007_v43, %v3789_v44  ;;  %v541_v62 = vmul.f32 %v3797_v51, %v3984_v14  ;;  %v4055_v25 = vld [vmem:[%s6605_s1 + $0x80] sm:$0xff] }
  0x69   :  { %v368_v42 = vmax.f32 %v360_v45, 0.0  ;;  %v483_v13 = vadd.f32 %v3793_v47, %v473_v50  ;;  %v349_v21 = vadd.f32 %v341_v20, %v331_v39  ;;  %v578_v58 = vadd.f32 %v570_v40, %v560_v61  ;;  %v4068_v45 = vld [vmem:[%s6605_s1 + $0xc0] sm:$0xff] }
  0x6a   :  { %v436_v26 = vadd.f32 %v428_v52, %v418_v57  ;;  %v551_v28 = vmul.f32 %v3990_v35, %v3803_v55  ;;  %v569_v20 = vmul.f32 %v3995_v37, %v3809_v60  ;;  %v587_v40 = vmul.f32 %v4007_v43, %v3813_v63 }
  0x6b   :  { %634 = vrot.lane.b32.xlu1 %v615_v29, %s3595_s5  ;;  %386 = vrot.lane.b32.xlu0 %v368_v42, %s3593_s22  ;;  %v491_v57 = vmax.f32 %v483_v13, 0.0  ;;  %v359_v50 = vadd.f32 %v3764_v27, %v349_v21  ;;  %v596_v39 = vadd.f32 %v588_v32, %v578_v58  ;;  %v294_v61 = vmul.f32 %v3706_v7, %v4044_v11 }
  0x6c   :  { %v454_v52 = vadd.f32 %v446_v18, %v436_v26  ;;  %v559_v14 = vadd.f32 %v551_v28, %v541_v62  ;;  %v304_v43 = vmul.f32 %v4050_v23, %v3727_v12  ;;  %v322_v37 = vmul.f32 %v4055_v25, %v3735_v16 }
  0x6d   :  { %v367_v29 = vmax.f32 %v359_v50, 0.0  ;;  %v606_v42 = vadd.f32 %v3819_v15, %v596_v39  ;;  %v340_v13 = vmul.f32 %v4068_v45, %v3755_v22  ;;  %v417_v32 = vmul.f32 %v3769_v30, %v4044_v11 }
  0x6e   :  { %v472_v7 = vadd.f32 %v464_v59, %v454_v52  ;;  %v577_v18 = vadd.f32 %v569_v20, %v559_v14  ;;  %v312_v62 = vadd.f32 %v304_v43, %v294_v61  ;;  %v427_v12 = vmul.f32 %v4050_v23, %v3776_v36 }
  0x6f   :  { %509 = vrot.lane.b32.xlu0 %v491_v57, %s3594_s25  ;;  %384 = vrot.lane.b32.xlu1 %v367_v29, %s3593_s22  ;;  %v614_v16 = vmax.f32 %v606_v42, 0.0  ;;  %v445_v21 = vmul.f32 %v4055_v25, %v3780_v38  ;;  %v463_v22 = vmul.f32 %v4068_v45, %v3789_v44  ;;  %v540_v30 = vmul.f32 %v3797_v51, %v4044_v11 }
  0x70   :  { %v482_v14 = vadd.f32 %v3793_v47, %v472_v7  ;;  %v595_v36 = vadd.f32 %v587_v40, %v577_v18  ;;  %v330_v43 = vadd.f32 %v322_v37, %v312_v62  ;;  %v435_v59 = vadd.f32 %v427_v12, %v417_v32 }
  0x71   :  { %v550_v58 = vmul.f32 %v4050_v23, %v3803_v55  ;;  %v568_v38 = vmul.f32 %v4055_v25, %v3809_v60  ;;  %v586_v44 = vmul.f32 %v4068_v45, %v3813_v63  ;;  %v4112_v40 = vstv %s4057_s12  ;;  %s4307_s12 = sld [smem:[#allocation5 + $0x103]] }
  0x72   :  { %v490_v26 = vmax.f32 %v482_v14, 0.0  ;;  %v605_v51 = vadd.f32 %v3819_v15, %v595_v36  ;;  %v348_v28 = vadd.f32 %v340_v13, %v330_v43  ;;  %v453_v20 = vadd.f32 %v445_v21, %v435_v59 }
  0x73   :  { %632 = vrot.lane.b32.xlu0 %v614_v16, %s3595_s5  ;;  %v558_v37 = vadd.f32 %v550_v58, %v540_v30  ;;  %v4115_v57 = vstv %s4070_s2  ;;  %v4118_v55 = vstv %s4077_s23  ;;  %v4127_v29 = vstv %s4088_s24  ;;  %v6682_v58 = vld [vmem:[#allocation22_spill] sm:$0xff]  ;;  %s4250_s23 = sld [smem:[#allocation5 + $0x2]] }
  0x74   :  { %507 = vrot.lane.b32.xlu1 %v490_v26, %s3594_s25  ;;  %v613_v60 = vmax.f32 %v605_v51, 0.0  ;;  %v358_v63 = vadd.f32 %v3764_v27, %v348_v28  ;;  %v471_v50 = vadd.f32 %v463_v22, %v453_v20  ;;  %v220_v39 = vmul.f32 %v3687_v3, %v4115_v57  ;;  %s4255_s24 = sld [smem:[#allocation5 + $0x82]] }
  0x75   :  { %v576_v61 = vadd.f32 %v568_v38, %v558_v37  ;;  %v238_v52 = vmul.f32 %v3704_v6, %v4118_v55  ;;  %v210_v32 = vmul.f32 %v4112_v40, %v3670_v0  ;;  %v219_v27 = vmul.f32 %v3692_v4, %v4115_v57  ;;  %s4335_s2 = sld [smem:[#allocation5 + $0x109]] }
  0x76   :  { %v366_v42 = vmax.f32 %v358_v63, 0.0  ;;  %v481_v13 = vadd.f32 %v3793_v47, %v471_v50  ;;  %v237_v3 = vmul.f32 %v3711_v8, %v4118_v55  ;;  %v209_v18 = vmul.f32 %v4112_v40, %v3677_v1 }
  0x77   :  { %v594_v7 = vadd.f32 %v586_v44, %v576_v61  ;;  %v256_v47 = vmul.f32 %v3723_v10, %v4127_v29  ;;  %v4143_v0 = vstv %s4101_s26  ;;  %v228_v62 = vadd.f32 %v220_v39, %v210_v32  ;;  %v6684_v61 = vld [vmem:[#allocation25_spill] sm:$0xff]  ;;  %s4258_s26 = sld [smem:[#allocation5 + $0x102]] }
  0x78   :  { %630 = vrot.lane.b32.xlu1 %v613_v60, %s3595_s5  ;;  %382 = vrot.lane.b32.xlu0 %v366_v42, %s3593_s22  ;;  %v489_v6 = vmax.f32 %v481_v13, 0.0  ;;  %v255_v12 = vmul.f32 %v3740_v17, %v4127_v29  ;;  %v227_v8 = vadd.f32 %v219_v27, %v209_v18  ;;  %v218_v1 = vmul.f32 %v3699_v5, %v4115_v57  ;;  %v6685_v42 = vld [vmem:[#allocation23_spill] sm:$0xff] }
  0x79   :  { %v604_v4 = vadd.f32 %v3819_v15, %v594_v7  ;;  %v246_v16 = vadd.f32 %v238_v52, %v228_v62  ;;  %v236_v21 = vmul.f32 %v3718_v9, %v4118_v55  ;;  %v254_v22 = vmul.f32 %v3749_v19, %v4127_v29  ;;  %v4216_v7 = vld [vmem:[%s6604_s0] sm:$0xf] }
  0x7a   :  { %v208_v10 = vmul.f32 %v4112_v40, %v3682_v2  ;;  %v245_v14 = vadd.f32 %v237_v3, %v227_v8  ;;  %v217_v15 = vmul.f32 %v3851_v48, %v4115_v57  ;;  %v235_v17 = vmul.f32 %v3859_v54, %v4118_v55 }
  0x7b   :  { %v612_v30 = vmax.f32 %v604_v4, 0.0  ;;  %v264_v5 = vadd.f32 %v256_v47, %v246_v16  ;;  %v253_v9 = vmul.f32 %v3864_v56, %v4127_v29  ;;  %v207_v19 = vmul.f32 %v4112_v40, %v3841_v41 }
  0x7c   :  { %505 = vrot.lane.b32.xlu0 %v489_v6, %s3594_s25  ;;  %v226_v36 = vadd.f32 %v218_v1, %v208_v10  ;;  %v263_v2 = vadd.f32 %v255_v12, %v245_v14  ;;  %v216_v48 = vmul.f32 %v3893_v34, %v4115_v57  ;;  %v234_v54 = vmul.f32 %v3898_v24, %v4118_v55 }
  0x7d   :  { %628 = vrot.lane.b32.xlu1 %v612_v30, %s3595_s5  ;;  %v252_v43 = vmul.f32 %v3903_v31, %v4127_v29  ;;  %v274_v56 = vadd.f32 %v4143_v0, %v264_v5  ;;  %v225_v41 = vadd.f32 %v217_v15, %v207_v19  ;;  %v206_v38 = vmul.f32 %v4112_v40, %v6682_v58  ;;  %v4247_v30 = vld [vmem:[%s6604_s0 + $0xc] sm:$0xf] }
  0x7e   :  { %v244_v59 = vadd.f32 %v236_v21, %v226_v36  ;;  %v273_v44 = vadd.f32 %v4143_v0, %v263_v2  ;;  %v215_v34 = vmul.f32 %v3952_v46, %v4115_v57  ;;  %v233_v24 = vmul.f32 %v3957_v49, %v4118_v55  ;;  %v6683_v49 = vld [vmem:[#allocation24_spill] sm:$0xff] }
  0x7f   :  { %v251_v31 = vmul.f32 %v3962_v53, %v4127_v29  ;;  %v282_v26 = vmax.f32 %v274_v56, 0.0  ;;  %v243_v28 = vadd.f32 %v235_v17, %v225_v41  ;;  %v224_v20 = vadd.f32 %v216_v48, %v206_v38 }
  0x80   :  { %v262_v51 = vadd.f32 %v254_v22, %v244_v59  ;;  %v281_v37 = vmax.f32 %v273_v44, 0.0  ;;  %v205_v60 = vmul.f32 %v4112_v40, %v3939_v33  ;;  %v214_v46 = vmul.f32 %v3990_v35, %v4115_v57  ;;  %v4272_v44 = vld [vmem:[%s6604_s0 + $0x10] sm:$0xf] }
  0x81   :  { %v232_v63 = vmul.f32 %v6683_v49, %v4118_v55  ;;  %291 = vst.msk [vmem:[#allocation3 + $0x38] sm:$0xff] %vm283_vm0, %v282_v26  ;;  %v261_v50 = vadd.f32 %v253_v9, %v243_v28  ;;  %v242_v39 = vadd.f32 %v234_v54, %v224_v20  ;;  %v250_v52 = vmul.f32 %v6684_v61, %v4127_v29 }
  0x82   :  { %v272_v53 = vadd.f32 %v4143_v0, %v262_v51  ;;  %290 = vst.msk [vmem:[#allocation3 + $0x30] sm:$0xff] %vm283_vm0, %v281_v37  ;;  %v223_v33 = vadd.f32 %v215_v34, %v205_v60  ;;  %v204_v13 = vmul.f32 %v4112_v40, %v6685_v42  ;;  %v213_v32 = vmul.f32 %v4050_v23, %v4115_v57  ;;  %v4226_v57 = vld [vmem:[%s6604_s0 + $0x4] sm:$0xf]  ;;  %v4282_v51 = vld [vmem:[%s6604_s0 + $0x14] sm:$0xf] }
  0x83   :  { %v231_v27 = vmul.f32 %v4055_v25, %v4118_v55  ;;  %v271_v18 = vadd.f32 %v4143_v0, %v261_v50  ;;  %v260_v6 = vadd.f32 %v252_v43, %v242_v39  ;;  %v249_v47 = vmul.f32 %v4068_v45, %v4127_v29 }
  0x84   :  { %v280_v3 = vmax.f32 %v272_v53, 0.0  ;;  %v241_v55 = vadd.f32 %v233_v24, %v223_v33  ;;  %v222_v62 = vadd.f32 %v214_v46, %v204_v13  ;;  %v203_v4 = vmul.f32 %v4112_v40, %v4044_v11  ;;  %v4242_v40 = vld [vmem:[%s6604_s0 + $0x8] sm:$0xf]  ;;  %v4293_v46 = vld [vmem:[%s6604_s0 + $0x18] sm:$0xf] }
  0x85   :  { %v121_v12 = vstv %s4165_s27  ;;  %v279_v8 = vmax.f32 %v271_v18, 0.0  ;;  %v270_v29 = vadd.f32 %v4143_v0, %v260_v6  ;;  %v124_v16 = vstv %s4174_s28  ;;  %s4265_s27 = sld [smem:[#allocation5 + $0x182]] }
  0x86   :  { %289 = vst.msk [vmem:[#allocation3 + $0x28] sm:$0xff] %vm283_vm0, %v280_v3  ;;  %v122_v1 = vmul.f32 %v121_v12, %v4216_v7  ;;  %v259_v21 = vadd.f32 %v251_v31, %v241_v55  ;;  %v240_v22 = vadd.f32 %v232_v63, %v222_v62  ;;  %v221_v10 = vadd.f32 %v213_v32, %v203_v4  ;;  %v4298_v63 = vld [vmem:[%s6604_s0 + $0x1c] sm:$0xf]  ;;  %s4314_s0 = sld [smem:[#allocation5 + $0x183]] }
  0x87   :  { %v125_v14 = vmul.f32 %v4226_v57, %v124_v16  ;;  %288 = vst.msk [vmem:[#allocation3 + $0x20] sm:$0xff] %vm283_vm0, %v279_v8  ;;  %v278_v15 = vmax.f32 %v270_v29, 0.0  ;;  %v128_v17 = vstv %s4179_s29  ;;  %v132_v5 = vstv %s4190_s13  ;;  %s4274_s13 = sld [smem:[#allocation8 + $0x2]] }
  0x88   :  { %v269_v36 = vadd.f32 %v4143_v0, %v259_v21  ;;  %v258_v9 = vadd.f32 %v250_v52, %v240_v22  ;;  %v239_v19 = vadd.f32 %v231_v27, %v221_v10  ;;  %v129_v48 = vmul.f32 %v4242_v40, %v128_v17  ;;  %s4364_s28 = sld [smem:[#allocation5 + $0x18a]] }
  0x89   :  { %v126_v2 = vadd.f32 %v125_v14, %v122_v1  ;;  %287 = vst.msk [vmem:[#allocation3 + $0x18] sm:$0xff] %vm283_vm0, %v278_v15  ;;  %v133_v54 = vmul.f32 %v4247_v30, %v132_v5  ;;  %v136_v43 = vstv %s4204_s16  ;;  %v142_v56 = vstv %s4188_s4  ;;  %s4355_s16 = sld [smem:[#allocation5 + $0x8a]] }
  0x8a   :  { %v277_v59 = vmax.f32 %v269_v36, 0.0  ;;  %v268_v41 = vadd.f32 %v4143_v0, %v258_v9  ;;  %v257_v58 = vadd.f32 %v249_v47, %v239_v19  ;;  %v143_v38 = vmul.f32 %v142_v56, %v4216_v7  ;;  %s4370_s29 = sld [smem:[#allocation8 + $0xa]] }
  0x8b   :  { %v130_v34 = vadd.f32 %v129_v48, %v126_v2  ;;  %v145_v24 = vstv %s4198_s14  ;;  %v149_v31 = vstv %s4218_s30  ;;  %v153_v26 = vstv %s4228_s11  ;;  %s4302_s11 = sld [smem:[#allocation5 + $0x83]] }
  0x8c   :  { %286 = vst.msk [vmem:[#allocation3 + $0x10] sm:$0xff] %vm283_vm0, %v277_v59  ;;  %v276_v28 = vmax.f32 %v268_v41, 0.0  ;;  %v267_v20 = vadd.f32 %v4143_v0, %v257_v58  ;;  %v146_v37 = vmul.f32 %v4226_v57, %v145_v24  ;;  %v150_v60 = vmul.f32 %v4242_v40, %v149_v31  ;;  %s4377_s4 = sld [smem:[#allocation5 + $0x5]] }
  0x8d   :  { %v134_v53 = vadd.f32 %v133_v54, %v130_v34  ;;  %v154_v50 = vmul.f32 %v4247_v30, %v153_v26  ;;  %v157_v0 = vstv %s4237_s21  ;;  %v1555_v33 = vmul.f32 %v4272_v44, %v121_v12  ;;  %s4322_s21 = sld [smem:[#allocation8 + $0x3]] }
  0x8e   :  { %285 = vst.msk [vmem:[#allocation3 + $0x8] sm:$0xff] %vm283_vm0, %v276_v28  ;;  %v275_v39 = vmax.f32 %v267_v20, 0.0  ;;  %v147_v52 = vadd.f32 %v146_v37, %v143_v38  ;;  %v1558_v13 = vmul.f32 %v4282_v51, %v124_v16  ;;  %v1562_v27 = vmul.f32 %v4293_v46, %v128_v17  ;;  %s4399_s14 = sld [smem:[#allocation5 + $0x185]] }
  0x8f   :  { %v137_v32 = vadd.f32 %v136_v43, %v134_v53  ;;  %v1566_v3 = vmul.f32 %v4298_v63, %v132_v5  ;;  %v1575_v18 = vmul.f32 %v4272_v44, %v142_v56  ;;  %v1578_v55 = vmul.f32 %v4282_v51, %v145_v24  ;;  %s4412_s30 = sld [smem:[#allocation8 + $0x5]] }
  0x90   :  { %284 = vst.msk [vmem:[#allocation3] sm:$0xff] %vm283_vm0, %v275_v39  ;;  %v151_v6 = vadd.f32 %v150_v60, %v147_v52  ;;  %v1559_v47 = vadd.f32 %v1558_v13, %v1555_v33  ;;  %v1582_v62 = vmul.f32 %v4293_v46, %v149_v31  ;;  %v1586_v12 = vmul.f32 %v4298_v63, %v153_v26 }
  0x91   :  { %v138_v4 = vmax.f32 %v137_v32, 0.0  ;;  %v162_v8 = vstv %s4250_s23  ;;  %v165_v29 = vstv %s4255_s24  ;;  %v1579_v21 = vadd.f32 %v1578_v55, %v1575_v18  ;;  %s4340_s23 = sld [smem:[#allocation5 + $0x189]] }
  0x92   :  { %v155_v1 = vadd.f32 %v154_v50, %v151_v6  ;;  %v1563_v16 = vadd.f32 %v1562_v27, %v1559_v47  ;;  %v163_v22 = vmul.f32 %v162_v8, %v4216_v7  ;;  %v166_v10 = vmul.f32 %v4226_v57, %v165_v29  ;;  %s4345_s24 = sld [smem:[#allocation8 + $0x9]] }
  0x93   :  { %140 = vst.msk [vmem:[#allocation2] sm:$0xf] %vm139_vm1, %v138_v4  ;;  %v169_v14 = vstv %s4258_s26  ;;  %v173_v15 = vstv %s4265_s27  ;;  %v177_v17 = vstv %s4274_s13  ;;  %v1583_v9 = vadd.f32 %v1582_v62, %v1579_v21  ;;  %s4350_s26 = sld [smem:[#allocation5 + $0xa]] }
  0x94   :  { %v158_v5 = vadd.f32 %v157_v0, %v155_v1  ;;  %v1567_v36 = vadd.f32 %v1566_v3, %v1563_v16  ;;  %v170_v19 = vmul.f32 %v4242_v40, %v169_v14  ;;  %v167_v2 = vadd.f32 %v166_v10, %v163_v22  ;;  %s4359_s27 = sld [smem:[#allocation5 + $0x10a]] }
  0x95   :  { %v174_v48 = vmul.f32 %v4247_v30, %v173_v15  ;;  %v182_v54 = vstv %s4284_s18  ;;  %v185_v56 = vstv %s4302_s11  ;;  %v1587_v58 = vadd.f32 %v1586_v12, %v1583_v9  ;;  %s4392_s18 = sld [smem:[#allocation5 + $0x105]] }
  0x96   :  { %v159_v59 = vmax.f32 %v158_v5, 0.0  ;;  %v1570_v41 = vadd.f32 %v1567_v36, %v136_v43  ;;  %v183_v38 = vmul.f32 %v182_v54, %v4216_v7  ;;  %v171_v34 = vadd.f32 %v170_v19, %v167_v2  ;;  %s4432_s13 = sld [smem:[#allocation5 + $0x10b]] }
  0x97   :  { %v186_v24 = vmul.f32 %v4226_v57, %v185_v56  ;;  %v189_v31 = vstv %s4307_s12  ;;  %v193_v26 = vstv %s4314_s0  ;;  %v1590_v20 = vadd.f32 %v1587_v58, %v157_v0  ;;  %s4448_s0 = sld [smem:[#allocation5 + $0x18b]] }
  0x98   :  { %160 = vst.msk [vmem:[#allocation2 + $0x4] sm:$0xf] %vm139_vm1, %v159_v59  ;;  %v1571_v28 = vmax.f32 %v1570_v41, 0.0  ;;  %v190_v43 = vmul.f32 %v4242_v40, %v189_v31  ;;  %v194_v37 = vmul.f32 %v4247_v30, %v193_v26  ;;  %v175_v7 = vadd.f32 %v174_v48, %v171_v34  ;;  %s3194_s11 = sld [smem:[#allocation8 + $0x9]] }
  0x99   :  { %v187_v60 = vadd.f32 %v186_v24, %v183_v38  ;;  %v197_v53 = vstv %s4322_s21  ;;  %v1595_v57 = vmul.f32 %v4272_v44, %v162_v8  ;;  %v1591_v50 = vmax.f32 %v1590_v20, 0.0  ;;  %v4446_v24 = vld [vmem:[%s6605_s1 + $0x138] sm:$0xff]  ;;  %s4452_s21 = sld [smem:[#allocation8 + $0xb]] }
  0x9a   :  { %v1598_v39 = vmul.f32 %v4282_v51, %v165_v29  ;;  %v1602_v52 = vmul.f32 %v4293_v46, %v169_v14  ;;  %v1606_v0 = vmul.f32 %v4298_v63, %v173_v15  ;;  %v178_v40 = vadd.f32 %v177_v17, %v175_v7  ;;  %s3195_s12 = sld [smem:[#allocation5 + $0xa]] }
  0x9b   :  { %v191_v30 = vadd.f32 %v190_v43, %v187_v60  ;;  %v1615_v33 = vmul.f32 %v4272_v44, %v182_v54  ;;  %v1618_v13 = vmul.f32 %v4282_v51, %v185_v56  ;;  %v1622_v27 = vmul.f32 %v4293_v46, %v189_v31  ;;  %v4464_v60 = vld [vmem:[%s6605_s1 + $0x178] sm:$0xff] }
  0x9c   :  { %v1599_v32 = vadd.f32 %v1598_v39, %v1595_v57  ;;  %v1626_v3 = vmul.f32 %v4298_v63, %v193_v26  ;;  %v4375_v18 = vstv %s4325_s15  ;;  %v179_v6 = vmax.f32 %v178_v40, 0.0  ;;  %s5811_s15 = sld [smem:[#allocation5 + $0x8a]] }
  0x9d   :  { %6686 = vst [vmem:[#allocation22_spill] sm:$0xff] %v4375_v18  ;;  %v195_v47 = vadd.f32 %v194_v37, %v191_v30  ;;  %v1619_v55 = vadd.f32 %v1618_v13, %v1615_v33  ;;  %v753_v44 = vmul.f32 %v4375_v18, %v4044_v11  ;;  %v4384_v62 = vstv %s4332_s3  ;;  %s5819_s3 = sld [smem:[#allocation5 + $0x10a]] }
  0x9e   :  { %v1603_v51 = vadd.f32 %v1602_v52, %v1599_v32  ;;  %6687 = vst [vmem:[#allocation24_spill] sm:$0xff] %v4384_v62  ;;  %v4387_v4 = vstv %s4335_s2  ;;  %v4390_v46 = vstv %s4340_s23  ;;  %180 = vst.msk [vmem:[#allocation2 + $0x8] sm:$0xf] %vm139_vm1, %v179_v6  ;;  %v763_v29 = vmul.f32 %v4050_v23, %v4384_v62  ;;  %s4469_s2 = sld [smem:[#allocation5 + $0x6]]  ;;  %v4475_v52 = vld [vmem:[%s6605_s1 + $0x1b8] sm:$0xff] }
  0x9f   :  { %6688 = vst [vmem:[#allocation25_spill] sm:$0xff] %v4387_v4  ;;  %6689 = vst [vmem:[#allocation23_spill] sm:$0xff] %v4390_v46  ;;  %v1117_v63 = vld [vmem:[#allocation2] sm:$0xff]  ;;  %v198_v12 = vadd.f32 %v197_v53, %v195_v47  ;;  %v1623_v8 = vadd.f32 %v1622_v27, %v1619_v55  ;;  %v781_v1 = vmul.f32 %v4055_v25, %v4387_v4  ;;  %v4408_v22 = vstv %s4345_s24  ;;  %s4778_s24 = sld [smem:[#allocation5 + $0x8]] }
  0xa0   :  { %1136 = vst.msk [vmem:[#allocation14] sm:$0xff] %vm1135_vm2, %v1117_v63  ;;  %3305 = vmatprep.mubr.msk.f32.mxu0 %vm1135_vm2, %v1117_v63  ;;  %v1607_v16 = vadd.f32 %v1606_v0, %v1603_v51  ;;  %v799_v21 = vmul.f32 %v4068_v45, %v4390_v46  ;;  %v754_v10 = vmul.f32 %v4375_v18, %v6685_v42  ;;  %v4425_v48 = vstv %s4350_s26  ;;  %v4480_v0 = vld [vmem:[%s6605_s1 + $0x1f8] sm:$0xff]  ;;  %s5037_s26 = sld [smem:[#allocation5 + $0x188]] }
  0xa1   :  { %1572 = vst.msk [vmem:[#allocation2] sm:$0xf] %vm139_vm1, %v1571_v28  ;;  %1592 = vst.msk [vmem:[#allocation2 + $0x4] sm:$0xf] %vm139_vm1, %v1591_v50  ;;  %v199_v14 = vmax.f32 %v198_v12, 0.0  ;;  %v1627_v15 = vadd.f32 %v1626_v3, %v1623_v8  ;;  %v771_v5 = vadd.f32 %v763_v29, %v753_v44  ;;  %v764_v36 = vmul.f32 %v3990_v35, %v4384_v62  ;;  %s3187_s23 = sld [smem:[#allocation5 + $0x108]] }
  0xa2   :  { %v1610_v9 = vadd.f32 %v1607_v16, %v177_v17  ;;  %v782_v19 = vmul.f32 %v6683_v49, %v4387_v4  ;;  %v800_v2 = vmul.f32 %v6684_v61, %v4390_v46  ;;  %v875_v41 = vmul.f32 %v4425_v48, %v4044_v11 }
  0xa3   :  { %200 = vst.msk [vmem:[#allocation2 + $0xc] sm:$0xf] %vm139_vm1, %v199_v14  ;;  %v1630_v54 = vadd.f32 %v1627_v15, %v197_v53  ;;  %v789_v56 = vadd.f32 %v781_v1, %v771_v5  ;;  %v772_v59 = vadd.f32 %v764_v36, %v754_v10  ;;  %v4435_v58 = vstv %s4355_s16  ;;  %s5849_s16 = sld [smem:[#allocation8 + $0xa]] }
  0xa4   :  { %v1611_v17 = vmax.f32 %v1610_v9, 0.0  ;;  %v4438_v38 = vstv %s4359_s27  ;;  %v4441_v34 = vstv %s4364_s28  ;;  %v885_v20 = vmul.f32 %v4050_v23, %v4435_v58  ;;  %s4484_s27 = sld [smem:[#allocation5 + $0x86]] }
  0xa5   :  { %v1631_v31 = vmax.f32 %v1630_v54, 0.0  ;;  %v807_v26 = vadd.f32 %v799_v21, %v789_v56  ;;  %v790_v28 = vadd.f32 %v782_v19, %v772_v59  ;;  %v903_v43 = vmul.f32 %v4055_v25, %v4438_v38  ;;  %s4498_s28 = sld [smem:[#allocation5 + $0x106]] }
  0xa6   :  { %v921_v37 = vmul.f32 %v4068_v45, %v4441_v34  ;;  %v4459_v7 = vstv %s4370_s29  ;;  %v4467_v53 = vstv %s4377_s4  ;;  %v893_v39 = vadd.f32 %v885_v20, %v875_v41  ;;  %s4503_s29 = sld [smem:[#allocation5 + $0x186]] }
  0xa7   :  { %v817_v57 = vadd.f32 %v4408_v22, %v807_v26  ;;  %v808_v50 = vadd.f32 %v800_v2, %v790_v28  ;;  %v1732_v40 = vmul.f32 %v4446_v24, %v4467_v53  ;;  %v4487_v30 = vstv %s4381_s17  ;;  %s4515_s4 = sld [smem:[#allocation8 + $0x6]] }
  0xa8   :  { %v4490_v33 = vstv %s4392_s18  ;;  %v4493_v13 = vstv %s4399_s14  ;;  %v4496_v32 = vstv %s4412_s30  ;;  %v911_v6 = vadd.f32 %v903_v43, %v893_v39  ;;  %s4547_s17 = sld [smem:[#allocation5 + $0x7]] }
  0xa9   :  { %v825_v27 = vmax.f32 %v817_v57, 0.0  ;;  %v818_v3 = vadd.f32 %v4408_v22, %v808_v50  ;;  %v1742_v47 = vmul.f32 %v4464_v60, %v4487_v30  ;;  %v1760_v44 = vmul.f32 %v4475_v52, %v4490_v33  ;;  %s4551_s18 = sld [smem:[#allocation5 + $0x87]] }
  0xaa   :  { %v4505_v55 = vld [vmem:[#allocation2 + $0x8] sm:$0xff]  ;;  %v1778_v51 = vmul.f32 %v4480_v0, %v4493_v13  ;;  %v876_v63 = vmul.f32 %v4425_v48, %v6685_v42  ;;  %v886_v12 = vmul.f32 %v3990_v35, %v4435_v58  ;;  %v929_v29 = vadd.f32 %v921_v37, %v911_v6  ;;  %s4561_s14 = sld [smem:[#allocation5 + $0x107]] }
  0xab   :  { %6690 = vst [vmem:[#allocation26_spill] sm:$0xff] %v4505_v55  ;;  %1137 = vst.msk [vmem:[#allocation14 + $0x8] sm:$0xff] %vm1135_vm2, %v4505_v55  ;;  %841 = vrot.lane.b32.xlu0 %v825_v27, %s3593_s22  ;;  %v826_v8 = vmax.f32 %v818_v3, 0.0  ;;  %v1750_v1 = vadd.f32 %v1742_v47, %v1732_v40  ;;  %v904_v16 = vmul.f32 %v6683_v49, %v4438_v38  ;;  %v4527_v14 = vstv %s4416_s19  ;;  %s4569_s30 = sld [smem:[#allocation5 + $0x187]] }
  0xac   :  { %1612 = vst.msk [vmem:[#allocation2 + $0x8] sm:$0xf] %vm139_vm1, %v1611_v17  ;;  %1632 = vst.msk [vmem:[#allocation2 + $0xc] sm:$0xf] %vm139_vm1, %v1631_v31  ;;  %v894_v21 = vadd.f32 %v886_v12, %v876_v63  ;;  %v922_v10 = vmul.f32 %v6684_v61, %v4441_v34  ;;  %v4530_v15 = vstv %s4427_s20  ;;  %v939_v5 = vadd.f32 %v4459_v7, %v929_v29  ;;  %v4596_v63 = vld [vmem:[%s6605_s1 + $0x1b0] sm:$0xff]  ;;  %s5108_s20 = sld [smem:[#allocation8 + $0x8]] }
  0xad   :  { %843 = vrot.lane.b32.xlu1 %v826_v8, %s3593_s22  ;;  %v1768_v36 = vadd.f32 %v1760_v44, %v1750_v1  ;;  %v997_v9 = vmul.f32 %v4527_v14, %v4044_v11  ;;  %v1007_v19 = vmul.f32 %v4050_v23, %v4530_v15  ;;  %v4539_v54 = vstv %s4432_s13  ;;  %v4586_v44 = vld [vmem:[%s6605_s1 + $0x130] sm:$0xff]  ;;  %s4853_s13 = sld [smem:[#allocation5 + $0x88]] }
  0xae   :  { %v912_v2 = vadd.f32 %v904_v16, %v894_v21  ;;  %v4542_v56 = vstv %s4448_s0  ;;  %v4545_v59 = vstv %s4452_s21  ;;  %v947_v41 = vmax.f32 %v939_v5, 0.0  ;;  %s4598_s21 = sld [smem:[#allocation8 + $0x7]]  ;;  %v4609_v16 = vld [vmem:[%s6605_s1 + $0x1f0] sm:$0xff] }
  0xaf   :  { %v1786_v17 = vadd.f32 %v1778_v51, %v1768_v36  ;;  %v1015_v31 = vadd.f32 %v1007_v19, %v997_v9  ;;  %v1025_v11 = vmul.f32 %v4055_v25, %v4539_v54  ;;  %v1043_v26 = vmul.f32 %v4068_v45, %v4542_v56  ;;  %v4591_v51 = vld [vmem:[%s6605_s1 + $0x170] sm:$0xff]  ;;  %s3190_s19 = sld [smem:[#allocation5 + $0x9]] }
  0xb0   :  { %v930_v23 = vadd.f32 %v922_v10, %v912_v2  ;;  %v4556_v28 = vstv %s4469_s2  ;;  %v4559_v20 = vstv %s4484_s27  ;;  %963 = vrot.lane.b32.xlu0 %v947_v41, %s3594_s25  ;;  %v4573_v50 = vstv %s4498_s28  ;;  %s5400_s27 = sld [smem:[#allocation8 + $0x4]] }
  0xb1   :  { %v1796_v43 = vadd.f32 %v4496_v32, %v1786_v17  ;;  %v1033_v25 = vadd.f32 %v1025_v11, %v1015_v31  ;;  %v1854_v37 = vmul.f32 %v4446_v24, %v4556_v28  ;;  %v1864_v57 = vmul.f32 %v4464_v60, %v4559_v20  ;;  %s3189_s28 = sld [smem:[#allocation8 + $0x8]] }
  0xb2   :  { %v940_v45 = vadd.f32 %v4459_v7, %v930_v23  ;;  %v4576_v39 = vstv %s4503_s29  ;;  %v4579_v40 = vstv %s4515_s4  ;;  %v1882_v47 = vmul.f32 %v4475_v52, %v4573_v50  ;;  %s5334_s29 = sld [smem:[#allocation5 + $0x4]] }
  0xb3   :  { %v1804_v27 = vmax.f32 %v1796_v43, 0.0  ;;  %v1051_v3 = vadd.f32 %v1043_v26, %v1033_v25  ;;  %v1872_v6 = vadd.f32 %v1864_v57, %v1854_v37  ;;  %v1900_v8 = vmul.f32 %v4480_v0, %v4576_v39  ;;  %s5337_s4 = sld [smem:[#allocation5 + $0x84]] }
  0xb4   :  { %v948_v12 = vmax.f32 %v940_v45, 0.0  ;;  %v998_v29 = vmul.f32 %v4527_v14, %v6685_v42  ;;  %v1008_v1 = vmul.f32 %v3990_v35, %v4530_v15  ;;  %v1026_v5 = vmul.f32 %v6683_v49, %v4539_v54  ;;  %s3096_s0 = sld [smem:[#allocation10 + $0x1]] }
  0xb5   :  { %1827 = vrot.lane.b32.xlu1 %v1804_v27, %s3593_s22  ;;  %v1061_v21 = vadd.f32 %v4545_v59, %v1051_v3  ;;  %v1890_v10 = vadd.f32 %v1882_v47, %v1872_v6  ;;  %v1044_v42 = vmul.f32 %v6684_v61, %v4542_v56  ;;  %v1731_v36 = vmul.f32 %v4586_v44, %v4467_v53  ;;  %s3097_s2 = sld [smem:[#allocation10 + $0x81]] }
  0xb6   :  { %965 = vrot.lane.b32.xlu0 %v948_v12, %s3594_s25  ;;  %v1016_v35 = vadd.f32 %v1008_v1, %v998_v29  ;;  %v1741_v9 = vmul.f32 %v4591_v51, %v4487_v30  ;;  %v1759_v19 = vmul.f32 %v4596_v63, %v4490_v33  ;;  %v1777_v49 = vmul.f32 %v4609_v16, %v4493_v13 }
  0xb7   :  { %v1069_v2 = vmax.f32 %v1061_v21, 0.0  ;;  %v1908_v41 = vadd.f32 %v1900_v8, %v1890_v10  ;;  %v4627_v61 = vstv %s4547_s17  ;;  %v4632_v23 = vstv %s4551_s18  ;;  %v4656_v8 = vld [vmem:[%s6605_s1 + $0x10] sm:$0xff]  ;;  %s5348_s17 = sld [smem:[#allocation5 + $0x104]] }
  0xb8   :  { %v1034_v17 = vadd.f32 %v1026_v5, %v1016_v35  ;;  %v1749_v31 = vadd.f32 %v1741_v9, %v1731_v36  ;;  %v1976_v11 = vmul.f32 %v4446_v24, %v4627_v61  ;;  %v1986_v43 = vmul.f32 %v4464_v60, %v4632_v23  ;;  %v4671_v10 = vld [vmem:[%s6605_s1 + $0x90] sm:$0xff]  ;;  %s5351_s18 = sld [smem:[#allocation5 + $0x184]] }
  0xb9   :  { %1085 = vrot.lane.b32.xlu1 %v1069_v2, %s3595_s5  ;;  %v1918_v26 = vadd.f32 %v4579_v40, %v1908_v41  ;;  %v4639_v25 = vstv %s4561_s14  ;;  %v4642_v37 = vstv %s4569_s30  ;;  %v4651_v12 = vstv %s4598_s21  ;;  %s5862_s14 = sld [smem:[#allocation5 + $0xb]] }
  0xba   :  { %v1052_v27 = vadd.f32 %v1044_v42, %v1034_v17  ;;  %v1767_v3 = vadd.f32 %v1759_v19, %v1749_v31  ;;  %v2004_v24 = vmul.f32 %v4475_v52, %v4639_v25  ;;  %v2022_v6 = vmul.f32 %v4480_v0, %v4642_v37  ;;  %v4664_v0 = vld [vmem:[%s6605_s1 + $0x50] sm:$0xff]  ;;  %s3101_s21 = sld [smem:[#allocation10 + $0x2]] }
  0xbb   :  { %v397_v57 = vpop.permute.xlu0 %396  ;;  %v395_v45 = vpop.permute.xlu1 %394  ;;  %v1926_v60 = vmax.f32 %v1918_v26, 0.0  ;;  %v1994_v47 = vadd.f32 %v1986_v43, %v1976_v11  ;;  %v755_v29 = vmul.f32 %v4656_v8, %v4375_v18  ;;  %v765_v21 = vmul.f32 %v4664_v0, %v4384_v62  ;;  %v4679_v35 = vld [vmem:[%s6605_s1 + $0xd0] sm:$0xff]  ;;  %s3105_s30 = sld [smem:[#allocation11 + $0x2]] }
  0xbc   :  { %414 = vst.msk [vmem:[#allocation3 + $0x38] sm:$0xff] %vm406_vm3, %v397_v57  ;;  %413 = vst.msk [vmem:[#allocation3 + $0x30] sm:$0xff] %vm406_vm3, %v395_v45  ;;  %v1062_v52 = vadd.f32 %v4545_v59, %v1052_v27  ;;  %v1785_v1 = vadd.f32 %v1777_v49, %v1767_v3  ;;  %v783_v5 = vmul.f32 %v4671_v10, %v4387_v4  ;;  %v4695_v57 = vld [vmem:[%s6605_s1 + $0x18] sm:$0xff] }
  0xbd   :  { %1949 = vrot.lane.b32.xlu0 %v1926_v60, %s3594_s25  ;;  %v2012_v42 = vadd.f32 %v2004_v24, %v1994_v47  ;;  %v801_v36 = vmul.f32 %v4679_v35, %v4390_v46  ;;  %v1853_v9 = vmul.f32 %v4586_v44, %v4556_v28  ;;  %v1863_v19 = vmul.f32 %v4591_v51, %v4559_v20  ;;  %v4704_v24 = vld [vmem:[%s6605_s1 + $0x58] sm:$0xff] }
  0xbe   :  { %v1070_v2 = vmax.f32 %v1062_v52, 0.0  ;;  %v1795_v41 = vadd.f32 %v4496_v32, %v1785_v1  ;;  %v773_v49 = vadd.f32 %v765_v21, %v755_v29  ;;  %v1881_v17 = vmul.f32 %v4596_v63, %v4573_v50  ;;  %v4711_v60 = vld [vmem:[%s6605_s1 + $0x98] sm:$0xff]  ;;  %v4718_v29 = vld [vmem:[%s6605_s1 + $0x128] sm:$0xff] }
  0xbf   :  { %v2030_v11 = vadd.f32 %v2022_v6, %v2012_v42  ;;  %v1871_v26 = vadd.f32 %v1863_v19, %v1853_v9  ;;  %v1899_v43 = vmul.f32 %v4609_v16, %v4576_v39  ;;  %v756_v45 = vmul.f32 %v4695_v57, %v4375_v18  ;;  %v4724_v21 = vld [vmem:[%s6605_s1 + $0xd8] sm:$0xff]  ;;  %v4733_v9 = vld [vmem:[%s6605_s1 + $0x168] sm:$0xff] }
  0xc0   :  { %v520_v31 = vpop.permute.xlu0 %519  ;;  %1087 = vrot.lane.b32.xlu1 %v1070_v2, %s3595_s5  ;;  %v1803_v27 = vmax.f32 %v1795_v41, 0.0  ;;  %v791_v3 = vadd.f32 %v783_v5, %v773_v49  ;;  %v766_v6 = vmul.f32 %v4704_v24, %v4384_v62  ;;  %v784_v47 = vmul.f32 %v4711_v60, %v4387_v4 }
  0xc1   :  { %537 = vst.msk [vmem:[#allocation3 + $0x38] sm:$0xff] %vm529_vm4, %v520_v31  ;;  %v2040_v52 = vadd.f32 %v4651_v12, %v2030_v11  ;;  %v1889_v1 = vadd.f32 %v1881_v17, %v1871_v26  ;;  %v802_v5 = vmul.f32 %v4724_v21, %v4390_v46  ;;  %v877_v42 = vmul.f32 %v4656_v8, %v4425_v48  ;;  %v4743_v17 = vld [vmem:[%s6605_s1 + $0x1a8] sm:$0xff] }
  0xc2   :  { %1825 = vrot.lane.b32.xlu0 %v1803_v27, %s3593_s22  ;;  %v809_v19 = vadd.f32 %v801_v36, %v791_v3  ;;  %v774_v2 = vadd.f32 %v766_v6, %v756_v45  ;;  %v887_v41 = vmul.f32 %v4664_v0, %v4435_v58  ;;  %v905_v49 = vmul.f32 %v4671_v10, %v4438_v38  ;;  %v4748_v31 = vld [vmem:[%s6605_s1 + $0x1e8] sm:$0xff] }
  0xc3   :  { %v2048_v26 = vmax.f32 %v2040_v52, 0.0  ;;  %v1907_v36 = vadd.f32 %v1899_v43, %v1889_v1  ;;  %v923_v45 = vmul.f32 %v4679_v35, %v4441_v34  ;;  %v1730_v27 = vmul.f32 %v4718_v29, %v4467_v53 }
  0xc4   :  { %v518_v11 = vpop.permute.xlu0 %517  ;;  %v819_v6 = vadd.f32 %v4408_v22, %v809_v19  ;;  %v792_v55 = vadd.f32 %v784_v47, %v774_v2  ;;  %v895_v46 = vadd.f32 %v887_v41, %v877_v42  ;;  %v1740_v4 = vmul.f32 %v4733_v9, %v4487_v30 }
  0xc5   :  { %v643_v3 = vpop.permute.xlu1 %642  ;;  %536 = vst.msk [vmem:[#allocation3 + $0x30] sm:$0xff] %vm529_vm4, %v518_v11  ;;  %2071 = vrot.lane.b32.xlu1 %v2048_v26, %s3595_s5  ;;  %v1917_v43 = vadd.f32 %v4579_v40, %v1907_v36  ;;  %v1758_v52 = vmul.f32 %v4743_v17, %v4490_v33  ;;  %v1776_v1 = vmul.f32 %v4748_v31, %v4493_v13 }
  0xc6   :  { %660 = vst.msk [vmem:[#allocation3 + $0x38] sm:$0xff] %vm652_vm5, %v643_v3  ;;  %v1975_v19 = vmul.f32 %v4586_v44, %v4627_v61  ;;  %v827_v47 = vmax.f32 %v819_v6, 0.0  ;;  %v810_v42 = vadd.f32 %v802_v5, %v792_v55  ;;  %v913_v2 = vadd.f32 %v905_v49, %v895_v46 }
  0xc7   :  { %v1748_v41 = vadd.f32 %v1740_v4, %v1730_v27  ;;  %v1925_v62 = vmax.f32 %v1917_v43, 0.0  ;;  %v1985_v26 = vmul.f32 %v4591_v51, %v4632_v23  ;;  %v2003_v36 = vmul.f32 %v4596_v63, %v4639_v25 }
  0xc8   :  { %v641_v11 = vpop.permute.xlu0 %640  ;;  %v2021_v3 = vmul.f32 %v4609_v16, %v4642_v37  ;;  %845 = vrot.lane.b32.xlu0 %v827_v47, %s3593_s22  ;;  %v820_v55 = vadd.f32 %v4408_v22, %v810_v42  ;;  %v931_v46 = vadd.f32 %v923_v45, %v913_v2  ;;  %v878_v44 = vmul.f32 %v4695_v57, %v4425_v48 }
  0xc9   :  { %v393_v18 = vpop.permute.xlu1 %392  ;;  %659 = vst.msk [vmem:[#allocation3 + $0x30] sm:$0xff] %vm652_vm5, %v641_v11  ;;  %v1766_v4 = vadd.f32 %v1758_v52, %v1748_v41  ;;  %1947 = vrot.lane.b32.xlu1 %v1925_v62, %s3594_s25  ;;  %v1993_v51 = vadd.f32 %v1985_v26, %v1975_v19  ;;  %v888_v63 = vmul.f32 %v4704_v24, %v4435_v58 }
  0xca   :  { %412 = vst.msk [vmem:[#allocation3 + $0x28] sm:$0xff] %vm406_vm3, %v393_v18  ;;  %v906_v16 = vmul.f32 %v4711_v60, %v4438_v38  ;;  %v924_v5 = vmul.f32 %v4724_v21, %v4441_v34  ;;  %v828_v49 = vmax.f32 %v820_v55, 0.0  ;;  %v941_v45 = vadd.f32 %v4459_v7, %v931_v46 }
  0xcb   :  { %v1784_v27 = vadd.f32 %v1776_v1, %v1766_v4  ;;  %v999_v6 = vmul.f32 %v4656_v8, %v4527_v14  ;;  %v2011_v18 = vadd.f32 %v2003_v36, %v1993_v51  ;;  %v896_v43 = vadd.f32 %v888_v63, %v878_v44 }
  0xcc   :  { %v1009_v62 = vmul.f32 %v4664_v0, %v4530_v15  ;;  %v1027_v52 = vmul.f32 %v4671_v10, %v4539_v54  ;;  %847 = vrot.lane.b32.xlu0 %v828_v49, %s3593_s22  ;;  %v949_v42 = vmax.f32 %v941_v45, 0.0  ;;  %v1045_v1 = vmul.f32 %v4679_v35, %v4542_v56  ;;  %v4825_v49 = vld [vmem:[%s6605_s1 + $0x160] sm:$0xff] }
  0xcd   :  { %v516_v19 = vpop.permute.xlu1 %515  ;;  %v1126_v47 = vld [vmem:[#allocation3 + $0x38] sm:$0xff]  ;;  %v1794_v2 = vadd.f32 %v4496_v32, %v1784_v27  ;;  %v1852_v8 = vmul.f32 %v4718_v29, %v4556_v28  ;;  %v2029_v0 = vadd.f32 %v2021_v3, %v2011_v18  ;;  %v914_v10 = vadd.f32 %v906_v16, %v896_v43  ;;  %v4818_v3 = vld [vmem:[%s6605_s1 + $0x120] sm:$0xff]  ;;  %6691 = vst [vmem:[#allocation27_spill] sm:$0xff] %v4825_v49 }
  0xce   :  { %535 = vst.msk [vmem:[#allocation3 + $0x28] sm:$0xff] %vm529_vm4, %v516_v19  ;;  %3289 = vmatprep.subr.mxu0 %v1126_v47  ;;  %v1017_v41 = vadd.f32 %v1009_v62, %v999_v6  ;;  %v1862_v11 = vmul.f32 %v4733_v9, %v4559_v20  ;;  %967 = vrot.lane.b32.xlu1 %v949_v42, %s3594_s25  ;;  %v4846_v18 = vld [vmem:[%s6605_s1 + $0x1e0] sm:$0xff]  ;;  %v4849_v43 = vstv %s4778_s24  ;;  %s4910_s24 = sld [smem:[#allocation5 + $0x108]] }
  0xcf   :  { %1146 = vst.msk [vmem:[%s6612_s8 + $0x38] sm:$0xff] %vm1138_vm6, %v1126_v47  ;;  %3290 = vmatpush3.msra.mxu0 %v1126_v47  ;;  %v391_v26 = vpop.permute.xlu0 %390  ;;  %v1802_v35 = vmax.f32 %v1794_v2, 0.0  ;;  %v1880_v36 = vmul.f32 %v4743_v17, %v4573_v50  ;;  %v1898_v55 = vmul.f32 %v4748_v31, %v4576_v39  ;;  %v1000_v46 = vmul.f32 %v4695_v57, %v4527_v14  ;;  %v4830_v57 = vld [vmem:[%s6605_s1 + $0x1a0] sm:$0xff] }
  0xd0   :  { %411 = vst.msk [vmem:[#allocation3 + $0x20] sm:$0xff] %vm406_vm3, %v391_v26  ;;  %v1125_v4 = vld [vmem:[#allocation3 + $0x30] sm:$0xff]  ;;  %v2039_v44 = vadd.f32 %v4651_v12, %v2029_v0  ;;  %v932_v51 = vadd.f32 %v924_v5, %v914_v10  ;;  %v1035_v63 = vadd.f32 %v1027_v52, %v1017_v41  ;;  %v1870_v16 = vadd.f32 %v1862_v11, %v1852_v8 }
  0xd1   :  { %6692 = vst [vmem:[#allocation28_spill] sm:$0xff] %v4830_v57  ;;  %v639_v45 = vpop.permute.xlu1 %638  ;;  %1145 = vst.msk [vmem:[%s6612_s8 + $0x30] sm:$0xff] %vm1138_vm6, %v1125_v4  ;;  %3291 = vmatprep.subr.mxu0 %v1125_v4  ;;  %1823 = vrot.lane.b32.xlu0 %v1802_v35, %s3593_s22  ;;  %v1010_v5 = vmul.f32 %v4704_v24, %v4530_v15  ;;  %v1028_v27 = vmul.f32 %v4711_v60, %v4539_v54 }
  0xd2   :  { %v1046_v6 = vmul.f32 %v4724_v21, %v4542_v56  ;;  %6693 = vst [vmem:[#allocation29_spill] sm:$0xff] %v4846_v18  ;;  %6694 = vst [vmem:[#allocation30_spill] sm:$0xff] %v4849_v43  ;;  %3292 = vmatpush3.msra.mxu0 %v1125_v4  ;;  %v2047_v62 = vmax.f32 %v2039_v44, 0.0  ;;  %v942_v52 = vadd.f32 %v4459_v7, %v932_v51 }
  0xd3   :  { %658 = vst.msk [vmem:[#allocation3 + $0x28] sm:$0xff] %vm652_vm5, %v639_v45  ;;  %v1053_v24 = vadd.f32 %v1045_v1, %v1035_v63  ;;  %v1888_v19 = vadd.f32 %v1880_v36, %v1870_v16  ;;  %v514_v60 = vpop.permute.xlu0 %513  ;;  %v1018_v47 = vadd.f32 %v1010_v5, %v1000_v46  ;;  %v1729_v21 = vmul.f32 %v4818_v3, %v4467_v53  ;;  %v6696_v45 = vld [vmem:[#allocation22_spill] sm:$0xff] }
  0xd4   :  { %v1739_v42 = vmul.f32 %v4825_v49, %v4487_v30  ;;  %v1757_v2 = vmul.f32 %v4830_v57, %v4490_v33  ;;  %534 = vst.msk [vmem:[#allocation3 + $0x20] sm:$0xff] %vm529_vm4, %v514_v60  ;;  %2069 = vrot.lane.b32.xlu1 %v2047_v62, %s3595_s5  ;;  %v950_v8 = vmax.f32 %v942_v52, 0.0  ;;  %v1775_v10 = vmul.f32 %v4846_v18, %v4493_v13  ;;  %v4896_v62 = vld [vmem:[%s6605_s1 + $0xa0] sm:$0xff]  ;;  %v6700_v52 = vld [vmem:[#allocation25_spill] sm:$0xff]  ;;  %v6702_v60 = vld [vmem:[#allocation23_spill] sm:$0xff] }
  0xd5   :  { %v1063_v1 = vadd.f32 %v4545_v59, %v1053_v24  ;;  %v1906_v0 = vadd.f32 %v1898_v55, %v1888_v19  ;;  %v389_v41 = vpop.permute.xlu1 %388  ;;  %v1036_v11 = vadd.f32 %v1028_v27, %v1018_v47  ;;  %v1974_v35 = vmul.f32 %v4718_v29, %v4627_v61  ;;  %v6698_v27 = vld [vmem:[#allocation24_spill] sm:$0xff]  ;;  %6699 = vst [vmem:[#allocation33_spill] sm:$0xff] %v4896_v62 }
  0xd6   :  { %v1747_v26 = vadd.f32 %v1739_v42, %v1729_v21  ;;  %v1984_v36 = vmul.f32 %v4733_v9, %v4632_v23  ;;  %410 = vst.msk [vmem:[#allocation3 + $0x18] sm:$0xff] %vm406_vm3, %v389_v41  ;;  %969 = vrot.lane.b32.xlu0 %v950_v8, %s3594_s25  ;;  %v2002_v55 = vmul.f32 %v4743_v17, %v4639_v25  ;;  %v4880_v9 = vld [vmem:[%s6605_s1 + $0x20] sm:$0xff] }
  0xd7   :  { %v1071_v46 = vmax.f32 %v1063_v1, 0.0  ;;  %v1916_v4 = vadd.f32 %v4579_v40, %v1906_v0  ;;  %v2020_v44 = vmul.f32 %v4748_v31, %v4642_v37  ;;  %v637_v51 = vpop.permute.xlu0 %636  ;;  %v1054_v63 = vadd.f32 %v1046_v6, %v1036_v11  ;;  %6695 = vst [vmem:[#allocation31_spill] sm:$0xff] %v4880_v9  ;;  %v4889_v31 = vld [vmem:[%s6605_s1 + $0x60] sm:$0xff] }
  0xd8   :  { %v1765_v16 = vadd.f32 %v1757_v2, %v1747_v26  ;;  %v1992_v29 = vadd.f32 %v1984_v36, %v1974_v35  ;;  %v757_v5 = vmul.f32 %v4880_v9, %v6696_v45  ;;  %657 = vst.msk [vmem:[#allocation3 + $0x20] sm:$0xff] %vm652_vm5, %v637_v51  ;;  %6697 = vst [vmem:[#allocation32_spill] sm:$0xff] %v4889_v31  ;;  %v4903_v19 = vld [vmem:[%s6605_s1 + $0xe0] sm:$0xff]  ;;  %v4923_v26 = vstv %s4853_s13  ;;  %s3192_s13 = sld [smem:[#allocation5 + $0x109]] }
  0xd9   :  { %1089 = vrot.lane.b32.xlu1 %v1071_v46, %s3595_s5  ;;  %v1924_v17 = vmax.f32 %v1916_v4, 0.0  ;;  %v767_v6 = vmul.f32 %v4889_v31, %v6698_v27  ;;  %v785_v24 = vmul.f32 %v4896_v62, %v6700_v52  ;;  %6701 = vst [vmem:[#allocation34_spill] sm:$0xff] %v4903_v19  ;;  %v803_v47 = vmul.f32 %v4903_v19, %v6702_v60  ;;  %v512_v21 = vpop.permute.xlu1 %511 }
  0xda   :  { %v1124_v42 = vld [vmem:[#allocation3 + $0x28] sm:$0xff]  ;;  %v1064_v2 = vadd.f32 %v4545_v59, %v1054_v63  ;;  %v1783_v8 = vadd.f32 %v1775_v10, %v1765_v16  ;;  %v2010_v1 = vadd.f32 %v2002_v55, %v1992_v29  ;;  %v1851_v0 = vmul.f32 %v4818_v3, %v4556_v28  ;;  %533 = vst.msk [vmem:[#allocation3 + $0x18] sm:$0xff] %vm529_vm4, %v512_v21  ;;  %v4931_v63 = vld [vmem:[%s6605_s1 + $0x28] sm:$0xff] }
  0xdb   :  { %1144 = vst.msk [vmem:[%s6612_s8 + $0x28] sm:$0xff] %vm1138_vm6, %v1124_v42  ;;  %3293 = vmatprep.subr.mxu0 %v1124_v42  ;;  %1945 = vrot.lane.b32.xlu0 %v1924_v17, %s3594_s25  ;;  %v775_v41 = vadd.f32 %v767_v6, %v757_v5  ;;  %v1861_v10 = vmul.f32 %v4825_v49, %v4559_v20  ;;  %6703 = vst [vmem:[#allocation35_spill] sm:$0xff] %v4923_v26  ;;  %v4938_v29 = vld [vmem:[%s6605_s1 + $0x68] sm:$0xff] }
  0xdc   :  { %v1879_v11 = vmul.f32 %v4830_v57, %v4573_v50  ;;  %3294 = vmatpush3.msra.mxu0 %v1124_v42  ;;  %v1072_v35 = vmax.f32 %v1064_v2, 0.0  ;;  %v1793_v36 = vadd.f32 %v4496_v32, %v1783_v8  ;;  %v2028_v46 = vadd.f32 %v2020_v44, %v2010_v1  ;;  %6704 = vst [vmem:[#allocation36_spill] sm:$0xff] %v4931_v63  ;;  %v4947_v21 = vld [vmem:[%s6605_s1 + $0xa8] sm:$0xff]  ;;  %v4961_v1 = vld [vmem:[%s6605_s1 + $0x118] sm:$0xff] }
  0xdd   :  { %v1897_v4 = vmul.f32 %v4846_v18, %v4576_v39  ;;  %v793_v55 = vadd.f32 %v785_v24, %v775_v41  ;;  %v1869_v51 = vadd.f32 %v1861_v10, %v1851_v0  ;;  %v758_v16 = vmul.f32 %v4931_v63, %v6696_v45  ;;  %6705 = vst [vmem:[#allocation37_spill] sm:$0xff] %v4938_v29  ;;  %v635_v5 = vpop.permute.xlu1 %634  ;;  %v387_v17 = vpop.permute.xlu0 %386  ;;  %v4954_v2 = vld [vmem:[%s6605_s1 + $0xe8] sm:$0xff] }
  0xde   :  { %v768_v44 = vmul.f32 %v4938_v29, %v6698_v27  ;;  %1091 = vrot.lane.b32.xlu1 %v1072_v35, %s3595_s5  ;;  %v1801_v6 = vmax.f32 %v1793_v36, 0.0  ;;  %v2038_v24 = vadd.f32 %v4651_v12, %v2028_v46  ;;  %6706 = vst [vmem:[#allocation38_spill] sm:$0xff] %v4947_v21  ;;  %v786_v42 = vmul.f32 %v4947_v21, %v6700_v52  ;;  %v4970_v36 = vld [vmem:[%s6605_s1 + $0x158] sm:$0xff] }
  0xdf   :  { %6707 = vst [vmem:[#allocation39_spill] sm:$0xff] %v4954_v2  ;;  %v804_v8 = vmul.f32 %v4954_v2, %v6702_v60  ;;  %6708 = vst [vmem:[#allocation40_spill] sm:$0xff] %v4961_v1  ;;  %v811_v0 = vadd.f32 %v803_v47, %v793_v55  ;;  %v1887_v41 = vadd.f32 %v1879_v11, %v1869_v51  ;;  %v4975_v46 = vld [vmem:[%s6605_s1 + $0x198] sm:$0xff]  ;;  %v1123_v26 = vld [vmem:[#allocation3 + $0x20] sm:$0xff]  ;;  %v5002_v45 = vstv %s4910_s24  ;;  %s3103_s24 = sld [smem:[#allocation10 + $0x102]] }
  0xe0   :  { %656 = vst.msk [vmem:[#allocation3 + $0x18] sm:$0xff] %vm652_vm5, %v635_v5  ;;  %v776_v10 = vadd.f32 %v768_v44, %v758_v16  ;;  %v879_v35 = vmul.f32 %v4880_v9, %v4425_v48  ;;  %6709 = vst [vmem:[#allocation41_spill] sm:$0xff] %v4970_v36  ;;  %1821 = vrot.lane.b32.xlu0 %v1801_v6, %s3593_s22  ;;  %v2046_v5 = vmax.f32 %v2038_v24, 0.0  ;;  %v4987_v51 = vld [vmem:[%s6605_s1 + $0x1d8] sm:$0xff]  ;;  %3295 = vmatprep.subr.mxu0 %v1123_v26 }
  0xe1   :  { %409 = vst.msk [vmem:[#allocation3 + $0x10] sm:$0xff] %vm406_vm3, %v387_v17  ;;  %6710 = vst [vmem:[#allocation42_spill] sm:$0xff] %v4975_v46  ;;  %v889_v47 = vmul.f32 %v4889_v31, %v4435_v58  ;;  %v907_v11 = vmul.f32 %v4896_v62, %v4438_v38  ;;  %v925_v55 = vmul.f32 %v4903_v19, %v4441_v34  ;;  %v510_v24 = vpop.permute.xlu0 %509  ;;  %v385_v43 = vpop.permute.xlu1 %384  ;;  %3296 = vmatpush3.msra.mxu0 %v1123_v26 }
  0xe2   :  { %6711 = vst [vmem:[#allocation43_spill] sm:$0xff] %v4987_v51  ;;  %1143 = vst.msk [vmem:[%s6612_s8 + $0x20] sm:$0xff] %vm1138_vm6, %v1123_v26  ;;  %v821_v16 = vadd.f32 %v4408_v22, %v811_v0  ;;  %v1905_v44 = vadd.f32 %v1897_v4, %v1887_v41  ;;  %v794_v17 = vadd.f32 %v786_v42, %v776_v10  ;;  %2067 = vrot.lane.b32.xlu1 %v2046_v5, %s3595_s5 }
  0xe3   :  { %v1728_v6 = vmul.f32 %v4961_v1, %v4467_v53  ;;  %v897_v60 = vadd.f32 %v889_v47, %v879_v35  ;;  %v1738_v52 = vmul.f32 %v4970_v36, %v4487_v30  ;;  %v1756_v27 = vmul.f32 %v4975_v46, %v4490_v33  ;;  %532 = vst.msk [vmem:[#allocation3 + $0x10] sm:$0xff] %vm529_vm4, %v510_v24 }
  0xe4   :  { %408 = vst.msk [vmem:[#allocation3 + $0x8] sm:$0xff] %vm406_vm3, %v385_v43  ;;  %v829_v4 = vmax.f32 %v821_v16, 0.0  ;;  %v1915_v42 = vadd.f32 %v4579_v40, %v1905_v44  ;;  %v812_v0 = vadd.f32 %v804_v8, %v794_v17  ;;  %v1774_v26 = vmul.f32 %v4987_v51, %v4493_v13 }
  0xe5   :  { %v915_v41 = vadd.f32 %v907_v11, %v897_v60  ;;  %v1746_v10 = vadd.f32 %v1738_v52, %v1728_v6  ;;  %v1973_v35 = vmul.f32 %v4818_v3, %v4627_v61  ;;  %v1983_v5 = vmul.f32 %v4825_v49, %v4632_v23  ;;  %v633_v44 = vpop.permute.xlu0 %632 }
  0xe6   :  { %849 = vrot.lane.b32.xlu0 %v829_v4, %s3593_s22  ;;  %v1923_v47 = vmax.f32 %v1915_v42, 0.0  ;;  %v822_v43 = vadd.f32 %v4408_v22, %v812_v0  ;;  %v2001_v16 = vmul.f32 %v4830_v57, %v4639_v25  ;;  %v2019_v8 = vmul.f32 %v4846_v18, %v4642_v37  ;;  %655 = vst.msk [vmem:[#allocation3 + $0x10] sm:$0xff] %vm652_vm5, %v633_v44  ;;  %v508_v6 = vpop.permute.xlu1 %507 }
  0xe7   :  { %v1122_v60 = vld [vmem:[#allocation3 + $0x18] sm:$0xff]  ;;  %v933_v52 = vadd.f32 %v925_v55, %v915_v41  ;;  %v1764_v11 = vadd.f32 %v1756_v27, %v1746_v10  ;;  %v1991_v17 = vadd.f32 %v1983_v5, %v1973_v35  ;;  %v880_v3 = vmul.f32 %v4931_v63, %v4425_v48  ;;  %531 = vst.msk [vmem:[#allocation3 + $0x8] sm:$0xff] %vm529_vm4, %v508_v6 }
  0xe8   :  { %1142 = vst.msk [vmem:[%s6612_s8 + $0x18] sm:$0xff] %vm1138_vm6, %v1122_v60  ;;  %3297 = vmatprep.subr.mxu0 %v1122_v60  ;;  %1943 = vrot.lane.b32.xlu1 %v1923_v47, %s3594_s25  ;;  %v830_v24 = vmax.f32 %v822_v43, 0.0  ;;  %v890_v55 = vmul.f32 %v4938_v29, %v4435_v58  ;;  %v908_v27 = vmul.f32 %v4947_v21, %v4438_v38 }
  0xe9   :  { %v926_v4 = vmul.f32 %v4954_v2, %v4441_v34  ;;  %3298 = vmatpush3.msra.mxu0 %v1122_v60  ;;  %v943_v42 = vadd.f32 %v4459_v7, %v933_v52  ;;  %v1782_v0 = vadd.f32 %v1774_v26, %v1764_v11  ;;  %v2009_v41 = vadd.f32 %v2001_v16, %v1991_v17 }
  0xea   :  { %v1001_v10 = vmul.f32 %v4880_v9, %v4527_v14  ;;  %851 = vrot.lane.b32.xlu0 %v830_v24, %s3593_s22  ;;  %v898_v35 = vadd.f32 %v890_v55, %v880_v3  ;;  %v1011_v5 = vmul.f32 %v4889_v31, %v4530_v15  ;;  %v1029_v47 = vmul.f32 %v4896_v62, %v4539_v54  ;;  %v631_v52 = vpop.permute.xlu1 %630  ;;  %v383_v11 = vpop.permute.xlu0 %382  ;;  %v5056_v55 = vld [vmem:[%s6605_s1 + $0x110] sm:$0xff] }
  0xeb   :  { %v1047_v43 = vmul.f32 %v4903_v19, %v4542_v56  ;;  %v951_v44 = vmax.f32 %v943_v42, 0.0  ;;  %v1792_v26 = vadd.f32 %v4496_v32, %v1782_v0  ;;  %v2027_v16 = vadd.f32 %v2019_v8, %v2009_v41  ;;  %654 = vst.msk [vmem:[#allocation3 + $0x8] sm:$0xff] %vm652_vm5, %v631_v52  ;;  %v5071_v52 = vld [vmem:[%s6605_s1 + $0x150] sm:$0xff] }
  0xec   :  { %v1850_v60 = vmul.f32 %v4961_v1, %v4556_v28  ;;  %v916_v17 = vadd.f32 %v908_v27, %v898_v35  ;;  %v1019_v3 = vadd.f32 %v1011_v5, %v1001_v10  ;;  %v1860_v6 = vmul.f32 %v4970_v36, %v4559_v20  ;;  %407 = vst.msk [vmem:[#allocation3] sm:$0xff] %vm406_vm3, %v383_v11 }
  0xed   :  { %v1878_v24 = vmul.f32 %v4975_v46, %v4573_v50  ;;  %971 = vrot.lane.b32.xlu1 %v951_v44, %s3594_s25  ;;  %v1800_v8 = vmax.f32 %v1792_v26, 0.0  ;;  %v2037_v27 = vadd.f32 %v4651_v12, %v2027_v16  ;;  %v1896_v42 = vmul.f32 %v4987_v51, %v4576_v39  ;;  %v5076_v44 = vld [vmem:[%s6605_s1 + $0x190] sm:$0xff] }
  0xee   :  { %v1002_v0 = vmul.f32 %v4931_v63, %v4527_v14  ;;  %v934_v41 = vadd.f32 %v926_v4, %v916_v17  ;;  %v1037_v10 = vadd.f32 %v1029_v47, %v1019_v3  ;;  %v1868_v35 = vadd.f32 %v1860_v6, %v1850_v60  ;;  %v5081_v26 = vld [vmem:[%s6605_s1 + $0x1d0] sm:$0xff]  ;;  %v1121_v4 = vld [vmem:[#allocation3 + $0x10] sm:$0xff]  ;;  %v506_v17 = vpop.permute.xlu0 %505 }
  0xef   :  { %v1012_v5 = vmul.f32 %v4938_v29, %v4530_v15  ;;  %6712 = vst [vmem:[#allocation44_spill] sm:$0xff] %v5081_v26  ;;  %1819 = vrot.lane.b32.xlu0 %v1800_v8, %s3593_s22  ;;  %v2045_v47 = vmax.f32 %v2037_v27, 0.0  ;;  %v1030_v16 = vmul.f32 %v4947_v21, %v4539_v54  ;;  %v1048_v60 = vmul.f32 %v4954_v2, %v4542_v56  ;;  %v629_v21 = vpop.permute.xlu1 %628 }
  0xf0   :  { %v1727_v11 = vmul.f32 %v5056_v55, %v4467_v53  ;;  %1141 = vst.msk [vmem:[%s6612_s8 + $0x10] sm:$0xff] %vm1138_vm6, %v1121_v4  ;;  %3299 = vmatprep.subr.mxu0 %v1121_v4  ;;  %v944_v3 = vadd.f32 %v4459_v7, %v934_v41  ;;  %v1055_v6 = vadd.f32 %v1047_v43, %v1037_v10  ;;  %v5104_v19 = vstv %s5037_s26  ;;  %s3108_s26 = sld [smem:[#allocation10 + $0x103]] }
  0xf1   :  { %v1886_v8 = vadd.f32 %v1878_v24, %v1868_v35  ;;  %v1020_v27 = vadd.f32 %v1012_v5, %v1002_v0  ;;  %530 = vst.msk [vmem:[#allocation3] sm:$0xff] %vm529_vm4, %v506_v17  ;;  %3300 = vmatpush3.msra.mxu0 %v1121_v4  ;;  %2065 = vrot.lane.b32.xlu1 %v2045_v47, %s3595_s5 }
  0xf2   :  { %v1737_v2 = vmul.f32 %v5071_v52, %v4487_v30  ;;  %v1755_v29 = vmul.f32 %v5076_v44, %v4490_v33  ;;  %v1773_v63 = vmul.f32 %v5081_v26, %v4493_v13  ;;  %653 = vst.msk [vmem:[#allocation3] sm:$0xff] %vm652_vm5, %v629_v21  ;;  %v952_v43 = vmax.f32 %v944_v3, 0.0  ;;  %v1120_v47 = vld [vmem:[#allocation3 + $0x8] sm:$0xff]  ;;  %v5127_v3 = vld [vmem:[%s6605_s1 + $0x30] sm:$0xff] }
  0xf3   :  { %v1065_v24 = vadd.f32 %v4545_v59, %v1055_v6  ;;  %v1904_v0 = vadd.f32 %v1896_v42, %v1886_v8  ;;  %v1038_v41 = vadd.f32 %v1030_v16, %v1020_v27  ;;  %v1972_v35 = vmul.f32 %v4961_v1, %v4627_v61  ;;  %1140 = vst.msk [vmem:[%s6612_s8 + $0x8] sm:$0xff] %vm1138_vm6, %v1120_v47  ;;  %v6713_v6 = vld [vmem:[#allocation22_spill] sm:$0xff]  ;;  %v6714_v27 = vld [vmem:[#allocation24_spill] sm:$0xff] }
  0xf4   :  { %v1745_v10 = vadd.f32 %v1737_v2, %v1727_v11  ;;  %v1982_v5 = vmul.f32 %v4970_v36, %v4632_v23  ;;  %v2000_v4 = vmul.f32 %v4975_v46, %v4639_v25  ;;  %973 = vrot.lane.b32.xlu0 %v952_v43, %s3594_s25  ;;  %v2018_v16 = vmul.f32 %v4987_v51, %v4642_v37 }
  0xf5   :  { %v1073_v21 = vmax.f32 %v1065_v24, 0.0  ;;  %v1914_v17 = vadd.f32 %v4579_v40, %v1904_v0  ;;  %v1056_v42 = vadd.f32 %v1048_v60, %v1038_v41  ;;  %3301 = vmatprep.subr.mxu0 %v1120_v47  ;;  %v759_v8 = vmul.f32 %v5127_v3, %v6713_v6  ;;  %v5134_v60 = vld [vmem:[%s6605_s1 + $0x70] sm:$0xff]  ;;  %v6715_v41 = vld [vmem:[#allocation25_spill] sm:$0xff] }
  0xf6   :  { %v1763_v2 = vadd.f32 %v1755_v29, %v1745_v10  ;;  %v1990_v11 = vadd.f32 %v1982_v5, %v1972_v35  ;;  %v769_v43 = vmul.f32 %v5134_v60, %v6714_v27  ;;  %3302 = vmatpush3.msra.mxu0 %v1120_v47  ;;  %v5143_v0 = vld [vmem:[%s6605_s1 + $0xb0] sm:$0xff]  ;;  %v6716_v5 = vld [vmem:[#allocation23_spill] sm:$0xff]  ;;  %v1859_v36 = vmul.f32 %v5071_v52, %v4559_v20 }
  0xf7   :  { %1093 = vrot.lane.b32.xlu1 %v1073_v21, %s3595_s5  ;;  %v1922_v29 = vmax.f32 %v1914_v17, 0.0  ;;  %v1066_v24 = vadd.f32 %v4545_v59, %v1056_v42  ;;  %v787_v10 = vmul.f32 %v5143_v0, %v6715_v41  ;;  %v5150_v35 = vld [vmem:[%s6605_s1 + $0xf0] sm:$0xff]  ;;  %v1849_v42 = vmul.f32 %v5056_v55, %v4556_v28 }
  0xf8   :  { %v805_v47 = vmul.f32 %v5150_v35, %v6716_v5  ;;  %v1781_v21 = vadd.f32 %v1773_v63, %v1763_v2  ;;  %v2008_v17 = vadd.f32 %v2000_v4, %v1990_v11  ;;  %v777_v51 = vadd.f32 %v769_v43, %v759_v8  ;;  %v5167_v11 = vld [vmem:[%s6605_s1 + $0x38] sm:$0xff] }
  0xf9   :  { %1941 = vrot.lane.b32.xlu0 %v1922_v29, %s3594_s25  ;;  %v1074_v46 = vmax.f32 %v1066_v24, 0.0  ;;  %v1877_v1 = vmul.f32 %v5076_v44, %v4573_v50  ;;  %v1895_v62 = vmul.f32 %v5081_v26, %v4576_v39  ;;  %v1119_v31 = vld [vmem:[#allocation3] sm:$0xff]  ;;  %v760_v8 = vmul.f32 %v5167_v11, %v6713_v6  ;;  %v5186_v6 = vld [vmem:[%s6605_s1 + $0xb8] sm:$0xff] }
  0xfa   :  { %v1791_v63 = vadd.f32 %v4496_v32, %v1781_v21  ;;  %v2026_v4 = vadd.f32 %v2018_v16, %v2008_v17  ;;  %v795_v2 = vadd.f32 %v787_v10, %v777_v51  ;;  %1139 = vst.msk [vmem:[%s6612_s8] sm:$0xff] %vm1138_vm6, %v1119_v31  ;;  %3303 = vmatprep.subr.mxu0 %v1119_v31  ;;  %v5179_v51 = vld [vmem:[%s6605_s1 + $0x78] sm:$0xff]  ;;  %v5191_v24 = vstv %s5108_s20  ;;  %v5204_v17 = vld [vmem:[%s6605_s1 + $0x108] sm:$0xff]  ;;  %s3193_s20 = sld [smem:[#allocation5 + $0x189]] }
  0xfb   :  { %1095 = vrot.lane.b32.xlu1 %v1074_v46, %s3595_s5  ;;  %v1867_v43 = vadd.f32 %v1859_v36, %v1849_v42  ;;  %v770_v16 = vmul.f32 %v5179_v51, %v6714_v27  ;;  %v788_v29 = vmul.f32 %v5186_v6, %v6715_v41  ;;  %6717 = vst [vmem:[#allocation22_spill] sm:$0xff] %v5191_v24  ;;  %v5197_v21 = vld [vmem:[%s6605_s1 + $0xf8] sm:$0xff]  ;;  %v6718_v41 = vld [vmem:[#allocation26_spill] sm:$0xff] }
  0xfc   :  { %3304 = vmatpush3.msra.mxu0 %v1119_v31  ;;  %v1799_v36 = vmax.f32 %v1791_v63, 0.0  ;;  %v2036_v46 = vadd.f32 %v4651_v12, %v2026_v4  ;;  %v813_v10 = vadd.f32 %v805_v47, %v795_v2  ;;  %v806_v27 = vmul.f32 %v5197_v21, %v6716_v5  ;;  %v5215_v5 = vld [vmem:[%s6605_s1 + $0x148] sm:$0xff] }
  0xfd   :  { %3306 = vmatmul.mubr.msk.f32.vlgmr.msra.gmra.mxu0 %vm1135_vm2, %v6718_v41  ;;  %v1885_v31 = vadd.f32 %v1877_v1, %v1867_v43  ;;  %v778_v42 = vadd.f32 %v770_v16, %v760_v8  ;;  %v881_v47 = vmul.f32 %v5127_v3, %v4425_v48  ;;  %v891_v63 = vmul.f32 %v5134_v60, %v4435_v58  ;;  %v5220_v4 = vld [vmem:[%s6605_s1 + $0x188] sm:$0xff] }
  0xfe   :  { %v5225_v1 = vld [vmem:[%s6605_s1 + $0x1c8] sm:$0xff]  ;;  %1817 = vrot.lane.b32.xlu0 %v1799_v36, %s3593_s22  ;;  %v2044_v2 = vmax.f32 %v2036_v46, 0.0  ;;  %v823_v8 = vadd.f32 %v4408_v22, %v813_v10  ;;  %v909_v43 = vmul.f32 %v5143_v0, %v4438_v38  ;;  %v927_v16 = vmul.f32 %v5150_v35, %v4441_v34 }
  0xff   :  { %v1903_v41 = vadd.f32 %v1895_v62, %v1885_v31  ;;  %v796_v9 = vadd.f32 %v788_v29, %v778_v42  ;;  %v899_v18 = vadd.f32 %v891_v63, %v881_v47  ;;  %v1726_v57 = vmul.f32 %v5204_v17, %v4467_v53 }
 0x100   :  { %2063 = vrot.lane.b32.xlu1 %v2044_v2, %s3595_s5  ;;  %v831_v49 = vmax.f32 %v823_v8, 0.0  ;;  %v1736_v36 = vmul.f32 %v5215_v5, %v4487_v30  ;;  %v1754_v46 = vmul.f32 %v5220_v4, %v4490_v33  ;;  %v1772_v10 = vmul.f32 %v5225_v1, %v4493_v13 }
 0x101   :  { %v1913_v24 = vadd.f32 %v4579_v40, %v1903_v41  ;;  %v814_v62 = vadd.f32 %v806_v27, %v796_v9  ;;  %v917_v29 = vadd.f32 %v909_v43, %v899_v18  ;;  %v1971_v31 = vmul.f32 %v5056_v55, %v4627_v61 }
 0x102   :  { %853 = vrot.lane.b32.xlu0 %v831_v49, %s3593_s22  ;;  %v1744_v42 = vadd.f32 %v1736_v36, %v1726_v57  ;;  %v1981_v47 = vmul.f32 %v5071_v52, %v4632_v23  ;;  %v1999_v63 = vmul.f32 %v5076_v44, %v4639_v25  ;;  %v2017_v2 = vmul.f32 %v5081_v26, %v4642_v37 }
 0x103   :  { %v1921_v8 = vmax.f32 %v1913_v24, 0.0  ;;  %v824_v41 = vadd.f32 %v4408_v22, %v814_v62  ;;  %v935_v9 = vadd.f32 %v927_v16, %v917_v29  ;;  %v882_v18 = vmul.f32 %v5167_v11, %v4425_v48 }
 0x104   :  { %v1762_v27 = vadd.f32 %v1754_v46, %v1744_v42  ;;  %v1989_v43 = vadd.f32 %v1981_v47, %v1971_v31  ;;  %v892_v49 = vmul.f32 %v5179_v51, %v4435_v58  ;;  %v910_v57 = vmul.f32 %v5186_v6, %v4438_v38 }
 0x105   :  { %1939 = vrot.lane.b32.xlu1 %v1921_v8, %s3594_s25  ;;  %v832_v36 = vmax.f32 %v824_v41, 0.0  ;;  %v945_v26 = vadd.f32 %v4459_v7, %v935_v9  ;;  %v928_v22 = vmul.f32 %v5197_v21, %v4441_v34  ;;  %v1003_v24 = vmul.f32 %v5127_v3, %v4527_v14 }
 0x106   :  { %v1780_v48 = vadd.f32 %v1772_v10, %v1762_v27  ;;  %v2007_v16 = vadd.f32 %v1999_v63, %v1989_v43  ;;  %v900_v46 = vadd.f32 %v892_v49, %v882_v18  ;;  %v1013_v58 = vmul.f32 %v5134_v60, %v4530_v15  ;;  %v5293_v49 = vld [vmem:[%s6605_s1 + $0x140] sm:$0xff] }
 0x107   :  { %855 = vrot.lane.b32.xlu0 %v832_v36, %s3593_s22  ;;  %v953_v38 = vmax.f32 %v945_v26, 0.0  ;;  %v1031_v62 = vmul.f32 %v5143_v0, %v4539_v54  ;;  %v1049_v29 = vmul.f32 %v5150_v35, %v4542_v56  ;;  %v1848_v34 = vmul.f32 %v5204_v17, %v4556_v28 }
 0x108   :  { %v1790_v31 = vadd.f32 %v4496_v32, %v1780_v48  ;;  %v2025_v10 = vadd.f32 %v2017_v2, %v2007_v16  ;;  %v918_v42 = vadd.f32 %v910_v57, %v900_v46  ;;  %v1021_v47 = vadd.f32 %v1013_v58, %v1003_v24  ;;  %v5287_v2 = vld [vmem:[%s6605_s1 + $0x100] sm:$0xff] }
 0x109   :  { %975 = vrot.lane.b32.xlu1 %v953_v38, %s3594_s25  ;;  %v1858_v63 = vmul.f32 %v5215_v5, %v4559_v20  ;;  %v1876_v26 = vmul.f32 %v5220_v4, %v4573_v50  ;;  %v1894_v8 = vmul.f32 %v5225_v1, %v4576_v39  ;;  %v1004_v41 = vmul.f32 %v5167_v11, %v4527_v14  ;;  %v5298_v57 = vld [vmem:[%s6605_s1 + $0x180] sm:$0xff] }
 0x10a   :  { %v1798_v9 = vmax.f32 %v1790_v31, 0.0  ;;  %v2035_v18 = vadd.f32 %v4651_v12, %v2025_v10  ;;  %v936_v27 = vadd.f32 %v928_v22, %v918_v42  ;;  %v1039_v43 = vadd.f32 %v1031_v62, %v1021_v47  ;;  %v5309_v48 = vld [vmem:[%s6605_s1 + $0x1c0] sm:$0xff] }
 0x10b   :  { %v1866_v14 = vadd.f32 %v1858_v63, %v1848_v34  ;;  %v1014_v36 = vmul.f32 %v5179_v51, %v4530_v15  ;;  %v1032_v24 = vmul.f32 %v5186_v6, %v4539_v54  ;;  %v1050_v22 = vmul.f32 %v5197_v21, %v4542_v56 }
 0x10c   :  { %1815 = vrot.lane.b32.xlu0 %v1798_v9, %s3593_s22  ;;  %v2043_v16 = vmax.f32 %v2035_v18, 0.0  ;;  %v946_v46 = vadd.f32 %v4459_v7, %v936_v27  ;;  %v1057_v58 = vadd.f32 %v1049_v29, %v1039_v43  ;;  %v1725_v15 = vmul.f32 %v5287_v2, %v4467_v53 }
 0x10d   :  { %v1884_v38 = vadd.f32 %v1876_v26, %v1866_v14  ;;  %v1022_v62 = vadd.f32 %v1014_v36, %v1004_v41  ;;  %v1735_v54 = vmul.f32 %v5293_v49, %v4487_v30  ;;  %v1753_v56 = vmul.f32 %v5298_v57, %v4490_v33 }
 0x10e   :  { %2061 = vrot.lane.b32.xlu1 %v2043_v16, %s3595_s5  ;;  %v954_v34 = vmax.f32 %v946_v46, 0.0  ;;  %v1067_v31 = vadd.f32 %v4545_v59, %v1057_v58  ;;  %v1771_v7 = vmul.f32 %v5309_v48, %v4493_v13  ;;  %v1970_v29 = vmul.f32 %v5204_v17, %v4627_v61  ;;  %v3410_v58 = vld [vmem:[%s6605_s1] sm:$0xff] }
 0x10f   :  { %v1902_v53 = vadd.f32 %v1894_v8, %v1884_v38  ;;  %v1040_v10 = vadd.f32 %v1032_v24, %v1022_v62  ;;  %v1743_v42 = vadd.f32 %v1735_v54, %v1725_v15  ;;  %v1980_v30 = vmul.f32 %v5215_v5, %v4632_v23  ;;  %v6719_v15 = vld [vmem:[#allocation30_spill] sm:$0xff]  ;;  %v6720_v54 = vld [vmem:[#allocation35_spill] sm:$0xff] }
 0x110   :  { %977 = vrot.lane.b32.xlu0 %v954_v34, %s3594_s25  ;;  %v1075_v33 = vmax.f32 %v1067_v31, 0.0  ;;  %v1998_v47 = vmul.f32 %v5220_v4, %v4639_v25  ;;  %v2016_v63 = vmul.f32 %v5225_v1, %v4642_v37  ;;  %v1847_v13 = vmul.f32 %v5287_v2, %v4556_v28 }
 0x111   :  { %v1912_v26 = vadd.f32 %v4579_v40, %v1902_v53  ;;  %v1058_v8 = vadd.f32 %v1050_v22, %v1040_v10  ;;  %v1761_v41 = vadd.f32 %v1753_v56, %v1743_v42  ;;  %v1988_v9 = vadd.f32 %v1980_v30, %v1970_v29  ;;  %v3412_v56 = vld [vmem:[%s6605_s1 + $0x80] sm:$0xff]  ;;  %v3414_v53 = vld [vmem:[%s6605_s1 + $0x8] sm:$0xff] }
 0x112   :  { %1097 = vrot.lane.b32.xlu1 %v1075_v33, %s3595_s5  ;;  %v1857_v18 = vmul.f32 %v5293_v49, %v4559_v20  ;;  %v1875_v27 = vmul.f32 %v5298_v57, %v4573_v50  ;;  %v1893_v28 = vmul.f32 %v5309_v48, %v4576_v39  ;;  %v1969_v43 = vmul.f32 %v5287_v2, %v4627_v61 }
 0x113   :  { %v1920_v14 = vmax.f32 %v1912_v26, 0.0  ;;  %v1068_v36 = vadd.f32 %v4545_v59, %v1058_v8  ;;  %v1779_v24 = vadd.f32 %v1771_v7, %v1761_v41  ;;  %v2006_v22 = vadd.f32 %v1998_v47, %v1988_v9  ;;  %v3413_v7 = vld [vmem:[%s6605_s1 + $0xc0] sm:$0xff]  ;;  %v3415_v47 = vld [vmem:[%s6605_s1 + $0x48] sm:$0xff] }
 0x114   :  { %v1865_v16 = vadd.f32 %v1857_v18, %v1847_v13  ;;  %v1979_v20 = vmul.f32 %v5293_v49, %v4632_v23  ;;  %v1997_v50 = vmul.f32 %v5298_v57, %v4639_v25  ;;  %v2015_v39 = vmul.f32 %v5309_v48, %v4642_v37  ;;  %v3411_v25 = vld [vmem:[%s6605_s1 + $0x40] sm:$0xff]  ;;  %v3416_v26 = vld [vmem:[%s6605_s1 + $0x88] sm:$0xff] }
 0x115   :  { %1937 = vrot.lane.b32.xlu0 %v1920_v14, %s3594_s25  ;;  %v1076_v61 = vmax.f32 %v1068_v36, 0.0  ;;  %v1789_v46 = vadd.f32 %v4496_v32, %v1779_v24  ;;  %v2024_v59 = vadd.f32 %v2016_v63, %v2006_v22  ;;  %v663_v38 = vmul.f32 %v3410_v58, %v6719_v15  ;;  %v3417_v41 = vld [vmem:[%s6605_s1 + $0xc8] sm:$0xff]  ;;  %v5406_v36 = vld [vmem:[%s6605_s1 + $0x138] sm:$0xff] }
 0x116   :  { %v1883_v62 = vadd.f32 %v1875_v27, %v1865_v16  ;;  %v1987_v23 = vadd.f32 %v1979_v20, %v1969_v43  ;;  %v673_v37 = vmul.f32 %v3411_v25, %v6720_v54  ;;  %v691_v32 = vmul.f32 %v3412_v56, %v5002_v45  ;;  %v5430_v58 = vld [vmem:[%s6605_s1 + $0x1b8] sm:$0xff] }
 0x117   :  { %1099 = vrot.lane.b32.xlu1 %v1076_v61, %s3595_s5  ;;  %v1797_v34 = vmax.f32 %v1789_v46, 0.0  ;;  %v2034_v31 = vadd.f32 %v4651_v12, %v2024_v59  ;;  %v709_v29 = vmul.f32 %v3413_v7, %v5104_v19  ;;  %v664_v10 = vmul.f32 %v3414_v53, %v6719_v15  ;;  %v5423_v46 = vld [vmem:[%s6605_s1 + $0x178] sm:$0xff]  ;;  %v5453_v7 = vld [vmem:[%s6605_s1 + $0x170] sm:$0xff] }
 0x118   :  { %v1901_v42 = vadd.f32 %v1893_v28, %v1883_v62  ;;  %v2005_v30 = vadd.f32 %v1997_v50, %v1987_v23  ;;  %v681_v33 = vadd.f32 %v673_v37, %v663_v38  ;;  %v674_v63 = vmul.f32 %v3415_v47, %v6720_v54  ;;  %v6721_v62 = vld [vmem:[#allocation22_spill] sm:$0xff] }
 0x119   :  { %1813 = vrot.lane.b32.xlu0 %v1797_v34, %s3593_s22  ;;  %v2042_v13 = vmax.f32 %v2034_v31, 0.0  ;;  %v692_v8 = vmul.f32 %v3416_v26, %v5002_v45  ;;  %v710_v9 = vmul.f32 %v3417_v41, %v5104_v19  ;;  %v5397_v18 = vstv %s5334_s29  ;;  %v5439_v37 = vld [vmem:[%s6605_s1 + $0x130] sm:$0xff]  ;;  %v5446_v34 = vld [vmem:[%s6605_s1 + $0x1f8] sm:$0xff]  ;;  %s3201_s29 = sld [smem:[#allocation5 + $0x8b]] }
 0x11a   :  { %v1911_v27 = vadd.f32 %v4579_v40, %v1901_v42  ;;  %v2023_v28 = vadd.f32 %v2015_v39, %v2005_v30  ;;  %v699_v43 = vadd.f32 %v691_v32, %v681_v33  ;;  %v682_v14 = vadd.f32 %v674_v63, %v664_v10  ;;  %v5460_v53 = vld [vmem:[%s6605_s1 + $0x1b0] sm:$0xff] }
 0x11b   :  { %2059 = vrot.lane.b32.xlu1 %v2042_v13, %s3595_s5  ;;  %v1642_v24 = vmul.f32 %v5406_v36, %v5397_v18  ;;  %v5411_v22 = vstv %s5337_s4  ;;  %v5414_v16 = vstv %s5348_s17  ;;  %v5417_v40 = vstv %s5351_s18  ;;  %s3191_s18 = sld [smem:[#allocation5 + $0x89]] }
 0x11c   :  { %v1919_v20 = vmax.f32 %v1911_v27, 0.0  ;;  %v2033_v50 = vadd.f32 %v4651_v12, %v2023_v28  ;;  %v717_v39 = vadd.f32 %v709_v29, %v699_v43  ;;  %v700_v61 = vadd.f32 %v692_v8, %v682_v14  ;;  %v5469_v13 = vld [vmem:[%s6605_s1 + $0x1f0] sm:$0xff]  ;;  %s3202_s4 = sld [smem:[#allocation5 + $0x10b]] }
 0x11d   :  { %v1652_v59 = vmul.f32 %v5423_v46, %v5411_v22  ;;  %v1670_v38 = vmul.f32 %v5430_v58, %v5414_v16  ;;  %v1641_v56 = vmul.f32 %v5439_v37, %v5397_v18  ;;  %v1688_v31 = vmul.f32 %v5446_v34, %v5417_v40  ;;  %v842_v33 = vpop.permute.xlu0 %841  ;;  %s3203_s17 = sld [smem:[#allocation5 + $0x18b]] }
 0x11e   :  { %1935 = vrot.lane.b32.xlu0 %v1919_v20, %s3594_s25  ;;  %v2041_v12 = vmax.f32 %v2033_v50, 0.0  ;;  %v727_v23 = vadd.f32 %v6721_v62, %v717_v39  ;;  %v718_v25 = vadd.f32 %v710_v9, %v700_v61  ;;  %v1651_v29 = vmul.f32 %v5453_v7, %v5411_v22 }
 0x11f   :  { %v1660_v32 = vadd.f32 %v1652_v59, %v1642_v24  ;;  %v1669_v10 = vmul.f32 %v5460_v53, %v5414_v16  ;;  %v1687_v26 = vmul.f32 %v5469_v13, %v5417_v40  ;;  %v5475_v41 = vstv %s5400_s27  ;;  %v844_v9 = vpop.permute.xlu1 %843  ;;  %s3099_s27 = sld [smem:[#allocation10 + $0x181]] }
 0x120   :  { %2057 = vrot.lane.b32.xlu1 %v2041_v12, %s3595_s5  ;;  %v735_v42 = vmax.f32 %v727_v23, 0.0  ;;  %v728_v30 = vadd.f32 %v6721_v62, %v718_v25  ;;  %v1659_v63 = vadd.f32 %v1651_v29, %v1641_v56  ;;  %v3426_v23 = vld [vmem:[%s6605_s1 + $0x10] sm:$0xff] }
 0x121   :  { %v1678_v47 = vadd.f32 %v1670_v38, %v1660_v32  ;;  %v665_v25 = vmul.f32 %v3426_v23, %v6719_v15  ;;  %v3427_v56 = vld [vmem:[%s6605_s1 + $0x50] sm:$0xff] }
 0x122   :  { %743 = vst.msk [vmem:[#allocation4] sm:$0xff] %vm283_vm0, %v735_v42  ;;  %v736_v8 = vmax.f32 %v728_v30, 0.0  ;;  %v1677_v28 = vadd.f32 %v1669_v10, %v1659_v63  ;;  %v964_v24 = vpop.permute.xlu0 %963  ;;  %v675_v32 = vmul.f32 %v3427_v56, %v6720_v54  ;;  %v3428_v10 = vld [vmem:[%s6605_s1 + $0x90] sm:$0xff] }
 0x123   :  { %865 = vst.msk [vmem:[#allocation4] sm:$0xff] %vm406_vm3, %v842_v33  ;;  %v1696_v27 = vadd.f32 %v1688_v31, %v1678_v47  ;;  %v693_v42 = vmul.f32 %v3428_v10, %v5002_v45  ;;  %v3429_v47 = vld [vmem:[%s6605_s1 + $0xd0] sm:$0xff] }
 0x124   :  { %744 = vst.msk [vmem:[#allocation4 + $0x8] sm:$0xff] %vm283_vm0, %v736_v8  ;;  %v1695_v14 = vadd.f32 %v1687_v26, %v1677_v28  ;;  %v683_v29 = vadd.f32 %v675_v32, %v665_v25  ;;  %v711_v63 = vmul.f32 %v3429_v47, %v5104_v19  ;;  %v3430_v26 = vld [vmem:[%s6605_s1 + $0x18] sm:$0xff]  ;;  %v5540_v25 = vld [vmem:[%s6605_s1 + $0x168] sm:$0xff] }
 0x125   :  { %866 = vst.msk [vmem:[#allocation4 + $0x8] sm:$0xff] %vm406_vm3, %v844_v9  ;;  %v1706_v43 = vadd.f32 %v5475_v41, %v1696_v27  ;;  %v666_v8 = vmul.f32 %v3430_v26, %v6719_v15  ;;  %v3431_v9 = vld [vmem:[%s6605_s1 + $0x58] sm:$0xff]  ;;  %v1650_v56 = vmul.f32 %v5540_v25, %v5411_v22  ;;  %v5556_v47 = vld [vmem:[%s6605_s1 + $0x1e8] sm:$0xff] }
 0x126   :  { %v1705_v50 = vadd.f32 %v5475_v41, %v1695_v14  ;;  %987 = vst.msk [vmem:[#allocation4] sm:$0xff] %vm529_vm4, %v964_v24  ;;  %v701_v33 = vadd.f32 %v693_v42, %v683_v29  ;;  %v676_v27 = vmul.f32 %v3431_v9, %v6720_v54  ;;  %v3432_v24 = vld [vmem:[%s6605_s1 + $0x98] sm:$0xff]  ;;  %v5547_v29 = vld [vmem:[%s6605_s1 + $0x1a8] sm:$0xff] }
 0x127   :  { %v1714_v20 = vmax.f32 %v1706_v43, 0.0  ;;  %v1828_v61 = vpop.permute.xlu1 %1827  ;;  %v1668_v10 = vmul.f32 %v5547_v29, %v5414_v16 }
 0x128   :  { %v1713_v39 = vmax.f32 %v1705_v50, 0.0  ;;  %v966_v59 = vpop.permute.xlu0 %965  ;;  %v719_v43 = vadd.f32 %v711_v63, %v701_v33  ;;  %v684_v14 = vadd.f32 %v676_v27, %v666_v8  ;;  %v1686_v63 = vmul.f32 %v5556_v47, %v5417_v40 }
 0x129   :  { %1722 = vst.msk [vmem:[#allocation3 + $0x38] sm:$0xff] %vm283_vm0, %v1714_v20  ;;  %v694_v20 = vmul.f32 %v3432_v24, %v5002_v45 }
 0x12a   :  { %1721 = vst.msk [vmem:[#allocation3 + $0x30] sm:$0xff] %vm283_vm0, %v1713_v39  ;;  %v729_v39 = vadd.f32 %v6721_v62, %v719_v43 }
 0x12b   :  { %1844 = vst.msk [vmem:[#allocation3 + $0x38] sm:$0xff] %vm406_vm3, %v1828_v61  ;;  %v1086_v38 = vpop.permute.xlu1 %1085  ;;  %v702_v61 = vadd.f32 %v694_v20, %v684_v14 }
 0x12c   :  { %988 = vst.msk [vmem:[#allocation4 + $0x8] sm:$0xff] %vm529_vm4, %v966_v59  ;;  %v3433_v59 = vld [vmem:[%s6605_s1 + $0xd8] sm:$0xff]  ;;  %v737_v32 = vmax.f32 %v729_v39, 0.0 }
 0x12d   :  { %1109 = vst.msk [vmem:[#allocation4] sm:$0xff] %vm652_vm5, %v1086_v38  ;;  %v712_v38 = vmul.f32 %v3433_v59, %v5104_v19 }
 0x12e   :  { %745 = vst.msk [vmem:[#allocation4 + $0x10] sm:$0xff] %vm283_vm0, %v737_v32 }
 0x12f   :  { %v1950_v12 = vpop.permute.xlu0 %1949 }
 0x130   :  { %1966 = vst.msk [vmem:[#allocation3 + $0x38] sm:$0xff] %vm529_vm4, %v1950_v12  ;;  %v5528_v12 = vld [vmem:[%s6605_s1 + $0x128] sm:$0xff] }
 0x131   :  { %v1640_v23 = vmul.f32 %v5528_v12, %v5397_v18 }
 0x132   :  { %v1088_v31 = vpop.permute.xlu1 %1087 }
 0x133   :  { %1110 = vst.msk [vmem:[#allocation4 + $0x8] sm:$0xff] %vm652_vm5, %v1088_v31  ;;  %v720_v31 = vadd.f32 %v712_v38, %v702_v61  ;;  %v1658_v42 = vadd.f32 %v1650_v56, %v1640_v23  ;;  %v5583_v61 = vld [vmem:[%s6605_s1 + $0x120] sm:$0xff]  ;;  %v6722_v38 = vld [vmem:[#allocation27_spill] sm:$0xff] }
 0x134   :  { %v1826_v30 = vpop.permute.xlu0 %1825  ;;  %v1127_v50 = vld [vmem:[#allocation4] sm:$0xff]  ;;  %v1639_v59 = vmul.f32 %v5583_v61, %v5397_v18  ;;  %v1649_v23 = vmul.f32 %v6722_v38, %v5411_v22 }
 0x135   :  { %1843 = vst.msk [vmem:[#allocation3 + $0x30] sm:$0xff] %vm406_vm3, %v1826_v30  ;;  %3312 = vmatprep.mubr.msk.f32.mxu1 %vm1138_vm6, %v1127_v50  ;;  %v730_v33 = vadd.f32 %v6721_v62, %v720_v31  ;;  %v1676_v8 = vadd.f32 %v1668_v10, %v1658_v42  ;;  %v6723_v31 = vld [vmem:[#allocation28_spill] sm:$0xff] }
 0x136   :  { %1147 = vst.msk [vmem:[%s6613_s9] sm:$0xff] %vm1138_vm6, %v1127_v50  ;;  %v1657_v32 = vadd.f32 %v1649_v23, %v1639_v59  ;;  %v1667_v10 = vmul.f32 %v6723_v31, %v5414_v16  ;;  %v6729_v31 = vld [vmem:[#allocation36_spill] sm:$0xff] }
 0x137   :  { %v2072_v28 = vpop.permute.xlu1 %2071  ;;  %v738_v27 = vmax.f32 %v730_v33, 0.0  ;;  %v6724_v33 = vld [vmem:[#allocation29_spill] sm:$0xff] }
 0x138   :  { %2088 = vst.msk [vmem:[#allocation3 + $0x38] sm:$0xff] %vm652_vm5, %v2072_v28  ;;  %v1694_v28 = vadd.f32 %v1686_v63, %v1676_v8  ;;  %v1685_v63 = vmul.f32 %v6724_v33, %v5417_v40  ;;  %v6730_v33 = vld [vmem:[#allocation37_spill] sm:$0xff] }
 0x139   :  { %746 = vst.msk [vmem:[#allocation4 + $0x18] sm:$0xff] %vm283_vm0, %v738_v27  ;;  %v6726_v27 = vld [vmem:[#allocation32_spill] sm:$0xff] }
 0x13a   :  { %v846_v30 = vpop.permute.xlu0 %845  ;;  %v5561_v9 = vld [vmem:[#allocation4 + $0x8] sm:$0xff]  ;;  %v1704_v24 = vadd.f32 %v5475_v41, %v1694_v28  ;;  %v677_v28 = vmul.f32 %v6726_v27, %v6720_v54  ;;  %v6731_v27 = vld [vmem:[#allocation38_spill] sm:$0xff] }
 0x13b   :  { %867 = vst.msk [vmem:[#allocation4 + $0x10] sm:$0xff] %vm406_vm3, %v846_v30  ;;  %v1948_v26 = vpop.permute.xlu1 %1947  ;;  %v1675_v30 = vadd.f32 %v1667_v10, %v1657_v32  ;;  %v668_v10 = vmul.f32 %v6729_v31, %v6719_v15 }
 0x13c   :  { %1965 = vst.msk [vmem:[#allocation3 + $0x30] sm:$0xff] %vm529_vm4, %v1948_v26  ;;  %v1712_v50 = vmax.f32 %v1704_v24, 0.0  ;;  %v6725_v26 = vld [vmem:[#allocation31_spill] sm:$0xff] }
 0x13d   :  { %1148 = vst.msk [vmem:[%s6613_s9 + $0x8] sm:$0xff] %vm1138_vm6, %v5561_v9  ;;  %v667_v8 = vmul.f32 %v6725_v26, %v6719_v15 }
 0x13e   :  { %v848_v43 = vpop.permute.xlu0 %847  ;;  %1720 = vst.msk [vmem:[#allocation3 + $0x28] sm:$0xff] %vm283_vm0, %v1712_v50  ;;  %v6727_v50 = vld [vmem:[#allocation33_spill] sm:$0xff] }
 0x13f   :  { %868 = vst.msk [vmem:[#allocation4 + $0x18] sm:$0xff] %vm406_vm3, %v848_v43  ;;  %v5572_v20 = vld [vmem:[#allocation3 + $0x38] sm:$0xff]  ;;  %v685_v24 = vadd.f32 %v677_v28, %v667_v8  ;;  %v696_v28 = vmul.f32 %v6731_v27, %v5002_v45 }
 0x140   :  { %v968_v14 = vpop.permute.xlu1 %967  ;;  %3212 = vst.msk [vmem:[%s6612_s8 + $0x78] sm:$0xff] %vm1138_vm6, %v5572_v20 }
 0x141   :  { %989 = vst.msk [vmem:[#allocation4 + $0x10] sm:$0xff] %vm529_vm4, %v968_v14  ;;  %v1693_v14 = vadd.f32 %v1685_v63, %v1675_v30  ;;  %v678_v30 = vmul.f32 %v6730_v33, %v6720_v54 }
 0x143   :  { %v1824_v39 = vpop.permute.xlu0 %1823  ;;  %v1703_v38 = vadd.f32 %v5475_v41, %v1693_v14 }
 0x144   :  { %1842 = vst.msk [vmem:[#allocation3 + $0x28] sm:$0xff] %vm406_vm3, %v1824_v39  ;;  %v695_v39 = vmul.f32 %v6727_v50, %v5002_v45  ;;  %v6732_v50 = vld [vmem:[#allocation39_spill] sm:$0xff] }
 0x145   :  { %v1711_v26 = vmax.f32 %v1703_v38, 0.0 }
 0x146   :  { %v2070_v56 = vpop.permute.xlu1 %2069  ;;  %v703_v23 = vadd.f32 %v695_v39, %v685_v24  ;;  %v714_v39 = vmul.f32 %v6732_v50, %v5104_v19 }
 0x147   :  { %2087 = vst.msk [vmem:[#allocation3 + $0x30] sm:$0xff] %vm652_vm5, %v2070_v56  ;;  %v6728_v56 = vld [vmem:[#allocation34_spill] sm:$0xff] }
 0x148   :  { %v970_v42 = vpop.permute.xlu0 %969  ;;  %v713_v32 = vmul.f32 %v6728_v56, %v5104_v19  ;;  %1719 = vst.msk [vmem:[#allocation3 + $0x20] sm:$0xff] %vm283_vm0, %v1711_v26 }
 0x149   :  { %990 = vst.msk [vmem:[#allocation4 + $0x18] sm:$0xff] %vm529_vm4, %v970_v42 }
 0x14a   :  { %v721_v8 = vadd.f32 %v713_v32, %v703_v23  ;;  %v6734_v23 = vld [vmem:[#allocation41_spill] sm:$0xff] }
 0x14b   :  { %v1090_v43 = vpop.permute.xlu1 %1089  ;;  %v1648_v56 = vmul.f32 %v6734_v23, %v5411_v22 }
 0x14c   :  { %1111 = vst.msk [vmem:[#allocation4 + $0x10] sm:$0xff] %vm652_vm5, %v1090_v43  ;;  %v686_v43 = vadd.f32 %v678_v30, %v668_v10  ;;  %v731_v24 = vadd.f32 %v6721_v62, %v721_v8  ;;  %v6735_v30 = vld [vmem:[#allocation42_spill] sm:$0xff] }
 0x14d   :  { %v1946_v59 = vpop.permute.xlu0 %1945  ;;  %v1666_v26 = vmul.f32 %v6735_v30, %v5414_v16  ;;  %v1647_v30 = vmul.f32 %v5071_v52, %v5411_v22  ;;  %v679_v52 = vmul.f32 %v5134_v60, %v6720_v54  ;;  %v680_v60 = vmul.f32 %v5179_v51, %v6720_v54 }
 0x14e   :  { %1964 = vst.msk [vmem:[#allocation3 + $0x28] sm:$0xff] %vm529_vm4, %v1946_v59  ;;  %v5612_v63 = vld [vmem:[#allocation3 + $0x30] sm:$0xff]  ;;  %v704_v31 = vadd.f32 %v696_v28, %v686_v43  ;;  %v739_v10 = vmax.f32 %v731_v24, 0.0  ;;  %v6736_v43 = vld [vmem:[#allocation43_spill] sm:$0xff]  ;;  %v716_v51 = vmul.f32 %v5197_v21, %v5104_v19 }
 0x14f   :  { %3211 = vst.msk [vmem:[%s6612_s8 + $0x70] sm:$0xff] %vm1138_vm6, %v5612_v63  ;;  %v6733_v59 = vld [vmem:[#allocation40_spill] sm:$0xff] }
 0x150   :  { %v1092_v42 = vpop.permute.xlu1 %1091  ;;  %v1638_v38 = vmul.f32 %v6733_v59, %v5397_v18  ;;  %v722_v8 = vadd.f32 %v714_v39, %v704_v31  ;;  %747 = vst.msk [vmem:[#allocation4 + $0x20] sm:$0xff] %vm283_vm0, %v739_v10 }
 0x151   :  { %1112 = vst.msk [vmem:[#allocation4 + $0x18] sm:$0xff] %vm652_vm5, %v1092_v42 }
 0x152   :  { %v1822_v14 = vpop.permute.xlu0 %1821  ;;  %v1656_v33 = vadd.f32 %v1648_v56, %v1638_v38  ;;  %v732_v24 = vadd.f32 %v6721_v62, %v722_v8 }
 0x153   :  { %1841 = vst.msk [vmem:[#allocation3 + $0x20] sm:$0xff] %vm406_vm3, %v1822_v14  ;;  %v5631_v42 = vld [vmem:[#allocation4 + $0x10] sm:$0xff]  ;;  %v1684_v14 = vmul.f32 %v6736_v43, %v5417_v40 }
 0x154   :  { %v2068_v32 = vpop.permute.xlu1 %2067  ;;  %1149 = vst.msk [vmem:[%s6613_s9 + $0x10] sm:$0xff] %vm1138_vm6, %v5631_v42  ;;  %v1674_v28 = vadd.f32 %v1666_v26, %v1656_v33  ;;  %v740_v39 = vmax.f32 %v732_v24, 0.0  ;;  %v1637_v33 = vmul.f32 %v5056_v55, %v5397_v18  ;;  %v669_v55 = vmul.f32 %v5127_v3, %v6719_v15 }
 0x155   :  { %2086 = vst.msk [vmem:[#allocation3 + $0x28] sm:$0xff] %vm652_vm5, %v2068_v32  ;;  %v670_v3 = vmul.f32 %v5167_v11, %v6719_v15  ;;  %v1664_v11 = vmul.f32 %v5220_v4, %v5414_v16 }
 0x156   :  { %v1692_v38 = vadd.f32 %v1684_v14, %v1674_v28  ;;  %748 = vst.msk [vmem:[#allocation4 + $0x28] sm:$0xff] %vm283_vm0, %v740_v39  ;;  %v1655_v8 = vadd.f32 %v1647_v30, %v1637_v33  ;;  %v6737_v14 = vld [vmem:[#allocation44_spill] sm:$0xff]  ;;  %v687_v39 = vadd.f32 %v679_v52, %v669_v55  ;;  %v1636_v33 = vmul.f32 %v5204_v17, %v5397_v18 }
 0x157   :  { %v1683_v24 = vmul.f32 %v6737_v14, %v5417_v40  ;;  %v688_v15 = vadd.f32 %v680_v60, %v670_v3  ;;  %v1635_v3 = vmul.f32 %v5287_v2, %v5397_v18  ;;  %v1645_v60 = vmul.f32 %v5293_v49, %v5411_v22 }
 0x158   :  { %v850_v27 = vpop.permute.xlu0 %849  ;;  %v5646_v50 = vld [vmem:[#allocation4 + $0x18] sm:$0xff]  ;;  %v1702_v56 = vadd.f32 %v5475_v41, %v1692_v38 }
 0x159   :  { %869 = vst.msk [vmem:[#allocation4 + $0x20] sm:$0xff] %vm406_vm3, %v850_v27  ;;  %v1665_v27 = vmul.f32 %v5076_v44, %v5414_v16 }
 0x15a   :  { %v1944_v59 = vpop.permute.xlu1 %1943  ;;  %1150 = vst.msk [vmem:[%s6613_s9 + $0x18] sm:$0xff] %vm1138_vm6, %v5646_v50  ;;  %v1710_v31 = vmax.f32 %v1702_v56, 0.0 }
 0x15b   :  { %1963 = vst.msk [vmem:[#allocation3 + $0x20] sm:$0xff] %vm529_vm4, %v1944_v59  ;;  %v1673_v43 = vadd.f32 %v1665_v27, %v1655_v8 }
 0x15c   :  { %v852_v23 = vpop.permute.xlu0 %851  ;;  %v5656_v32 = vld [vmem:[#allocation3 + $0x28] sm:$0xff]  ;;  %1718 = vst.msk [vmem:[#allocation3 + $0x18] sm:$0xff] %vm283_vm0, %v1710_v31 }
 0x15d   :  { %870 = vst.msk [vmem:[#allocation4 + $0x28] sm:$0xff] %vm406_vm3, %v852_v23  ;;  %v1691_v38 = vadd.f32 %v1683_v24, %v1673_v43  ;;  %v697_v23 = vmul.f32 %v5143_v0, %v5002_v45  ;;  %v698_v0 = vmul.f32 %v5186_v6, %v5002_v45 }
 0x15e   :  { %3210 = vst.msk [vmem:[%s6612_s8 + $0x68] sm:$0xff] %vm1138_vm6, %v5656_v32 }
 0x15f   :  { %v972_v10 = vpop.permute.xlu1 %971  ;;  %v1701_v56 = vadd.f32 %v5475_v41, %v1691_v38  ;;  %v705_v31 = vadd.f32 %v697_v23, %v687_v39 }
 0x160   :  { %991 = vst.msk [vmem:[#allocation4 + $0x20] sm:$0xff] %vm529_vm4, %v972_v10  ;;  %v715_v10 = vmul.f32 %v5150_v35, %v5104_v19  ;;  %v1646_v35 = vmul.f32 %v5215_v5, %v5411_v22  ;;  %v706_v19 = vadd.f32 %v698_v0, %v688_v15  ;;  %v1681_v22 = vmul.f32 %v5309_v48, %v5417_v40 }
 0x161   :  { %v1820_v26 = vpop.permute.xlu0 %1819 }
 0x162   :  { %1840 = vst.msk [vmem:[#allocation3 + $0x18] sm:$0xff] %vm406_vm3, %v1820_v26  ;;  %v1709_v26 = vmax.f32 %v1701_v56, 0.0  ;;  %v723_v8 = vadd.f32 %v715_v10, %v705_v31  ;;  %v1654_v27 = vadd.f32 %v1646_v35, %v1636_v33  ;;  %v724_v24 = vadd.f32 %v716_v51, %v706_v19 }
 0x163   :  { %v2066_v28 = vpop.permute.xlu1 %2065 }
 0x164   :  { %2085 = vst.msk [vmem:[#allocation3 + $0x20] sm:$0xff] %vm652_vm5, %v2066_v28  ;;  %v733_v6 = vadd.f32 %v6721_v62, %v723_v8  ;;  %v1682_v28 = vmul.f32 %v5225_v1, %v5417_v40  ;;  %v1672_v43 = vadd.f32 %v1664_v11, %v1654_v27  ;;  %v734_v38 = vadd.f32 %v6721_v62, %v724_v24  ;;  %v5787_v24 = vld [vmem:[#allocation2] sm:$0xff] }
 0x165   :  { %1717 = vst.msk [vmem:[#allocation3 + $0x10] sm:$0xff] %vm283_vm0, %v1709_v26  ;;  %v1663_v26 = vmul.f32 %v5298_v57, %v5414_v16  ;;  %6745 = vst [vmem:[#allocation27_spill] sm:$0xff] %v5787_v24 }
 0x166   :  { %v974_v59 = vpop.permute.xlu0 %973  ;;  %v741_v21 = vmax.f32 %v733_v6, 0.0  ;;  %v1690_v55 = vadd.f32 %v1682_v28, %v1672_v43  ;;  %2564 = vst.msk [vmem:[#allocation14 + $0x10] sm:$0xff] %vm1135_vm2, %v5787_v24 }
 0x167   :  { %992 = vst.msk [vmem:[#allocation4 + $0x28] sm:$0xff] %vm529_vm4, %v974_v59 }
 0x168   :  { %749 = vst.msk [vmem:[#allocation4 + $0x30] sm:$0xff] %vm283_vm0, %v741_v21  ;;  %v1700_v39 = vadd.f32 %v5475_v41, %v1690_v55  ;;  %v5791_v55 = vld [vmem:[#allocation2 + $0x8] sm:$0xff] }
 0x169   :  { %v1094_v44 = vpop.permute.xlu1 %1093  ;;  %6746 = vst [vmem:[#allocation28_spill] sm:$0xff] %v5791_v55  ;;  %2565 = vst.msk [vmem:[#allocation14 + $0x18] sm:$0xff] %vm1135_vm2, %v5791_v55 }
 0x16a   :  { %1113 = vst.msk [vmem:[#allocation4 + $0x20] sm:$0xff] %vm652_vm5, %v1094_v44  ;;  %v742_v44 = vmax.f32 %v734_v38, 0.0  ;;  %v1708_v56 = vmax.f32 %v1700_v39, 0.0  ;;  %v5809_v39 = vstv %s3190_s19  ;;  %s3596_s19 = smov [#allocation14]  }
 0x16b   :  { %v1942_v30 = vpop.permute.xlu0 %1941  ;;  %v5702_v54 = vld [vmem:[#allocation3 + $0x20] sm:$0xff] }
 0x16c   :  { %1962 = vst.msk [vmem:[#allocation3 + $0x18] sm:$0xff] %vm529_vm4, %v1942_v30  ;;  %6738 = vst [vmem:[#allocation24_spill] sm:$0xff] %v5702_v54  ;;  %v1653_v30 = vadd.f32 %v1645_v60, %v1635_v3  ;;  %v5830_v60 = vstv %s3192_s13 }
 0x16d   :  { %v1096_v45 = vpop.permute.xlu1 %1095  ;;  %3209 = vst.msk [vmem:[%s6612_s8 + $0x60] sm:$0xff] %vm1138_vm6, %v5702_v54  ;;  %v5916_v54 = vstv %s3203_s17 }
 0x16e   :  { %1114 = vst.msk [vmem:[#allocation4 + $0x28] sm:$0xff] %vm652_vm5, %v1096_v45  ;;  %v1671_v18 = vadd.f32 %v1663_v26, %v1653_v30  ;;  %v5839_v30 = vld [vmem:[%s6605_s1 + $0x150] sm:$0xff] }
 0x16f   :  { %750 = vst.msk [vmem:[#allocation4 + $0x38] sm:$0xff] %vm283_vm0, %v742_v44  ;;  %1716 = vst.msk [vmem:[#allocation3 + $0x8] sm:$0xff] %vm283_vm0, %v1708_v56  ;;  %v5815_v44 = vstv %s3191_s18  ;;  %v2182_v56 = vmul.f32 %v5204_v17, %v5809_v39  ;;  %s3204_s18 = sld [smem:[#allocation8 + $0xb]] }
 0x170   :  { %v1818_v14 = vpop.permute.xlu0 %1817  ;;  %v1689_v35 = vadd.f32 %v1681_v22, %v1671_v18  ;;  %v2191_v3 = vmul.f32 %v5293_v49, %v5815_v44  ;;  %6749 = vst [vmem:[#allocation32_spill] sm:$0xff] %v5839_v30  ;;  %v2193_v26 = vmul.f32 %v5839_v30, %v5815_v44  ;;  %v2209_v18 = vmul.f32 %v5298_v57, %v5830_v60 }
 0x171   :  { %1839 = vst.msk [vmem:[#allocation3 + $0x10] sm:$0xff] %vm406_vm3, %v1818_v14  ;;  %v5716_v52 = vld [vmem:[#allocation4 + $0x20] sm:$0xff]  ;;  %v5845_v22 = vstv %s3193_s20 }
 0x172   :  { %6739 = vst [vmem:[#allocation25_spill] sm:$0xff] %v5716_v52  ;;  %v2064_v59 = vpop.permute.xlu1 %2063  ;;  %1151 = vst.msk [vmem:[%s6613_s9 + $0x20] sm:$0xff] %vm1138_vm6, %v5716_v52  ;;  %v1699_v16 = vadd.f32 %v5475_v41, %v1689_v35  ;;  %v5854_v35 = vld [vmem:[%s6605_s1 + $0x190] sm:$0xff] }
 0x173   :  { %2084 = vst.msk [vmem:[#allocation3 + $0x18] sm:$0xff] %vm652_vm5, %v2064_v59  ;;  %6750 = vst [vmem:[#allocation33_spill] sm:$0xff] %v5854_v35 }
 0x174   :  { %v854_v23 = vpop.permute.xlu0 %853  ;;  %v1707_v51 = vmax.f32 %v1699_v16, 0.0 }
 0x175   :  { %871 = vst.msk [vmem:[#allocation4 + $0x30] sm:$0xff] %vm406_vm3, %v854_v23  ;;  %v5727_v31 = vld [vmem:[#allocation4 + $0x28] sm:$0xff]  ;;  %v2181_v23 = vmul.f32 %v5287_v2, %v5809_v39 }
 0x176   :  { %6740 = vst [vmem:[#allocation23_spill] sm:$0xff] %v5727_v31  ;;  %1152 = vst.msk [vmem:[%s6613_s9 + $0x28] sm:$0xff] %vm1138_vm6, %v5727_v31 }
 0x177   :  { %v1940_v62 = vpop.permute.xlu1 %1939  ;;  %1715 = vst.msk [vmem:[#allocation3] sm:$0xff] %vm283_vm0, %v1707_v51  ;;  %v2199_v16 = vadd.f32 %v2191_v3, %v2181_v23  ;;  %v5860_v51 = vstv %s3194_s11  ;;  %v5878_v3 = vstv %s5811_s15  ;;  %s3106_s15 = sld [smem:[#allocation10 + $0x3]] }
 0x178   :  { %1961 = vst.msk [vmem:[#allocation3 + $0x10] sm:$0xff] %vm529_vm4, %v1940_v62  ;;  %v5824_v62 = vld [vmem:[%s6605_s1 + $0x110] sm:$0xff]  ;;  %v2314_v55 = vmul.f32 %v5215_v5, %v5878_v3 }
 0x179   :  { %v856_v10 = vpop.permute.xlu0 %855 }
 0x17a   :  { %872 = vst.msk [vmem:[#allocation4 + $0x38] sm:$0xff] %vm406_vm3, %v856_v10  ;;  %v5742_v0 = vld [vmem:[#allocation3 + $0x18] sm:$0xff]  ;;  %v2183_v10 = vmul.f32 %v5824_v62, %v5809_v39 }
 0x17b   :  { %6741 = vst [vmem:[#allocation26_spill] sm:$0xff] %v5742_v0  ;;  %v976_v33 = vpop.permute.xlu1 %975  ;;  %3208 = vst.msk [vmem:[%s6612_s8 + $0x58] sm:$0xff] %vm1138_vm6, %v5742_v0 }
 0x17c   :  { %993 = vst.msk [vmem:[#allocation4 + $0x30] sm:$0xff] %vm529_vm4, %v976_v33  ;;  %v2192_v33 = vmul.f32 %v5215_v5, %v5815_v44 }
 0x17e   :  { %v1816_v8 = vpop.permute.xlu0 %1815 }
 0x17f   :  { %1838 = vst.msk [vmem:[#allocation3 + $0x8] sm:$0xff] %vm406_vm3, %v1816_v8  ;;  %v2210_v8 = vmul.f32 %v5220_v4, %v5830_v60 }
 0x180   :  { %v2062_v11 = vpop.permute.xlu1 %2061 }
 0x181   :  { %2083 = vst.msk [vmem:[#allocation3 + $0x10] sm:$0xff] %vm652_vm5, %v2062_v11  ;;  %v2211_v11 = vmul.f32 %v5854_v35, %v5830_v60 }
 0x182   :  { %v978_v15 = vpop.permute.xlu0 %977 }
 0x183   :  { %994 = vst.msk [vmem:[#allocation4 + $0x38] sm:$0xff] %vm529_vm4, %v978_v15  ;;  %v2227_v15 = vmul.f32 %v5309_v48, %v5845_v22 }
 0x184   :  { %v1098_v45 = vpop.permute.xlu1 %1097 }
 0x185   :  { %1115 = vst.msk [vmem:[#allocation4 + $0x30] sm:$0xff] %vm652_vm5, %v1098_v45  ;;  %v2200_v45 = vadd.f32 %v2192_v33, %v2182_v56  ;;  %v5883_v33 = vstv %s5819_s3  ;;  %s3093_s3 = sld [smem:[#allocation10 + $0x80]] }
 0x187   :  { %v1938_v6 = vpop.permute.xlu0 %1937  ;;  %v2218_v23 = vadd.f32 %v2210_v8, %v2200_v45 }
 0x188   :  { %1960 = vst.msk [vmem:[#allocation3 + $0x8] sm:$0xff] %vm529_vm4, %v1938_v6  ;;  %v5761_v40 = vld [vmem:[#allocation3 + $0x10] sm:$0xff]  ;;  %v2228_v6 = vmul.f32 %v5225_v1, %v5845_v22 }
 0x189   :  { %6742 = vst [vmem:[#allocation30_spill] sm:$0xff] %v5761_v40  ;;  %v1100_v27 = vpop.permute.xlu1 %1099  ;;  %3207 = vst.msk [vmem:[%s6612_s8 + $0x50] sm:$0xff] %vm1138_vm6, %v5761_v40 }
 0x18a   :  { %1116 = vst.msk [vmem:[#allocation4 + $0x38] sm:$0xff] %vm652_vm5, %v1100_v27  ;;  %v5866_v27 = vstv %s3195_s12  ;;  %v2236_v8 = vadd.f32 %v2228_v6, %v2218_v23  ;;  %v5906_v23 = vstv %s5862_s14  ;;  %s1394_s12 = sld [smem:[#allocation10]] }
 0x18b   :  { %v1814_v41 = vpop.permute.xlu0 %1813  ;;  %v2303_v56 = vmul.f32 %v5287_v2, %v5866_v27  ;;  %s1416_s14 = sld [smem:[#allocation11]] }
 0x18c   :  { %1837 = vst.msk [vmem:[#allocation3] sm:$0xff] %vm406_vm3, %v1814_v41  ;;  %v5770_v28 = vld [vmem:[#allocation4 + $0x30] sm:$0xff]  ;;  %v2201_v41 = vadd.f32 %v2193_v26, %v2183_v10  ;;  %v2313_v10 = vmul.f32 %v5293_v49, %v5878_v3  ;;  %v2304_v26 = vmul.f32 %v5204_v17, %v5866_v27  ;;  %v2246_v40 = vadd.f32 %v5860_v51, %v2236_v8 }
 0x18d   :  { %6743 = vst [vmem:[#allocation35_spill] sm:$0xff] %v5770_v28  ;;  %v2060_v19 = vpop.permute.xlu1 %2059  ;;  %1153 = vst.msk [vmem:[%s6613_s9 + $0x30] sm:$0xff] %vm1138_vm6, %v5770_v28  ;;  %v5914_v8 = vstv %s3202_s4  ;;  %s2957_s4 = sshll.u32 %s3596_s19, 4  ;;  %s2958_s4 = int_to_ptr.vmem [resolvable:$true] %s2957_s4 }
 0x18e   :  { %2082 = vst.msk [vmem:[#allocation3 + $0x8] sm:$0xff] %vm652_vm5, %v2060_v19  ;;  %v5871_v19 = vld [vmem:[%s6605_s1 + $0x1d0] sm:$0xff]  ;;  %v2322_v17 = vadd.f32 %v2314_v55, %v2304_v26  ;;  %v2254_v0 = vmax.f32 %v2246_v40, 0.0  ;;  %v2425_v55 = vmul.f32 %v5287_v2, %v5906_v23  ;;  %v2453_v40 = vmul.f32 %v5298_v57, %v5914_v8  ;;  %s3519_s17 = scalar_lea.vmem %s2958_s4, 512  ;;  %p3524_p7 = scmp.lt.s32.totalorder %s2958_s4, %s2958_s4 }
 0x18f   :  { %6751 = vst [vmem:[#allocation34_spill] sm:$0xff] %v5871_v19  ;;  %v5924_v2 = vstv %s3204_s18  ;;  %p3520_p6 = scmp.ne.s32.totalorder %s2958_s4, %s3519_s17  ;;  %p3525_p8 = scmp.lt.s32.totalorder %s3519_s17, %s3519_s17 }
 0x190   :  { %v1936_v21 = vpop.permute.xlu0 %1935  ;;  %2271 = vrot.lane.b32.xlu1 %v2254_v0, %s3593_s22 }
 0x191   :  { %1959 = vst.msk [vmem:[#allocation3] sm:$0xff] %vm529_vm4, %v1936_v21  ;;  %v5779_v43 = vld [vmem:[#allocation4 + $0x38] sm:$0xff]  ;;  %v2229_v21 = vmul.f32 %v5871_v19, %v5845_v22  ;;  %p3526_p9 = por %p3525_p8, %p3524_p7 }
 0x192   :  { %6744 = vst [vmem:[#allocation22_spill] sm:$0xff] %v5779_v43  ;;  %v2058_v14 = vpop.permute.xlu1 %2057  ;;  %1154 = vst.msk [vmem:[%s6613_s9 + $0x38] sm:$0xff] %vm1138_vm6, %v5779_v43 }
 0x193   :  { %2081 = vst.msk [vmem:[#allocation3] sm:$0xff] %vm652_vm5, %v2058_v14  ;;  %v2217_v14 = vadd.f32 %v2209_v18, %v2199_v16  ;;  %v2331_v16 = vmul.f32 %v5298_v57, %v5883_v33  ;;  %p3527_p10 = pnand %p3526_p9, %p3520_p6 }
 0x195   :  { %v5793_v59 = vld [vmem:[#allocation3 + $0x8] sm:$0xff]  ;;  %v2235_v18 = vadd.f32 %v2227_v15, %v2217_v14  ;;  %v2332_v15 = vmul.f32 %v5220_v4, %v5883_v33 }
 0x196   :  { %6747 = vst [vmem:[#allocation29_spill] sm:$0xff] %v5793_v59  ;;  %3206 = vst.msk [vmem:[%s6612_s8 + $0x48] sm:$0xff] %vm1138_vm6, %v5793_v59  ;;  %v5897_v59 = vstv %s5849_s16  ;;  %s3095_s16 = sld [smem:[#allocation10 + $0x180]] }
 0x197   :  { %v2245_v43 = vadd.f32 %v5860_v51, %v2235_v18  ;;  %v2340_v31 = vadd.f32 %v2332_v15, %v2322_v17 }
 0x199   :  { %v2253_v28 = vmax.f32 %v2245_v43, 0.0  ;;  %v2471_v43 = vmul.f32 %v5309_v48, %v5916_v54 }
 0x19a   :  { %v5802_v38 = vld [vmem:[#allocation3] sm:$0xff] }
 0x19b   :  { %6748 = vst [vmem:[#allocation31_spill] sm:$0xff] %v5802_v38  ;;  %3205 = vst.msk [vmem:[%s6612_s8 + $0x40] sm:$0xff] %vm1138_vm6, %v5802_v38  ;;  %s5834_s8 = sld [smem:[#allocation5 + $0x18a]]  ;;  %v2321_v38 = vadd.f32 %v2313_v10, %v2303_v56  ;;  %v5908_v56 = vstv %s3201_s29  ;;  %v2219_v10 = vadd.f32 %v2211_v11, %v2201_v41  ;;  %2269 = vrot.lane.b32.xlu0 %v2253_v28, %s3593_s22  ;;  %v5930_v11 = vld [vmem:[%s6605_s1 + $0x108] sm:$0xff] }
 0x19c   :  { %v2435_v18 = vmul.f32 %v5293_v49, %v5908_v56  ;;  %6752 = vst [vmem:[#allocation36_spill] sm:$0xff] %v5930_v11  ;;  %v2426_v0 = vmul.f32 %v5930_v11, %v5906_v23  ;;  %v2472_v28 = vmul.f32 %v5225_v1, %v5916_v54  ;;  %s3100_s29 = sld [smem:[#allocation11 + $0x1]] }
 0x19d   :  { %v2339_v14 = vadd.f32 %v2331_v16, %v2321_v38  ;;  %v2237_v41 = vadd.f32 %v2229_v21, %v2219_v10  ;;  %v5959_v21 = vld [vmem:[%s6605_s1 + $0x198] sm:$0xff] }
 0x19e   :  { %v2443_v49 = vadd.f32 %v2435_v18, %v2425_v55  ;;  %6755 = vst [vmem:[#allocation39_spill] sm:$0xff] %v5959_v21  ;;  %v2212_v10 = vmul.f32 %v5959_v21, %v5830_v60 }
 0x19f   :  { %v2247_v55 = vadd.f32 %v5860_v51, %v2237_v41 }
 0x1a0   :  { %v2461_v17 = vadd.f32 %v2453_v40, %v2443_v49 }
 0x1a1   :  { %v5892_v45 = vstv %s5834_s8  ;;  %v2255_v49 = vmax.f32 %v2247_v55, 0.0  ;;  %s3188_s8 = sld [smem:[#allocation5 + $0x188]] }
 0x1a2   :  { %v2349_v24 = vmul.f32 %v5309_v48, %v5892_v45  ;;  %v2350_v6 = vmul.f32 %v5225_v1, %v5892_v45  ;;  %v2454_v48 = vmul.f32 %v5220_v4, %v5914_v8  ;;  %v5952_v4 = vld [vmem:[%s6605_s1 + $0x158] sm:$0xff]  ;;  %v2351_v41 = vmul.f32 %v5871_v19, %v5892_v45 }
 0x1a3   :  { %6754 = vst [vmem:[#allocation38_spill] sm:$0xff] %v5952_v4  ;;  %v2194_v1 = vmul.f32 %v5952_v4, %v5815_v44 }
 0x1a4   :  { %v2357_v26 = vadd.f32 %v2349_v24, %v2339_v14  ;;  %v2358_v38 = vadd.f32 %v2350_v6, %v2340_v31  ;;  %v2436_v31 = vmul.f32 %v5215_v5, %v5908_v56  ;;  %v5944_v6 = vld [vmem:[%s6605_s1 + $0x118] sm:$0xff] }
 0x1a5   :  { %6753 = vst [vmem:[#allocation37_spill] sm:$0xff] %v5944_v6  ;;  %v2184_v5 = vmul.f32 %v5944_v6, %v5809_v39 }
 0x1a6   :  { %v2367_v24 = vadd.f32 %v5897_v59, %v2357_v26  ;;  %v2368_v57 = vadd.f32 %v5897_v59, %v2358_v38  ;;  %v2444_v15 = vadd.f32 %v2436_v31, %v2426_v0  ;;  %v2479_v26 = vadd.f32 %v2471_v43, %v2461_v17  ;;  %v5967_v38 = vld [vmem:[%s6605_s1 + $0x1d8] sm:$0xff] }
 0x1a7   :  { %6756 = vst [vmem:[#allocation40_spill] sm:$0xff] %v5967_v38  ;;  %v2230_v40 = vmul.f32 %v5967_v38, %v5845_v22  ;;  %v2202_v0 = vadd.f32 %v2194_v1, %v2184_v5  ;;  %v2315_v31 = vmul.f32 %v5839_v30, %v5878_v3  ;;  %v2333_v43 = vmul.f32 %v5854_v35, %v5883_v33 }
 0x1a8   :  { %v2375_v16 = vmax.f32 %v2367_v24, 0.0  ;;  %v2376_v14 = vmax.f32 %v2368_v57, 0.0  ;;  %v2462_v18 = vadd.f32 %v2454_v48, %v2444_v15  ;;  %v2305_v24 = vmul.f32 %v5824_v62, %v5866_v27 }
 0x1a9   :  { %v2489_v57 = vadd.f32 %v5924_v2, %v2479_v26  ;;  %v2220_v17 = vadd.f32 %v2212_v10, %v2202_v0  ;;  %v2316_v5 = vmul.f32 %v5952_v4, %v5878_v3  ;;  %v2427_v26 = vmul.f32 %v5824_v62, %v5906_v23 }
 0x1aa   :  { %2391 = vrot.lane.b32.xlu0 %v2375_v16, %s3594_s25  ;;  %2393 = vrot.lane.b32.xlu1 %v2376_v14, %s3594_s25  ;;  %v2480_v48 = vadd.f32 %v2472_v28, %v2462_v18  ;;  %v2306_v16 = vmul.f32 %v5944_v6, %v5866_v27  ;;  %v2323_v15 = vadd.f32 %v2315_v31, %v2305_v24 }
 0x1ab   :  { %v2334_v14 = vmul.f32 %v5959_v21, %v5883_v33  ;;  %v2497_v55 = vmax.f32 %v2489_v57, 0.0  ;;  %v2352_v28 = vmul.f32 %v5967_v38, %v5892_v45  ;;  %v2238_v18 = vadd.f32 %v2230_v40, %v2220_v17 }
 0x1ac   :  { %v2490_v1 = vadd.f32 %v5924_v2, %v2480_v48  ;;  %v2341_v11 = vadd.f32 %v2333_v43, %v2323_v15  ;;  %v2324_v52 = vadd.f32 %v2316_v5, %v2306_v16  ;;  %v2437_v10 = vmul.f32 %v5839_v30, %v5908_v56 }
 0x1ad   :  { %v2455_v0 = vmul.f32 %v5854_v35, %v5914_v8  ;;  %v2473_v31 = vmul.f32 %v5871_v19, %v5916_v54  ;;  %v2428_v57 = vmul.f32 %v5944_v6, %v5906_v23  ;;  %v2248_v48 = vadd.f32 %v5860_v51, %v2238_v18 }
 0x1ae   :  { %2513 = vrot.lane.b32.xlu0 %v2497_v55, %s3595_s5  ;;  %v2498_v24 = vmax.f32 %v2490_v1, 0.0  ;;  %v2359_v40 = vadd.f32 %v2351_v41, %v2341_v11  ;;  %v2342_v43 = vadd.f32 %v2334_v14, %v2324_v52  ;;  %v2445_v16 = vadd.f32 %v2437_v10, %v2427_v26  ;;  %v6016_v14 = vld [vmem:[%s6605_s1 + $0x160] sm:$0xff] }
 0x1af   :  { %v2438_v17 = vmul.f32 %v5952_v4, %v5908_v56  ;;  %v2456_v15 = vmul.f32 %v5959_v21, %v5914_v8  ;;  %v2474_v5 = vmul.f32 %v5967_v38, %v5916_v54  ;;  %v2185_v55 = vmul.f32 %v5583_v61, %v5809_v39  ;;  %v6023_v10 = vld [vmem:[%s6605_s1 + $0x1a0] sm:$0xff] }
 0x1b0   :  { %2515 = vrot.lane.b32.xlu1 %v2498_v24, %s3595_s5  ;;  %v2256_v1 = vmax.f32 %v2248_v48, 0.0  ;;  %v2369_v18 = vadd.f32 %v5897_v59, %v2359_v40  ;;  %v2360_v11 = vadd.f32 %v2352_v28, %v2342_v43  ;;  %v2463_v52 = vadd.f32 %v2455_v0, %v2445_v16 }
 0x1b1   :  { %v2446_v41 = vadd.f32 %v2438_v17, %v2428_v57  ;;  %v2195_v26 = vmul.f32 %v6016_v14, %v5815_v44  ;;  %v2213_v28 = vmul.f32 %v6023_v10, %v5830_v60  ;;  %v2186_v40 = vmul.f32 %v5528_v12, %v5809_v39 }
 0x1b2   :  { %2273 = vrot.lane.b32.xlu0 %v2255_v49, %s3593_s22  ;;  %v6030_v49 = vld [vmem:[%s6605_s1 + $0x1e0] sm:$0xff]  ;;  %v2377_v0 = vmax.f32 %v2369_v18, 0.0  ;;  %v2370_v57 = vadd.f32 %v5897_v59, %v2360_v11  ;;  %v2481_v48 = vadd.f32 %v2473_v31, %v2463_v52  ;;  %v2196_v17 = vmul.f32 %v5540_v25, %v5815_v44 }
 0x1b3   :  { %v2231_v24 = vmul.f32 %v6030_v49, %v5845_v22  ;;  %v2464_v43 = vadd.f32 %v2456_v15, %v2446_v41  ;;  %v2203_v16 = vadd.f32 %v2195_v26, %v2185_v55  ;;  %v2214_v38 = vmul.f32 %v5547_v29, %v5830_v60 }
 0x1b4   :  { %2275 = vrot.lane.b32.xlu1 %v2256_v1, %s3593_s22  ;;  %v2378_v19 = vmax.f32 %v2370_v57, 0.0  ;;  %v2491_v21 = vadd.f32 %v5924_v2, %v2481_v48  ;;  %v2232_v18 = vmul.f32 %v5556_v47, %v5845_v22  ;;  %v2307_v31 = vmul.f32 %v5583_v61, %v5866_v27 }
 0x1b5   :  { %v2482_v1 = vadd.f32 %v2474_v5, %v2464_v43  ;;  %v2221_v15 = vadd.f32 %v2213_v28, %v2203_v16  ;;  %v2204_v55 = vadd.f32 %v2196_v17, %v2186_v40  ;;  %v2317_v11 = vmul.f32 %v6016_v14, %v5878_v3 }
 0x1b6   :  { %2395 = vrot.lane.b32.xlu0 %v2377_v0, %s3594_s25  ;;  %v2499_v41 = vmax.f32 %v2491_v21, 0.0  ;;  %v2335_v26 = vmul.f32 %v6023_v10, %v5883_v33  ;;  %v2353_v57 = vmul.f32 %v6030_v49, %v5892_v45  ;;  %v2187_v48 = vmul.f32 %v5439_v37, %v5809_v39 }
 0x1b7   :  { %v2492_v28 = vadd.f32 %v5924_v2, %v2482_v1  ;;  %v2239_v0 = vadd.f32 %v2231_v24, %v2221_v15  ;;  %v2222_v40 = vadd.f32 %v2214_v38, %v2204_v55  ;;  %v2325_v21 = vadd.f32 %v2317_v11, %v2307_v31 }
 0x1b8   :  { %2397 = vrot.lane.b32.xlu1 %v2378_v19, %s3594_s25  ;;  %v2197_v16 = vmul.f32 %v5453_v7, %v5815_v44  ;;  %v2215_v17 = vmul.f32 %v5460_v53, %v5830_v60  ;;  %v2233_v35 = vmul.f32 %v5469_v13, %v5845_v22  ;;  %v2308_v55 = vmul.f32 %v5528_v12, %v5866_v27 }
 0x1b9   :  { %v2500_v19 = vmax.f32 %v2492_v28, 0.0  ;;  %v2249_v38 = vadd.f32 %v5860_v51, %v2239_v0  ;;  %v2240_v24 = vadd.f32 %v2232_v18, %v2222_v40  ;;  %v2343_v31 = vadd.f32 %v2335_v26, %v2325_v21 }
 0x1ba   :  { %2517 = vrot.lane.b32.xlu0 %v2499_v41, %s3595_s5  ;;  %v2205_v15 = vadd.f32 %v2197_v16, %v2187_v48  ;;  %v2318_v30 = vmul.f32 %v5540_v25, %v5878_v3  ;;  %v2336_v41 = vmul.f32 %v5547_v29, %v5883_v33  ;;  %v2439_v40 = vmul.f32 %v6016_v14, %v5908_v56 }
 0x1bb   :  { %v2257_v11 = vmax.f32 %v2249_v38, 0.0  ;;  %v2250_v6 = vadd.f32 %v5860_v51, %v2240_v24  ;;  %v2361_v0 = vadd.f32 %v2353_v57, %v2343_v31  ;;  %v2457_v57 = vmul.f32 %v6023_v10, %v5914_v8 }
 0x1bc   :  { %2519 = vrot.lane.b32.xlu1 %v2500_v19, %s3595_s5  ;;  %v2223_v18 = vadd.f32 %v2215_v17, %v2205_v15  ;;  %v2326_v48 = vadd.f32 %v2318_v30, %v2308_v55  ;;  %v2475_v30 = vmul.f32 %v6030_v49, %v5916_v54  ;;  %v2216_v55 = vmul.f32 %v5430_v58, %v5830_v60 }
 0x1bd   :  { %v6050_v52 = vpop.f32.mrf.mxu0  ;;  %v2258_v26 = vmax.f32 %v2250_v6, 0.0  ;;  %v2371_v16 = vadd.f32 %v5897_v59, %v2361_v0  ;;  %v2337_v58 = vmul.f32 %v5460_v53, %v5883_v33  ;;  %v2355_v60 = vmul.f32 %v5469_v13, %v5892_v45 }
 0x1be   :  { %v1237_v5 = vsel %vm1138_vm6, %v6050_v52, -inf  ;;  %2277 = vrot.lane.b32.xlu0 %v2257_v11, %s3593_s22  ;;  %v2241_v19 = vadd.f32 %v2233_v35, %v2223_v18  ;;  %v2344_v17 = vadd.f32 %v2336_v41, %v2326_v48  ;;  %v2198_v35 = vmul.f32 %v5423_v46, %v5815_v44 }
 0x1bf   :  { %v6062_v43 = vpop.f32.mrf.mxu0  ;;  %v2379_v24 = vmax.f32 %v2371_v16, 0.0  ;;  %v2234_v11 = vmul.f32 %v5446_v34, %v5845_v22  ;;  %v2319_v46 = vmul.f32 %v5453_v7, %v5878_v3  ;;  %v2430_v22 = vmul.f32 %v5528_v12, %v5906_v23  ;;  %v6128_v16 = vld [vmem:[%s6605_s1 + $0x138] sm:$0xff] }
 0x1c0   :  { %v1236_v4 = vsel %vm1138_vm6, %v6062_v43, -inf  ;;  %2279 = vrot.lane.b32.xlu1 %v2258_v26, %s3593_s22  ;;  %v2440_v7 = vmul.f32 %v5540_v25, %v5908_v56  ;;  %v2458_v53 = vmul.f32 %v5547_v29, %v5914_v8  ;;  %v2310_v25 = vmul.f32 %v6128_v16, %v5866_v27 }
 0x1c1   :  { %v1238_v1 = vmax.f32 %v1236_v4, %v1237_v5  ;;  %v2354_v4 = vmul.f32 %v5556_v47, %v5892_v45  ;;  %v2429_v5 = vmul.f32 %v5583_v61, %v5906_v23  ;;  %v2188_v61 = vmul.f32 %v5406_v36, %v5809_v39 }
 0x1c2   :  { %2399 = vrot.lane.b32.xlu0 %v2379_v24, %s3594_s25  ;;  %v2309_v39 = vmul.f32 %v5439_v37, %v5866_v27  ;;  %v2448_v12 = vadd.f32 %v2440_v7, %v2430_v22  ;;  %v6146_v27 = vld [vmem:[%s6605_s1 + $0x1b8] sm:$0xff] }
 0x1c3   :  { %v1239_v28 = vrot.slane %v1238_v1, 4  ;;  %v2447_v38 = vadd.f32 %v2439_v40, %v2429_v5  ;;  %v2362_v31 = vadd.f32 %v2354_v4, %v2344_v17  ;;  %v2206_v36 = vadd.f32 %v2198_v35, %v2188_v61 }
 0x1c4   :  { %v2327_v26 = vadd.f32 %v2319_v46, %v2309_v39  ;;  %v2476_v40 = vmul.f32 %v5556_v47, %v5916_v54  ;;  %v6138_v47 = vld [vmem:[%s6605_s1 + $0x178] sm:$0xff] }
 0x1c5   :  { %v1240_v21 = vmax.f32 %v1238_v1, %v1239_v28  ;;  %v2251_v1 = vadd.f32 %v5860_v51, %v2241_v19  ;;  %v2465_v15 = vadd.f32 %v2457_v57, %v2447_v38  ;;  %v2372_v0 = vadd.f32 %v5897_v59, %v2362_v31  ;;  %v6161_v31 = vld [vmem:[%s6605_s1 + $0x130] sm:$0xff] }
 0x1c6   :  { %v2224_v34 = vadd.f32 %v2216_v55, %v2206_v36  ;;  %v2320_v17 = vmul.f32 %v6138_v47, %v5878_v3 }
 0x1c7   :  { %v1241_v6 = vrot.slane %v1240_v21, 2  ;;  %v2259_v28 = vmax.f32 %v2251_v1, 0.0  ;;  %v2483_v18 = vadd.f32 %v2475_v30, %v2465_v15  ;;  %v2380_v37 = vmax.f32 %v2372_v0, 0.0  ;;  %v6168_v15 = vld [vmem:[%s6605_s1 + $0x170] sm:$0xff] }
 0x1c8   :  { %v2242_v5 = vadd.f32 %v2234_v11, %v2224_v34  ;;  %v2466_v30 = vadd.f32 %v2458_v53, %v2448_v12  ;;  %v2328_v24 = vadd.f32 %v2320_v17, %v2310_v25  ;;  %v6176_v11 = vld [vmem:[%s6605_s1 + $0x1b0] sm:$0xff]  ;;  %v2460_v34 = vmul.f32 %v6146_v27, %v5914_v8 }
 0x1c9   :  { %v1242_v41 = vmax.f32 %v1240_v21, %v1241_v6  ;;  %2281 = vrot.lane.b32.xlu1 %v2259_v28, %s3593_s22  ;;  %v2493_v4 = vadd.f32 %v5924_v2, %v2483_v18  ;;  %2401 = vrot.lane.b32.xlu0 %v2380_v37, %s3594_s25  ;;  %v2345_v21 = vadd.f32 %v2337_v58, %v2327_v26  ;;  %v6183_v28 = vld [vmem:[%s6605_s1 + $0x1f0] sm:$0xff] }
 0x1ca   :  { %v2252_v57 = vadd.f32 %v5860_v51, %v2242_v5  ;;  %v2338_v51 = vmul.f32 %v6146_v27, %v5883_v33  ;;  %v2484_v35 = vadd.f32 %v2476_v40, %v2466_v30  ;;  %v2431_v33 = vmul.f32 %v6161_v31, %v5906_v23 }
 0x1cb   :  { %v1243_v44 = vrot.slane %v1242_v41, 1  ;;  %v2501_v13 = vmax.f32 %v2493_v4, 0.0  ;;  %v2363_v38 = vadd.f32 %v2355_v60, %v2345_v21  ;;  %v2477_v36 = vmul.f32 %v6183_v28, %v5916_v54 }
 0x1cc   :  { %v2260_v6 = vmax.f32 %v2252_v57, 0.0  ;;  %v2346_v55 = vadd.f32 %v2338_v51, %v2328_v24  ;;  %v2494_v0 = vadd.f32 %v5924_v2, %v2484_v35  ;;  %v2432_v58 = vmul.f32 %v6128_v16, %v5906_v23  ;;  %v6767_v24 = vld [vmem:[#allocation28_spill] sm:$0xff] }
 0x1cd   :  { %v1244_v48 = vmax.f32 %v1242_v41, %v1243_v44  ;;  %2521 = vrot.lane.b32.xlu1 %v2501_v13, %s3595_s5  ;;  %v2373_v1 = vadd.f32 %v5897_v59, %v2363_v38  ;;  %v2459_v41 = vmul.f32 %v6176_v11, %v5914_v8  ;;  %v2442_v44 = vmul.f32 %v6138_v47, %v5908_v56  ;;  %v3459_v35 = vld [vmem:[%s6605_s1 + $0x100] sm:$0xff] }
 0x1ce   :  { %2283 = vrot.lane.b32.xlu0 %v2260_v6, %s3593_s22  ;;  %v2502_v60 = vmax.f32 %v2494_v0, 0.0  ;;  %v6766_v6 = vld [vmem:[#allocation31_spill] sm:$0xff]  ;;  %s3185_s22 = sld [smem:[#allocation5 + $0x8]] }
 0x1cf   :  { %v1245_v19 = vsub.f32 %v6062_v43, %v1244_v48  ;;  %v1246_v29 = vsub.f32 %v6050_v52, %v1244_v48  ;;  %v6153_v52 = vld [vmem:[%s6605_s1 + $0x1f8] sm:$0xff]  ;;  %v2381_v39 = vmax.f32 %v2373_v1, 0.0  ;;  %v2450_v4 = vadd.f32 %v2442_v44, %v2432_v58  ;;  %v3462_v58 = vld [vmem:[%s6605_s1 + $0x180] sm:$0xff] }
 0x1d0   :  { %v2356_v3 = vmul.f32 %v6153_v52, %v5892_v45  ;;  %v2441_v45 = vmul.f32 %v6168_v15, %v5908_v56  ;;  %v2478_v26 = vmul.f32 %v6153_v52, %v5916_v54 }
 0x1d1   :  { %v1247_v43 = vmul.f32 1.442695, %v1245_v19  ;;  %v1249_v61 = vmul.f32 1.442695, %v1246_v29  ;;  %2403 = vrot.lane.b32.xlu1 %v2381_v39, %s3594_s25  ;;  %v2468_v48 = vadd.f32 %v2460_v34, %v2450_v4  ;;  %v6768_v39 = vld [vmem:[#allocation36_spill] sm:$0xff] }
 0x1d2   :  { %v2449_v18 = vadd.f32 %v2441_v45, %v2431_v33  ;;  %v2364_v46 = vadd.f32 %v2356_v3, %v2346_v55  ;;  %2523 = vrot.lane.b32.xlu0 %v2502_v60, %s3595_s5  ;;  %v6757_v3 = vld [vmem:[#allocation25_spill] sm:$0xff]  ;;  %v3460_v55 = vld [vmem:[%s6605_s1 + $0x140] sm:$0xff]  ;;  %v6266_v60 = vstv %s3188_s8  ;;  %s3098_s8 = sld [smem:[#allocation10 + $0x101]] }
 0x1d3   :  { %3374 = vpow2.f32 %v1247_v43  ;;  %v2486_v8 = vadd.f32 %v2478_v26, %v2468_v48  ;;  %v6763_v43 = vld [vmem:[#allocation22_spill] sm:$0xff]  ;;  %v3464_v26 = vld [vmem:[%s6605_s1 + $0x1c0] sm:$0xff] }
 0x1d4   :  { %3376 = vpow2.f32 %v1249_v61  ;;  %v2467_v22 = vadd.f32 %v2459_v41, %v2449_v18  ;;  %v2374_v37 = vadd.f32 %v5897_v59, %v2364_v46  ;;  %v6765_v61 = vld [vmem:[#allocation27_spill] sm:$0xff]  ;;  %v6242_v1 = vstv %s3185_s22  ;;  %v3461_v18 = vld [vmem:[%s6605_s1 + $0x148] sm:$0xff]  ;;  %s3102_s22 = sld [smem:[#allocation10 + $0x82]] }
 0x1d5   :  { %v2496_v53 = vadd.f32 %v5924_v2, %v2486_v8  ;;  %v2091_v33 = vmul.f32 %v3459_v35, %v6242_v1  ;;  %v2092_v0 = vmul.f32 %v6768_v39, %v6242_v1 }
 0x1d6   :  { %v2485_v7 = vadd.f32 %v2477_v36, %v2467_v22  ;;  %v2382_v23 = vmax.f32 %v2374_v37, 0.0  ;;  %v6254_v36 = vstv %s3187_s23  ;;  %v3463_v37 = vld [vmem:[%s6605_s1 + $0x188] sm:$0xff]  ;;  %s3094_s23 = sld [smem:[#allocation10 + $0x100]] }
 0x1d7   :  { %v2504_v59 = vmax.f32 %v2496_v53, 0.0  ;;  %v2119_v44 = vmul.f32 %v3462_v58, %v6254_v36  ;;  %v2120_v4 = vmul.f32 %v3463_v37, %v6254_v36  ;;  %v6280_v53 = vstv %s3189_s28  ;;  %s3109_s28 = sld [smem:[#allocation10 + $0x183]] }
 0x1d8   :  { %v2495_v56 = vadd.f32 %v5924_v2, %v2485_v7  ;;  %2405 = vrot.lane.b32.xlu1 %v2382_v23, %s3594_s25  ;;  %v2137_v7 = vmul.f32 %v3464_v26, %v6266_v60  ;;  %v3467_v26 = vld [vmem:[%s6605_s1 + $0x128] sm:$0xff] }
 0x1da   :  { %v2503_v5 = vmax.f32 %v2495_v56, 0.0  ;;  %v3465_v56 = vld [vmem:[%s6605_s1 + $0x1c8] sm:$0xff] }
 0x1db   :  { %v2138_v8 = vmul.f32 %v3465_v56, %v6266_v60 }
 0x1dc   :  { %2525 = vrot.lane.b32.xlu0 %v2503_v5, %s3595_s5  ;;  %2527 = vrot.lane.b32.xlu1 %v2504_v59, %s3595_s5  ;;  %s3186_s5 = sld [smem:[#allocation5 + $0x88]] }
 0x1e0   :  { %v3375_v40 = vpop.eup %3374 }
 0x1e1   :  { %v3377_v13 = vpop.eup %3376  ;;  %v1251_v54 = vsel %vm1138_vm6, %v3375_v40, 0.0 }
 0x1e2   :  { %v1252_v21 = vsel %vm1138_vm6, %v3377_v13, 0.0  ;;  %v6248_v45 = vstv %s3186_s5  ;;  %s3107_s5 = sld [smem:[#allocation10 + $0x83]] }
 0x1e3   :  { %v1253_v12 = vadd.f32 %v1252_v21, %v1251_v54  ;;  %v2101_v41 = vmul.f32 %v3460_v55, %v6248_v45  ;;  %v2102_v46 = vmul.f32 %v3461_v18, %v6248_v45 }
 0x1e5   :  { %v1254_v25 = vrot.slane %v1253_v12, 4  ;;  %v2109_v34 = vadd.f32 %v2101_v41, %v2091_v33  ;;  %v2110_v22 = vadd.f32 %v2102_v46, %v2092_v0 }
 0x1e7   :  { %v1255_v19 = vadd.f32 %v1254_v25, %v1253_v12  ;;  %v2127_v23 = vadd.f32 %v2119_v44, %v2109_v34  ;;  %v2128_v48 = vadd.f32 %v2120_v4, %v2110_v22  ;;  %v3466_v22 = vld [vmem:[%s6605_s1 + $0x120] sm:$0xff]  ;;  %v2105_v4 = vmul.f32 %v6016_v14, %v6248_v45 }
 0x1e8   :  { %v2095_v37 = vmul.f32 %v3466_v22, %v6242_v1 }
 0x1e9   :  { %v1256_v29 = vrot.slane %v1255_v19, 2  ;;  %v2145_v5 = vadd.f32 %v2137_v7, %v2127_v23  ;;  %v2146_v59 = vadd.f32 %v2138_v8, %v2128_v48  ;;  %v2096_v7 = vmul.f32 %v3467_v26, %v6242_v1  ;;  %v3468_v23 = vld [vmem:[%s6605_s1 + $0x168] sm:$0xff] }
 0x1ea   :  { %v2106_v48 = vmul.f32 %v3468_v23, %v6248_v45  ;;  %v2113_v14 = vadd.f32 %v2105_v4, %v2095_v37  ;;  %v2123_v8 = vmul.f32 %v6023_v10, %v6254_v36  ;;  %v6432_v37 = vstv %s1394_s12 }
 0x1eb   :  { %v1257_v57 = vadd.f32 %v1256_v29, %v1255_v19  ;;  %v2093_v19 = vmul.f32 %v5824_v62, %v6242_v1  ;;  %v6769_v29 = vld [vmem:[#allocation32_spill] sm:$0xff]  ;;  %v6772_v62 = vld [vmem:[#allocation33_spill] sm:$0xff]  ;;  %v6434_v4 = vstv %s3096_s0  ;;  %v6436_v26 = vstv %s3101_s21 }
 0x1ed   :  { %v1258_v17 = vrot.slane %v1257_v57, 1 }
 0x1ef   :  { %v1259_v38 = vadd.f32 %v1258_v17, %v1257_v57  ;;  %v2103_v57 = vmul.f32 %v6769_v29, %v6248_v45  ;;  %v6770_v17 = vld [vmem:[#allocation37_spill] sm:$0xff]  ;;  %v2097_v29 = vmul.f32 %v6161_v31, %v6242_v1  ;;  %v2125_v31 = vmul.f32 %v6176_v11, %v6254_v36 }
 0x1f0   :  { %v2098_v11 = vmul.f32 %v6128_v16, %v6242_v1 }
 0x1f1   :  { %3378 = vrcp.f32 %v1259_v38  ;;  %v2094_v38 = vmul.f32 %v6770_v17, %v6242_v1 }
 0x1fe   :  { %v3379_v2 = vpop.eup %3378 }
 0x1ff   :  { %v1262_v30 = vmul.f32 %v3379_v2, %v3377_v13  ;;  %v1261_v51 = vmul.f32 %v3379_v2, %v3375_v40  ;;  %v2155_v40 = vadd.f32 %v6280_v53, %v2145_v5  ;;  %v2156_v13 = vadd.f32 %v6280_v53, %v2146_v59  ;;  %v6771_v2 = vld [vmem:[#allocation38_spill] sm:$0xff] }
 0x200   :  { %v2114_v59 = vadd.f32 %v2106_v48, %v2096_v7  ;;  %v6438_v7 = vstv %s3106_s15  ;;  %v6440_v48 = vstv %s3093_s3 }
 0x201   :  { %1264 = vst.msk [vmem:[#allocation16 + $0x8] sm:$0xff] %vm1138_vm6, %v1262_v30  ;;  %3308 = vmatprep.subr.mxu1 %v1262_v30  ;;  %1263 = vst.msk [vmem:[#allocation16] sm:$0xff] %vm1138_vm6, %v1261_v51  ;;  %v2163_v21 = vmax.f32 %v2155_v40, 0.0  ;;  %v2164_v12 = vmax.f32 %v2156_v13, 0.0  ;;  %v3469_v40 = vld [vmem:[%s6605_s1 + $0x1a8] sm:$0xff] }
 0x202   :  { %3309 = vmatpush3.msra.mxu1 %v1262_v30  ;;  %v2272_v25 = vpop.permute.xlu1 %2271  ;;  %v2104_v30 = vmul.f32 %v6771_v2, %v6248_v45  ;;  %v2124_v13 = vmul.f32 %v3469_v40, %v6254_v36  ;;  %v6452_v40 = vstv %s3103_s24 }
 0x203   :  { %3310 = vmatprep.subr.mxu1 %v1261_v51  ;;  %2171 = vst.msk [vmem:[#allocation4] sm:$0xff] %vm283_vm0, %v2163_v21  ;;  %2172 = vst.msk [vmem:[#allocation4 + $0x8] sm:$0xff] %vm283_vm0, %v2164_v12  ;;  %v2131_v21 = vadd.f32 %v2123_v8, %v2113_v14  ;;  %v2141_v12 = vmul.f32 %v6030_v49, %v6266_v60  ;;  %v2107_v49 = vmul.f32 %v6168_v15, %v6248_v45 }
 0x204   :  { %3311 = vmatpush3.msra.mxu1 %v1261_v51  ;;  %2294 = vst.msk [vmem:[#allocation4 + $0x8] sm:$0xff] %vm406_vm3, %v2272_v25  ;;  %v2132_v10 = vadd.f32 %v2124_v13, %v2114_v59  ;;  %v3470_v25 = vld [vmem:[%s6605_s1 + $0x1e8] sm:$0xff]  ;;  %s3104_s1 = sld [smem:[#allocation10 + $0x182]]  ;;  %v6444_v14 = vstv %s3102_s22  ;;  %v6446_v8 = vstv %s3107_s5  ;;  %v6450_v59 = vstv %s3098_s8 }
 0x205   :  { %3313 = vmatmul.mubr.msk.f32.vlgmr.msra.gmra.mxu1 %vm1138_vm6, %v5561_v9  ;;  %3324 = vmatprep.subr.mxu1 %v5572_v20  ;;  %v6758_v9 = vld [vmem:[#allocation24_spill] sm:$0xff]  ;;  %v6454_v13 = vstv %s3108_s26 }
 0x206   :  { %3315 = vmatprep.mubr.msk.f32.mxu1 %vm1138_vm6, %v5631_v42  ;;  %3325 = vmatpush3.msra.mxu1 %v5572_v20  ;;  %v6759_v42 = vld [vmem:[#allocation23_spill] sm:$0xff]  ;;  %v6760_v20 = vld [vmem:[#allocation26_spill] sm:$0xff] }
 0x207   :  { %3326 = vmatprep.subr.mxu1 %v5612_v63 }
 0x208   :  { %3327 = vmatpush3.msra.mxu1 %v5612_v63  ;;  %v6761_v63 = vld [vmem:[#allocation35_spill] sm:$0xff] }
 0x209   :  { %3316 = vmatmul.mubr.msk.f32.gmra.mxu1 %vm1138_vm6, %v5646_v50  ;;  %3328 = vmatprep.subr.mxu1 %v5656_v32  ;;  %v6762_v50 = vld [vmem:[#allocation30_spill] sm:$0xff] }
 0x20a   :  { %3318 = vmatprep.mubr.msk.f32.mxu1 %vm1138_vm6, %v6757_v3  ;;  %3329 = vmatpush3.msra.mxu1 %v5656_v32  ;;  %v6764_v32 = vld [vmem:[#allocation29_spill] sm:$0xff]  ;;  %v2111_v3 = vadd.f32 %v2103_v57, %v2093_v19  ;;  %v2142_v19 = vmul.f32 %v3470_v25, %v6266_v60  ;;  %v6462_v25 = vstv %s3109_s28 }
 0x20b   :  { %3330 = vmatprep.subr.mxu1 %v6758_v9 }
 0x20c   :  { %3331 = vmatpush3.msra.mxu1 %v6758_v9  ;;  %v2121_v9 = vmul.f32 %v6772_v62, %v6254_v36 }
 0x20d   :  { %3319 = vmatmul.mubr.msk.f32.gmra.mxu1 %vm1138_vm6, %v6759_v42  ;;  %3332 = vmatprep.subr.mxu1 %v6760_v20  ;;  %v2270_v54 = vpop.permute.xlu0 %2269 }
 0x20e   :  { %3321 = vmatprep.mubr.msk.f32.mxu1 %vm1138_vm6, %v6761_v63  ;;  %3333 = vmatpush3.msra.mxu1 %v6760_v20  ;;  %2293 = vst.msk [vmem:[#allocation4] sm:$0xff] %vm406_vm3, %v2270_v54  ;;  %v2112_v20 = vadd.f32 %v2104_v30, %v2094_v38  ;;  %v6773_v63 = vld [vmem:[#allocation39_spill] sm:$0xff]  ;;  %v2149_v38 = vadd.f32 %v2141_v12, %v2131_v21  ;;  %v6456_v21 = vstv %s3095_s16  ;;  %v6458_v12 = vstv %s3099_s27 }
 0x20f   :  { %3334 = vmatprep.subr.mxu1 %v6762_v50  ;;  %v2150_v30 = vadd.f32 %v2142_v19, %v2132_v10  ;;  %v6460_v10 = vstv %s3104_s1  ;;  %v6464_v19 = vstv %s1416_s14 }
 0x210   :  { %3335 = vmatpush3.msra.mxu1 %v6762_v50  ;;  %v2122_v50 = vmul.f32 %v6773_v63, %v6254_v36  ;;  %v2159_v15 = vadd.f32 %v6280_v53, %v2149_v38 }
 0x211   :  { %3322 = vmatmul.mubr.msk.f32.gmra.mxu1 %vm1138_vm6, %v6763_v43  ;;  %3336 = vmatprep.subr.mxu1 %v6764_v32  ;;  %v2129_v43 = vadd.f32 %v2121_v9, %v2111_v3  ;;  %v2160_v3 = vadd.f32 %v6280_v53, %v2150_v30  ;;  %v2143_v9 = vmul.f32 %v6183_v28, %v6266_v60 }
 0x212   :  { %3337 = vmatpush3.msra.mxu1 %v6764_v32  ;;  %3340 = vmatprep.mubr.msk.f32.mxu1 %vm1135_vm2, %v6765_v61  ;;  %v6774_v32 = vld [vmem:[#allocation34_spill] sm:$0xff] }
 0x213   :  { %3338 = vmatprep.subr.mxu1 %v6766_v6  ;;  %v2139_v61 = vmul.f32 %v6774_v32, %v6266_v60  ;;  %v2168_v63 = vmax.f32 %v2160_v3, 0.0  ;;  %v2108_v32 = vmul.f32 %v6138_v47, %v6248_v45 }
 0x214   :  { %3339 = vmatpush3.msra.mxu1 %v6766_v6  ;;  %v2130_v6 = vadd.f32 %v2122_v50, %v2112_v20 }
 0x215   :  { %3341 = vmatmul.mubr.msk.f32.vlgmr.msra.gmra.mxu1 %vm1135_vm2, %v6767_v24  ;;  %v6775_v24 = vld [vmem:[#allocation40_spill] sm:$0xff]  ;;  %v2147_v55 = vadd.f32 %v2139_v61, %v2129_v43  ;;  %v2126_v61 = vmul.f32 %v6146_v27, %v6254_v36  ;;  %2176 = vst.msk [vmem:[#allocation4 + $0x28] sm:$0xff] %vm283_vm0, %v2168_v63 }
 0x216   :  { %v2140_v35 = vmul.f32 %v6775_v24, %v6266_v60  ;;  %v2116_v24 = vadd.f32 %v2108_v32, %v2098_v11 }
 0x217   :  { %v2157_v0 = vadd.f32 %v6280_v53, %v2147_v55 }
 0x218   :  { %v2148_v39 = vadd.f32 %v2140_v35, %v2130_v6  ;;  %v2144_v35 = vmul.f32 %v6153_v52, %v6266_v60  ;;  %v2134_v1 = vadd.f32 %v2126_v61, %v2116_v24 }
 0x219   :  { %v2165_v46 = vmax.f32 %v2157_v0, 0.0 }
 0x21a   :  { %v2158_v18 = vadd.f32 %v6280_v53, %v2148_v39  ;;  %v2152_v36 = vadd.f32 %v2144_v35, %v2134_v1 }
 0x21b   :  { %2173 = vst.msk [vmem:[#allocation4 + $0x10] sm:$0xff] %vm283_vm0, %v2165_v46 }
 0x21c   :  { %v2392_v51 = vpop.permute.xlu0 %2391  ;;  %v2394_v42 = vpop.permute.xlu1 %2393  ;;  %v2166_v44 = vmax.f32 %v2158_v18, 0.0 }
 0x21d   :  { %2415 = vst.msk [vmem:[#allocation4] sm:$0xff] %vm529_vm4, %v2392_v51  ;;  %2416 = vst.msk [vmem:[#allocation4 + $0x8] sm:$0xff] %vm529_vm4, %v2394_v42  ;;  %v2115_v51 = vadd.f32 %v2107_v49, %v2097_v29  ;;  %v2167_v42 = vmax.f32 %v2159_v15, 0.0  ;;  %v6466_v29 = vstv %s3100_s29  ;;  %v6468_v49 = vstv %s3105_s30 }
 0x21e   :  { %2174 = vst.msk [vmem:[#allocation4 + $0x18] sm:$0xff] %vm283_vm0, %v2166_v44 }
 0x21f   :  { %v2133_v62 = vadd.f32 %v2125_v31, %v2115_v51  ;;  %2175 = vst.msk [vmem:[#allocation4 + $0x20] sm:$0xff] %vm283_vm0, %v2167_v42 }
 0x220   :  { %v2514_v33 = vpop.permute.xlu0 %2513 }
 0x221   :  { %2537 = vst.msk [vmem:[#allocation4] sm:$0xff] %vm652_vm5, %v2514_v33  ;;  %v2151_v43 = vadd.f32 %v2143_v9, %v2133_v62  ;;  %v2162_v33 = vadd.f32 %v6280_v53, %v2152_v36 }
 0x222   :  { %v2516_v41 = vpop.permute.xlu1 %2515 }
 0x223   :  { %2538 = vst.msk [vmem:[#allocation4 + $0x8] sm:$0xff] %vm652_vm5, %v2516_v41  ;;  %v2161_v28 = vadd.f32 %v6280_v53, %v2151_v43  ;;  %v2170_v55 = vmax.f32 %v2162_v33, 0.0 }
 0x224   :  { %v2274_v58 = vpop.permute.xlu0 %2273 }
 0x225   :  { %2295 = vst.msk [vmem:[#allocation4 + $0x10] sm:$0xff] %vm406_vm3, %v2274_v58  ;;  %v2169_v16 = vmax.f32 %v2161_v28, 0.0 }
 0x226   :  { %v2276_v34 = vpop.permute.xlu1 %2275  ;;  %2178 = vst.msk [vmem:[#allocation4 + $0x38] sm:$0xff] %vm283_vm0, %v2170_v55 }
 0x227   :  { %2296 = vst.msk [vmem:[#allocation4 + $0x18] sm:$0xff] %vm406_vm3, %v2276_v34 }
 0x228   :  { %v2396_v56 = vpop.permute.xlu0 %2395  ;;  %v2555_v54 = vld [vmem:[#allocation4] sm:$0xff]  ;;  %2177 = vst.msk [vmem:[#allocation4 + $0x30] sm:$0xff] %vm283_vm0, %v2169_v16 }
 0x229   :  { %2417 = vst.msk [vmem:[#allocation4 + $0x10] sm:$0xff] %vm529_vm4, %v2396_v56  ;;  %3347 = vmatprep.mubr.msk.f32.mxu0 %vm1138_vm6, %v2555_v54  ;;  %v6442_v56 = vstv %s3097_s2 }
 0x22a   :  { %v2398_v5 = vpop.permute.xlu1 %2397  ;;  %3213 = vst.msk [vmem:[%s6613_s9 + $0x40] sm:$0xff] %vm1138_vm6, %v2555_v54  ;;  %v6351_v57 = vld [vmem:[#allocation4 + $0x8] sm:$0xff] }
 0x22b   :  { %2418 = vst.msk [vmem:[#allocation4 + $0x18] sm:$0xff] %vm529_vm4, %v2398_v5  ;;  %v6448_v5 = vstv %s3094_s23 }
 0x22c   :  { %v2518_v17 = vpop.permute.xlu0 %2517  ;;  %3214 = vst.msk [vmem:[%s6613_s9 + $0x48] sm:$0xff] %vm1138_vm6, %v6351_v57 }
 0x22d   :  { %2539 = vst.msk [vmem:[#allocation4 + $0x10] sm:$0xff] %vm652_vm5, %v2518_v17 }
 0x22e   :  { %v2520_v2 = vpop.permute.xlu1 %2519 }
 0x22f   :  { %2540 = vst.msk [vmem:[#allocation4 + $0x18] sm:$0xff] %vm652_vm5, %v2520_v2 }
 0x230   :  { %v2278_v20 = vpop.permute.xlu0 %2277 }
 0x231   :  { %2297 = vst.msk [vmem:[#allocation4 + $0x20] sm:$0xff] %vm406_vm3, %v2278_v20 }
 0x232   :  { %v2280_v50 = vpop.permute.xlu1 %2279 }
 0x233   :  { %2298 = vst.msk [vmem:[#allocation4 + $0x28] sm:$0xff] %vm406_vm3, %v2280_v50 }
 0x234   :  { %v2400_v6 = vpop.permute.xlu0 %2399  ;;  %v6380_v45 = vld [vmem:[#allocation4 + $0x10] sm:$0xff] }
 0x235   :  { %2419 = vst.msk [vmem:[#allocation4 + $0x20] sm:$0xff] %vm529_vm4, %v2400_v6 }
 0x236   :  { %3215 = vst.msk [vmem:[%s6613_s9 + $0x50] sm:$0xff] %vm1138_vm6, %v6380_v45  ;;  %v6388_v27 = vld [vmem:[#allocation4 + $0x18] sm:$0xff] }
 0x237   :  { %3216 = vst.msk [vmem:[%s6613_s9 + $0x58] sm:$0xff] %vm1138_vm6, %v6388_v27 }
 0x23b   :  { %v2282_v47 = vpop.permute.xlu1 %2281  ;;  %v2402_v52 = vpop.permute.xlu0 %2401 }
 0x23c   :  { %2299 = vst.msk [vmem:[#allocation4 + $0x30] sm:$0xff] %vm406_vm3, %v2282_v47 }
 0x23d   :  { %2420 = vst.msk [vmem:[#allocation4 + $0x28] sm:$0xff] %vm529_vm4, %v2402_v52 }
 0x23f   :  { %v2522_v60 = vpop.permute.xlu1 %2521 }
 0x240   :  { %2541 = vst.msk [vmem:[#allocation4 + $0x20] sm:$0xff] %vm652_vm5, %v2522_v60  ;;  %v2284_v41 = vpop.permute.xlu0 %2283 }
 0x241   :  { %2300 = vst.msk [vmem:[#allocation4 + $0x38] sm:$0xff] %vm406_vm3, %v2284_v41 }
 0x243   :  { %v2404_v39 = vpop.permute.xlu1 %2403 }
 0x244   :  { %2421 = vst.msk [vmem:[#allocation4 + $0x30] sm:$0xff] %vm529_vm4, %v2404_v39  ;;  %v2524_v0 = vpop.permute.xlu0 %2523 }
 0x245   :  { %2542 = vst.msk [vmem:[#allocation4 + $0x28] sm:$0xff] %vm652_vm5, %v2524_v0 }
 0x247   :  { %v6404_v46 = vld [vmem:[#allocation4 + $0x20] sm:$0xff] }
 0x248   :  { %3217 = vst.msk [vmem:[%s6613_s9 + $0x60] sm:$0xff] %vm1138_vm6, %v6404_v46 }
 0x24a   :  { %v2406_v18 = vpop.permute.xlu1 %2405 }
 0x24b   :  { %2422 = vst.msk [vmem:[#allocation4 + $0x38] sm:$0xff] %vm529_vm4, %v2406_v18 }
 0x24c   :  { %v6413_v44 = vld [vmem:[#allocation4 + $0x28] sm:$0xff] }
 0x24d   :  { %3218 = vst.msk [vmem:[%s6613_s9 + $0x68] sm:$0xff] %vm1138_vm6, %v6413_v44 }
 0x24e   :  { %v2526_v58 = vpop.permute.xlu0 %2525  ;;  %v2528_v53 = vpop.permute.xlu1 %2527 }
 0x24f   :  { %2543 = vst.msk [vmem:[#allocation4 + $0x30] sm:$0xff] %vm652_vm5, %v2526_v58  ;;  %2544 = vst.msk [vmem:[#allocation4 + $0x38] sm:$0xff] %vm652_vm5, %v2528_v53 }
 0x256   :  { %v2561_v34 = vld [vmem:[#allocation4 + $0x30] sm:$0xff]  ;;  %v6425_v22 = vld [vmem:[#allocation4 + $0x38] sm:$0xff] }
 0x257   :  { %3219 = vst.msk [vmem:[%s6613_s9 + $0x70] sm:$0xff] %vm1138_vm6, %v2561_v34  ;;  %3356 = vmatprep.mubr.msk.f32.mxu1 %vm1138_vm6, %v2561_v34  ;;  %3220 = vst.msk [vmem:[%s6613_s9 + $0x78] sm:$0xff] %vm1138_vm6, %v6425_v22  ;;  %s3110_s9 = sld [smem:[#allocation11 + $0x3]] }
 0x25d   :  { %v6470_v17 = vstv %s3110_s9 }
 0x2c5   :  { %v3314_v23 = vpop.f32.mrf.mxu1 }
 0x2c6   :  { %v1397_v38 = vmul.f32 %v3314_v23, %v6432_v37  ;;  %v1425_v2 = vmul.f32 %v3314_v23, %v6434_v4  ;;  %v1454_v30 = vmul.f32 %v3314_v23, %v6436_v26  ;;  %v1483_v51 = vmul.f32 %v3314_v23, %v6438_v7 }
 0x2c7   :  { %v1355_v54 = vpop.f32.mrf.mxu1 }
 0x2c8   :  { %v1396_v42 = vmul.f32 %v6432_v37, %v1355_v54  ;;  %v1424_v20 = vmul.f32 %v6434_v4, %v1355_v54  ;;  %v1453_v63 = vmul.f32 %v6436_v26, %v1355_v54  ;;  %v1482_v50 = vmul.f32 %v6438_v7, %v1355_v54 }
 0x2c9   :  { %v3317_v31 = vpop.f32.mrf.mxu1 }
 0x2ca   :  { %v1401_v15 = vmul.f32 %v3317_v31, %v6440_v48  ;;  %v1429_v3 = vmul.f32 %v3317_v31, %v6442_v56  ;;  %v1458_v62 = vmul.f32 %v3317_v31, %v6444_v14  ;;  %v1487_v9 = vmul.f32 %v3317_v31, %v6446_v8 }
 0x2cb   :  { %v1365_v43 = vpop.f32.mrf.mxu1 }
 0x2cc   :  { %v1403_v11 = vadd.f32 %v1401_v15, %v1397_v38  ;;  %v1431_v32 = vadd.f32 %v1429_v3, %v1425_v2  ;;  %v1460_v61 = vadd.f32 %v1458_v62, %v1454_v30  ;;  %v1489_v28 = vadd.f32 %v1487_v9, %v1483_v51 }
 0x2cd   :  { %v1400_v6 = vmul.f32 %v6440_v48, %v1365_v43  ;;  %v1428_v24 = vmul.f32 %v6442_v56, %v1365_v43  ;;  %v1457_v35 = vmul.f32 %v6444_v14, %v1365_v43  ;;  %v1486_v16 = vmul.f32 %v6446_v8, %v1365_v43  ;;  %v3320_v47 = vpop.f32.mrf.mxu1 }
 0x2ce   :  { %v1407_v1 = vmul.f32 %v3320_v47, %v6448_v5  ;;  %v1435_v52 = vmul.f32 %v3320_v47, %v6450_v59  ;;  %v1464_v36 = vmul.f32 %v3320_v47, %v6452_v40  ;;  %v1493_v60 = vmul.f32 %v3320_v47, %v6454_v13 }
 0x2cf   :  { %v1402_v33 = vadd.f32 %v1400_v6, %v1396_v42  ;;  %v1430_v55 = vadd.f32 %v1428_v24, %v1424_v20  ;;  %v1459_v41 = vadd.f32 %v1457_v35, %v1453_v63  ;;  %v1488_v39 = vadd.f32 %v1486_v16, %v1482_v50  ;;  %v1375_v0 = vpop.f32.mrf.mxu1 }
 0x2d0   :  { %v1409_v18 = vadd.f32 %v1407_v1, %v1403_v11  ;;  %v1437_v58 = vadd.f32 %v1435_v52, %v1431_v32  ;;  %v1466_v53 = vadd.f32 %v1464_v36, %v1460_v61  ;;  %v1495_v34 = vadd.f32 %v1493_v60, %v1489_v28 }
 0x2d1   :  { %v1406_v23 = vmul.f32 %v6448_v5, %v1375_v0  ;;  %v1434_v54 = vmul.f32 %v6450_v59, %v1375_v0  ;;  %v1463_v38 = vmul.f32 %v6452_v40, %v1375_v0  ;;  %v1492_v2 = vmul.f32 %v6454_v13, %v1375_v0  ;;  %v3323_v30 = vpop.f32.mrf.mxu1 }
 0x2d2   :  { %v1413_v51 = vmul.f32 %v3323_v30, %v6456_v21  ;;  %v1441_v31 = vmul.f32 %v3323_v30, %v6458_v12  ;;  %v1470_v15 = vmul.f32 %v3323_v30, %v6460_v10  ;;  %v1499_v3 = vmul.f32 %v3323_v30, %v6462_v25 }
 0x2d3   :  { %v1408_v62 = vadd.f32 %v1406_v23, %v1402_v33  ;;  %v1436_v9 = vadd.f32 %v1434_v54, %v1430_v55  ;;  %v1465_v42 = vadd.f32 %v1463_v38, %v1459_v41  ;;  %v1494_v20 = vadd.f32 %v1492_v2, %v1488_v39  ;;  %v1385_v63 = vpop.f32.mrf.mxu1 }
 0x2d4   :  { %v1415_v50 = vadd.f32 %v1413_v51, %v1409_v18  ;;  %v1443_v43 = vadd.f32 %v1441_v31, %v1437_v58  ;;  %v1472_v11 = vadd.f32 %v1470_v15, %v1466_v53  ;;  %v1501_v32 = vadd.f32 %v1499_v3, %v1495_v34 }
 0x2d5   :  { %v1412_v61 = vmul.f32 %v6456_v21, %v1385_v63  ;;  %v1440_v28 = vmul.f32 %v6458_v12, %v1385_v63  ;;  %v1469_v6 = vmul.f32 %v6460_v10, %v1385_v63  ;;  %v1498_v24 = vmul.f32 %v6462_v25, %v1385_v63  ;;  %v3342_v35 = vpop.f32.mrf.mxu1 }
 0x2d6   :  { %v1419_v16 = vadd.f32 %v6464_v19, %v1415_v50  ;;  %v1447_v47 = vadd.f32 %v6466_v29, %v1443_v43  ;;  %v1476_v1 = vadd.f32 %v6468_v49, %v1472_v11  ;;  %v1505_v52 = vadd.f32 %v6470_v17, %v1501_v32 }
 0x2d7   :  { %v1414_v36 = vadd.f32 %v1412_v61, %v1408_v62  ;;  %v1442_v60 = vadd.f32 %v1440_v28, %v1436_v9  ;;  %v1471_v33 = vadd.f32 %v1469_v6, %v1465_v42  ;;  %v1500_v55 = vadd.f32 %v1498_v24, %v1494_v20  ;;  %v2656_v41 = vpop.f32.mrf.mxu1 }
 0x2d8   :  { %1421 = vst.msk [vmem:[#allocation13 + $0x8] sm:$0xff] %vm1138_vm6, %v1419_v16  ;;  %1450 = vst.msk [vmem:[#allocation13 + $0x18] sm:$0xff] %vm1138_vm6, %v1447_v47  ;;  %v2666_v39 = vsel %vm1138_vm6, %v3342_v35, -inf  ;;  %v2665_v0 = vsel %vm1138_vm6, %v2656_v41, -inf }
 0x2d9   :  { %1479 = vst.msk [vmem:[#allocation13 + $0x28] sm:$0xff] %vm1138_vm6, %v1476_v1  ;;  %1508 = vst.msk [vmem:[#allocation13 + $0x38] sm:$0xff] %vm1138_vm6, %v1505_v52  ;;  %v1418_v18 = vadd.f32 %v6464_v19, %v1414_v36  ;;  %v1446_v58 = vadd.f32 %v6466_v29, %v1442_v60  ;;  %v1475_v53 = vadd.f32 %v6468_v49, %v1471_v33 }
 0x2da   :  { %v1504_v34 = vadd.f32 %v6470_v17, %v1500_v55  ;;  %v2667_v23 = vmax.f32 %v2665_v0, %v2666_v39 }
 0x2db   :  { %1420 = vst.msk [vmem:[#allocation13] sm:$0xff] %vm1138_vm6, %v1418_v18  ;;  %1449 = vst.msk [vmem:[#allocation13 + $0x10] sm:$0xff] %vm1138_vm6, %v1446_v58 }
 0x2dc   :  { %1478 = vst.msk [vmem:[#allocation13 + $0x20] sm:$0xff] %vm1138_vm6, %v1475_v53  ;;  %1507 = vst.msk [vmem:[#allocation13 + $0x30] sm:$0xff] %vm1138_vm6, %v1504_v34  ;;  %v2668_v54 = vrot.slane %v2667_v23, 4 }
 0x2de   :  { %v2669_v38 = vmax.f32 %v2667_v23, %v2668_v54 }
 0x2e0   :  { %v2670_v2 = vrot.slane %v2669_v38, 2 }
 0x2e2   :  { %v2671_v30 = vmax.f32 %v2669_v38, %v2670_v2 }
 0x2e4   :  { %v2672_v51 = vrot.slane %v2671_v30, 1 }
 0x2e6   :  { %v2673_v31 = vmax.f32 %v2671_v30, %v2672_v51 }
 0x2e8   :  { %v2674_v15 = vsub.f32 %v2656_v41, %v2673_v31  ;;  %v2675_v3 = vsub.f32 %v3342_v35, %v2673_v31 }
 0x2ea   :  { %v2676_v62 = vmul.f32 1.442695, %v2674_v15  ;;  %v2678_v9 = vmul.f32 1.442695, %v2675_v3 }
 0x2ec   :  { %3380 = vpow2.f32 %v2676_v62 }
 0x2ed   :  { %3382 = vpow2.f32 %v2678_v9 }
 0x2f9   :  { %v3381_v42 = vpop.eup %3380 }
 0x2fa   :  { %v3383_v20 = vpop.eup %3382  ;;  %v2680_v63 = vsel %vm1138_vm6, %v3381_v42, 0.0 }
 0x2fb   :  { %v2681_v50 = vsel %vm1138_vm6, %v3383_v20, 0.0 }
 0x2fc   :  { %v2682_v43 = vadd.f32 %v2681_v50, %v2680_v63 }
 0x2fe   :  { %v2683_v11 = vrot.slane %v2682_v43, 4 }
 0x300   :  { %v2684_v32 = vadd.f32 %v2683_v11, %v2682_v43 }
 0x302   :  { %v2685_v61 = vrot.slane %v2684_v32, 2 }
 0x304   :  { %v2686_v28 = vadd.f32 %v2685_v61, %v2684_v32 }
 0x306   :  { %v2687_v6 = vrot.slane %v2686_v28, 1 }
 0x308   :  { %v2688_v24 = vadd.f32 %v2687_v6, %v2686_v28 }
 0x30a   :  { %3384 = vrcp.f32 %v2688_v24 }
 0x317   :  { %v3385_v16 = vpop.eup %3384 }
 0x318   :  { %v2691_v35 = vmul.f32 %v3385_v16, %v3383_v20  ;;  %v2690_v47 = vmul.f32 %v3385_v16, %v3381_v42 }
 0x31a   :  { %3343 = vmatprep.subr.mxu0 %v2691_v35  ;;  %2694 = vst.msk [vmem:[#allocation16 + $0x18] sm:$0xff] %vm1138_vm6, %v2691_v35  ;;  %3359 = vmatprep.subr.mxu1 %v2691_v35  ;;  %2693 = vst.msk [vmem:[#allocation16 + $0x10] sm:$0xff] %vm1138_vm6, %v2690_v47 }
 0x31b   :  { %3344 = vmatpush3.msra.mxu0 %v2691_v35  ;;  %3361 = vmatpush3.msra.mxu1 %v2691_v35 }
 0x31c   :  { %3345 = vmatprep.subr.mxu0 %v2690_v47  ;;  %3360 = vmatprep.subr.mxu1 %v2690_v47 }
 0x31d   :  { %3346 = vmatpush3.msra.mxu0 %v2690_v47  ;;  %3362 = vmatpush3.msra.mxu1 %v2690_v47 }
 0x31e   :  { %3348 = vmatmul.mubr.msk.f32.vlgmr.msra.gmra.mxu0 %vm1138_vm6, %v6351_v57  ;;  %3357 = vmatmul.mubr.msk.f32.vlgmr.msra.gmra.mxu1 %vm1138_vm6, %v6425_v22 }
 0x31f   :  { %3350 = vmatprep.mubr.msk.f32.mxu0 %vm1138_vm6, %v6380_v45 }
 0x322   :  { %3351 = vmatmul.mubr.msk.f32.gmra.mxu0 %vm1138_vm6, %v6388_v27 }
 0x323   :  { %3353 = vmatprep.mubr.msk.f32.mxu0 %vm1138_vm6, %v6404_v46 }
 0x326   :  { %3354 = vmatmul.mubr.msk.f32.gmra.mxu0 %vm1138_vm6, %v6413_v44 }
 0x327   :  { %3530 = shalt.err (!%p3527_p10)
}
 0x328   :  { %s3597_s18 = smov 128   ;;  %s3598_s11 = smov [#allocation16]  }
 0x329   :  { %2963 = dma.vmem_to_hbm [thread:$0]  %s2958_s4, 512, %s6611_s7, [#allocation15], %s3597_s18, %s3597_s18, %s3594_s25  }
 0x32a   :  { %s2973_s12 = sshll.u32 %s3598_s11, 4  ;;  %s2974_s12 = int_to_ptr.vmem [resolvable:$true] %s2973_s12 }
 0x32b   :  { %s3539_s0 = scalar_lea.vmem %s2974_s12, 512  ;;  %p3544_p12 = scmp.lt.s32.totalorder %s2974_s12, %s2974_s12 }
 0x32c   :  { %p3540_p11 = scmp.ne.s32.totalorder %s2974_s12, %s3539_s0  ;;  %p3545_p13 = scmp.lt.s32.totalorder %s3539_s0, %s3539_s0 }
 0x32e   :  { %p3546_p0 = por %p3545_p13, %p3544_p12 }
 0x330   :  { %p3547_p1 = pnand %p3546_p0, %p3540_p11 }
 0x332   :  { %3550 = shalt.err (!%p3547_p1)
}
 0x333   :  { %2979 = dma.vmem_to_hbm [thread:$0]  %s2974_s12, 512, %s6614_s10, [#allocation15], %s3597_s18, %s3597_s18, %s3594_s25  }
 0x334   :  { %s3599_s7 = smov [#allocation13]  }
 0x335   :  { %s2945_s10 = sshll.u32 %s3599_s7, 4  ;;  %s2946_s10 = int_to_ptr.vmem [resolvable:$true] %s2945_s10 }
 0x336   :  { %s3559_s3 = scalar_lea.vmem %s2946_s10, 2048  ;;  %p3564_p3 = scmp.lt.s32.totalorder %s2946_s10, %s2946_s10 }
 0x337   :  { %p3560_p2 = scmp.ne.s32.totalorder %s2946_s10, %s3559_s3  ;;  %p3565_p4 = scmp.lt.s32.totalorder %s3559_s3, %s3559_s3 }
 0x339   :  { %p3566_p5 = por %p3565_p4, %p3564_p3 }
 0x33b   :  { %p3567_p6 = pnand %p3566_p5, %p3560_p2 }
 0x3de   :  { %v3349_v57 = vpop.f32.mrf.mxu0  ;;  %v3358_v45 = vpop.f32.mrf.mxu1 }
 0x3df   :  { %v2827_v27 = vmul.f32 %v3349_v57, %v6432_v37  ;;  %v2856_v46 = vmul.f32 %v3349_v57, %v6434_v4  ;;  %v2885_v44 = vmul.f32 %v3349_v57, %v6436_v26  ;;  %v2914_v22 = vmul.f32 %v3349_v57, %v6438_v7 }
 0x3e0   :  { %v2785_v1 = vpop.f32.mrf.mxu0  ;;  %v2815_v52 = vpop.f32.mrf.mxu1  ;;  %v2843_v36 = vmul.f32 %v3358_v45, %v6456_v21  ;;  %v2872_v60 = vmul.f32 %v3358_v45, %v6458_v12  ;;  %v2901_v33 = vmul.f32 %v3358_v45, %v6460_v10  ;;  %v2930_v55 = vmul.f32 %v3358_v45, %v6462_v25 }
 0x3e1   :  { %v2826_v41 = vmul.f32 %v2785_v1, %v6432_v37  ;;  %v2855_v39 = vmul.f32 %v2785_v1, %v6434_v4  ;;  %v2884_v0 = vmul.f32 %v2785_v1, %v6436_v26  ;;  %v2913_v18 = vmul.f32 %v2785_v1, %v6438_v7 }
 0x3e2   :  { %v3352_v58 = vpop.f32.mrf.mxu0  ;;  %v2842_v2 = vmul.f32 %v2815_v52, %v6456_v21  ;;  %v2871_v37 = vmul.f32 %v2815_v52, %v6458_v12  ;;  %v2900_v4 = vmul.f32 %v2815_v52, %v6460_v10  ;;  %v2929_v26 = vmul.f32 %v2815_v52, %v6462_v25 }
 0x3e3   :  { %v2831_v53 = vmul.f32 %v3352_v58, %v6440_v48  ;;  %v2860_v34 = vmul.f32 %v3352_v58, %v6442_v56  ;;  %v2889_v23 = vmul.f32 %v3352_v58, %v6444_v14  ;;  %v2918_v54 = vmul.f32 %v3352_v58, %v6446_v8 }
 0x3e4   :  { %v2795_v38 = vpop.f32.mrf.mxu0 }
 0x3e5   :  { %v2833_v30 = vadd.f32 %v2831_v53, %v2827_v27  ;;  %v2862_v7 = vadd.f32 %v2860_v34, %v2856_v46  ;;  %v2891_v51 = vadd.f32 %v2889_v23, %v2885_v44  ;;  %v2920_v31 = vadd.f32 %v2918_v54, %v2914_v22 }
 0x3e6   :  { %v2830_v15 = vmul.f32 %v2795_v38, %v6440_v48  ;;  %v2859_v3 = vmul.f32 %v2795_v38, %v6442_v56  ;;  %v2888_v62 = vmul.f32 %v2795_v38, %v6444_v14  ;;  %v2917_v9 = vmul.f32 %v2795_v38, %v6446_v8  ;;  %v3355_v42 = vpop.f32.mrf.mxu0 }
 0x3e7   :  { %v2837_v21 = vmul.f32 %v3355_v42, %v6448_v5  ;;  %v2866_v12 = vmul.f32 %v3355_v42, %v6450_v59  ;;  %v2895_v10 = vmul.f32 %v3355_v42, %v6452_v40  ;;  %v2924_v25 = vmul.f32 %v3355_v42, %v6454_v13 }
 0x3e8   :  { %v2805_v20 = vpop.f32.mrf.mxu0  ;;  %v2832_v63 = vadd.f32 %v2830_v15, %v2826_v41  ;;  %v2861_v50 = vadd.f32 %v2859_v3, %v2855_v39  ;;  %v2890_v43 = vadd.f32 %v2888_v62, %v2884_v0  ;;  %v2919_v48 = vadd.f32 %v2917_v9, %v2913_v18 }
 0x3e9   :  { %v2836_v56 = vmul.f32 %v2805_v20, %v6448_v5  ;;  %v2839_v11 = vadd.f32 %v2837_v21, %v2833_v30  ;;  %v2865_v14 = vmul.f32 %v2805_v20, %v6450_v59  ;;  %v2868_v8 = vadd.f32 %v2866_v12, %v2862_v7 }
 0x3ea   :  { %v2894_v32 = vmul.f32 %v2805_v20, %v6452_v40  ;;  %v2897_v61 = vadd.f32 %v2895_v10, %v2891_v51  ;;  %v2923_v28 = vmul.f32 %v2805_v20, %v6454_v13  ;;  %v2926_v6 = vadd.f32 %v2924_v25, %v2920_v31 }
 0x3eb   :  { %v2838_v24 = vadd.f32 %v2836_v56, %v2832_v63  ;;  %v2867_v16 = vadd.f32 %v2865_v14, %v2861_v50  ;;  %v2845_v35 = vadd.f32 %v2843_v36, %v2839_v11  ;;  %v2874_v47 = vadd.f32 %v2872_v60, %v2868_v8 }
 0x3ec   :  { %v2896_v57 = vadd.f32 %v2894_v32, %v2890_v43  ;;  %v2925_v45 = vadd.f32 %v2923_v28, %v2919_v48  ;;  %v2903_v27 = vadd.f32 %v2901_v33, %v2897_v61  ;;  %v2932_v46 = vadd.f32 %v2930_v55, %v2926_v6 }
 0x3ed   :  { %v2844_v44 = vadd.f32 %v2842_v2, %v2838_v24  ;;  %v2849_v5 = vadd.f32 %v2845_v35, %v6464_v19  ;;  %v2873_v22 = vadd.f32 %v2871_v37, %v2867_v16  ;;  %v2878_v59 = vadd.f32 %v2874_v47, %v6466_v29 }
 0x3ee   :  { %v2902_v40 = vadd.f32 %v2900_v4, %v2896_v57  ;;  %v2907_v13 = vadd.f32 %v2903_v27, %v6468_v49  ;;  %v2931_v1 = vadd.f32 %v2929_v26, %v2925_v45  ;;  %v2936_v52 = vadd.f32 %v2932_v46, %v6470_v17 }
 0x3ef   :  { %v2848_v36 = vadd.f32 %v2844_v44, %v6464_v19  ;;  %2852 = vst.msk [vmem:[#allocation13 + $0x48] sm:$0xff] %vm1138_vm6, %v2849_v5  ;;  %v2877_v60 = vadd.f32 %v2873_v22, %v6466_v29  ;;  %2881 = vst.msk [vmem:[#allocation13 + $0x58] sm:$0xff] %vm1138_vm6, %v2878_v59 }
 0x3f0   :  { %v2906_v33 = vadd.f32 %v2902_v40, %v6468_v49  ;;  %2910 = vst.msk [vmem:[#allocation13 + $0x68] sm:$0xff] %vm1138_vm6, %v2907_v13  ;;  %v2935_v55 = vadd.f32 %v2931_v1, %v6470_v17  ;;  %2939 = vst.msk [vmem:[#allocation13 + $0x78] sm:$0xff] %vm1138_vm6, %v2936_v52 }
 0x3f1   :  { %2851 = vst.msk [vmem:[#allocation13 + $0x40] sm:$0xff] %vm1138_vm6, %v2848_v36  ;;  %2880 = vst.msk [vmem:[#allocation13 + $0x50] sm:$0xff] %vm1138_vm6, %v2877_v60 }
 0x3f2   :  { %2909 = vst.msk [vmem:[#allocation13 + $0x60] sm:$0xff] %vm1138_vm6, %v2906_v33  ;;  %2938 = vst.msk [vmem:[#allocation13 + $0x70] sm:$0xff] %vm1138_vm6, %v2935_v55 }
 0x3f3   :  { %3570 = shalt.err (!%p3567_p6)
}
 0x3f4   :  { %2951 = dma.vmem_to_hbm [thread:$0]  %s2946_s10, 2048, %s6610_s6, [#allocation6], %s3597_s18, %s3597_s18, %s3594_s25  }
 0x3f5   :  { %3585 = dma.done.wait [#allocation6], 2048  }
 0x3f6   :  { %3586 = vsyncadd [#allocation6], 4294965248 }
 0x3f7   :  { %3587 = dma.done.wait [#allocation15], 1024  }
 0x3f8   :  { %3588 = vsyncadd [#allocation15], 4294966272 }
 0x3f9   :  { %2993 = vsyncpa [#allocation6], 1 }
 0x3fa   :  { %2994 = vsyncpa [#allocation15], 1 }
 0x3fb   :  { %2995 = vsyncpa [#allocation7], 1 }
 0x3fc   :  { %2996 = vsyncpa [#allocation9], 1 }
 0x3fd   :  { %2997 = vsyncpa [#allocation12], 1 }

</bundles_post_ra>
